<compile_context>
chip_gen: v7x
topology: tpu7x:2x2x1
jax: 0.10.0
libtpu: 0.0.40
codegen_flags: <defaults>
</compile_context>

<pallas_src>
import functools

import jax
import jax.numpy as jnp
from jax.experimental import pallas as pl
from jax.experimental.pallas import tpu as pltpu

INITIAL_SIGMA = 0.5
SCALE_FACTOR = 64.0
VMEM_LIMIT = 32 * 1024 * 1024


def _round_up(x, m):
    return (x + m - 1) // m * m


def _m_tiling(M, target_tm=256):
    """Pick an M tile (multiple of 16 for bf16 sublane packing) and padded M."""
    Mp = _round_up(M, 16)
    if Mp <= target_tm:
        return Mp, Mp
    Mp = _round_up(M, target_tm)
    return Mp, target_tm


# ----------------------------------------------------------------------------
# Pallas kernels
# ----------------------------------------------------------------------------
def _mm_bias_kernel(a_ref, w_ref, bias_ref, o_ref, *, relu):
    # a_ref: (TM, K) bf16, w_ref: (K, N) bf16, bias_ref: (1, N) f32
    acc = jnp.dot(a_ref[...], w_ref[...], preferred_element_type=jnp.float32)
    acc = acc + bias_ref[...]
    if relu:
        acc = jnp.maximum(acc, 0.0)
    o_ref[...] = acc.astype(o_ref.dtype)


def batched_matmul_bias(a, w, bias, *, relu):
    """a: (G, M, K) bf16, w: (G, K, N) bf16, bias: (G, N) f32 -> (G, M, N) f32."""
    G, M, K = a.shape
    _, _, N = w.shape
    Mp, TM = _m_tiling(M)
    a_p = jnp.pad(a, ((0, 0), (0, Mp - M), (0, 0)))
    b_r = bias.reshape(G, 1, N).astype(jnp.float32)
    out = pl.pallas_call(
        functools.partial(_mm_bias_kernel, relu=relu),
        out_shape=jax.ShapeDtypeStruct((G, Mp, N), jnp.float32),
        grid=(G, Mp // TM),
        in_specs=[
            pl.BlockSpec((None, TM, K), lambda g, m: (g, m, 0)),
            pl.BlockSpec((None, K, N), lambda g, m: (g, 0, 0)),   # resident over m
            pl.BlockSpec((None, 1, N), lambda g, m: (g, 0, 0)),
        ],
        out_specs=pl.BlockSpec((None, TM, N), lambda g, m: (g, m, 0)),
        compiler_params=pltpu.CompilerParams(
            dimension_semantics=("parallel", "parallel"),
            vmem_limit_bytes=VMEM_LIMIT),
    )(a_p, w, b_r)
    return out[:, :M, :]


def _dual_mm_kernel(a_ref, w1_ref, b1_ref, w2_ref, b2_ref, o_ref, *, relu1, relu2):
    # Fused pair of 1x1 convs: intermediate activation stays in VMEM/vregs.
    h = jnp.dot(a_ref[...], w1_ref[...], preferred_element_type=jnp.float32)
    h = h + b1_ref[...]
    if relu1:
        h = jnp.maximum(h, 0.0)
    acc = jnp.dot(h.astype(jnp.bfloat16), w2_ref[...],
                  preferred_element_type=jnp.float32)
    acc = acc + b2_ref[...]
    if relu2:
        acc = jnp.maximum(acc, 0.0)
    o_ref[...] = acc.astype(o_ref.dtype)


def conv1x1_pair(x, w1, b1, w2, b2, *, relu1=True, relu2=True):
    """Two chained 1x1 convs (shared weights) in a single Pallas kernel.

    x: (B, H, W, C) f32; w1: (O1, C, 1, 1); w2: (O2, O1, 1, 1).
    """
    B, H, W_, C = x.shape
    O1 = w1.shape[0]
    O2 = w2.shape[0]
    M = B * H * W_
    A = x.astype(jnp.bfloat16).reshape(M, C)
    W1 = jnp.transpose(w1.reshape(O1, C), (1, 0)).astype(jnp.bfloat16)   # (C, O1)
    W2 = jnp.transpose(w2.reshape(O2, O1), (1, 0)).astype(jnp.bfloat16)  # (O1, O2)
    Mp, TM = _m_tiling(M)
    A_p = jnp.pad(A, ((0, Mp - M), (0, 0)))
    out = pl.pallas_call(
        functools.partial(_dual_mm_kernel, relu1=relu1, relu2=relu2),
        out_shape=jax.ShapeDtypeStruct((Mp, O2), jnp.float32),
        grid=(Mp // TM,),
        in_specs=[
            pl.BlockSpec((TM, C), lambda m: (m, 0)),
            pl.BlockSpec((C, O1), lambda m: (0, 0)),
            pl.BlockSpec((1, O1), lambda m: (0, 0)),
            pl.BlockSpec((O1, O2), lambda m: (0, 0)),
            pl.BlockSpec((1, O2), lambda m: (0, 0)),
        ],
        out_specs=pl.BlockSpec((TM, O2), lambda m: (m, 0)),
        compiler_params=pltpu.CompilerParams(
            dimension_semantics=("parallel",),
            vmem_limit_bytes=VMEM_LIMIT),
    )(A_p, W1, b1.reshape(1, O1).astype(jnp.float32),
      W2, b2.reshape(1, O2).astype(jnp.float32))
    return out[:M].reshape(B, H, W_, O2)


def _pool_kernel(e0_ref, o0_ref, e1_ref, o1_ref, e2_ref, o2_ref, out_ref, *, op, Ho):
    # Each input block: (Ho+1, Wo, C). The 9 window taps are contiguous slices
    # along the leading (untiled) axis of the 6 de-interleaved planes.
    taps = []
    for even_ref, odd_ref in ((e0_ref, o0_ref), (e1_ref, o1_ref), (e2_ref, o2_ref)):
        e = even_ref[...]
        o = odd_ref[...]
        taps.append(e[0:Ho])
        taps.append(o[0:Ho])
        taps.append(e[1:Ho + 1])
    acc = taps[0]
    if op == "max":
        for t in taps[1:]:
            acc = jnp.maximum(acc, t)
    else:
        for t in taps[1:]:
            acc = acc + t
        acc = acc * (1.0 / 9.0)   # count_include_pad=True -> divisor always 9
    out_ref[...] = acc.astype(out_ref.dtype)


def pool2d(x, *, op):
    """3x3 window, stride 2, padding 1 over NHWC input (PyTorch semantics)."""
    B, H, W_, C = x.shape
    Ho = (H - 1) // 2 + 1
    Wo = (W_ - 1) // 2 + 1
    pad_val = float("-inf") if op == "max" else 0.0
    Hp = 2 * Ho + 2
    Wp = 2 * Wo + 2
    xp = jnp.pad(x, ((0, 0), (1, Hp - H - 1), (1, Wp - W_ - 1), (0, 0)),
                 constant_values=pad_val)
    # De-interleave: for each of the 3 column taps (stride-2 columns), split into
    # even / odd rows.  Output row i, col tap dx then reads rows {i, i, i+1} of
    # {even, odd, even} planes -- contiguous slices inside the kernel.
    planes = []
    for dx in range(3):
        col = xp[:, :, dx:dx + 2 * Wo:2, :]      # (B, Hp, Wo, C)
        planes.append(col[:, 0::2, :, :])        # even rows: (B, Ho+1, Wo, C)
        planes.append(col[:, 1::2, :, :])        # odd rows:  (B, Ho+1, Wo, C)
    Ho1 = Ho + 1
    out = pl.pallas_call(
        functools.partial(_pool_kernel, op=op, Ho=Ho),
        out_shape=jax.ShapeDtypeStruct((B, Ho, Wo, C), jnp.float32),
        grid=(B,),
        in_specs=[pl.BlockSpec((None, Ho1, Wo, C), lambda b: (b, 0, 0, 0))] * 6,
        out_specs=pl.BlockSpec((None, Ho, Wo, C), lambda b: (b, 0, 0, 0)),
        compiler_params=pltpu.CompilerParams(
            dimension_semantics=("parallel",),
            vmem_limit_bytes=VMEM_LIMIT),
    )(*planes)
    return out


# ----------------------------------------------------------------------------
# Conv wrappers (im2col glue emitted in bf16 + Pallas MXU matmul hot path)
# ----------------------------------------------------------------------------
# TODO(synk): patch extraction could be fused into the kernel via shifted-view
# in_specs to avoid materializing im2col at all; kept as bf16 im2col here.
def conv2d(x, w, b, *, padding, relu):
    """x: (B,H,W,C) NHWC; w: (O,I,KH,KW) PyTorch OIHW; stride 1."""
    O, I, KH, KW = w.shape
    B, H, W_, C = x.shape
    xb = x.astype(jnp.bfloat16)
    if KH == 1 and KW == 1:
        A = xb.reshape(B * H * W_, C)
    else:
        xp = jnp.pad(xb, ((0, 0), (padding, padding), (padding, padding), (0, 0)))
        pats = []
        for dy in range(KH):
            for dx in range(KW):
                pats.append(xp[:, dy:dy + H, dx:dx + W_, :])
        A = jnp.stack(pats, axis=3).reshape(B * H * W_, KH * KW * C)
    Wm = jnp.transpose(w, (2, 3, 1, 0)).reshape(KH * KW * I, O).astype(jnp.bfloat16)
    y = batched_matmul_bias(A[None], Wm[None], b[None], relu=relu)[0]
    return y.reshape(B, H, W_, O)


def dynamic_conv5x5(x, w, b, *, relu):
    """Per-sample conv: x (G,H,W,C); w (G,O,I,5,5); b (G,O); padding=2."""
    G, H, W_, C = x.shape
    _, O, I, KH, KW = w.shape
    xp = jnp.pad(x.astype(jnp.bfloat16), ((0, 0), (2, 2), (2, 2), (0, 0)))
    pats = []
    for dy in range(KH):
        for dx in range(KW):
            pats.append(xp[:, dy:dy + H, dx:dx + W_, :])
    A = jnp.stack(pats, axis=3).reshape(G, H * W_, KH * KW * C)
    Wm = jnp.transpose(w, (0, 3, 4, 2, 1)).reshape(G, KH * KW * I, O).astype(jnp.bfloat16)
    y = batched_matmul_bias(A, Wm, b, relu=relu)
    return y.reshape(G, H, W_, O)


# ----------------------------------------------------------------------------
# Parameters (deterministic synthetic init)
# ----------------------------------------------------------------------------
def init_params(key, input_channels=3):
    ks = list(jax.random.split(key, 20))

    def conv_w(k, o, i, kh, kw, s=0.05):
        return s * jax.random.normal(k, (o, i, kh, kw), jnp.float32)

    def vec(k, n, s=0.02):
        return s * jax.random.normal(k, (n,), jnp.float32)

    return {
        # before_features
        "b1_w": conv_w(ks[0], 192, input_channels, 5, 5), "b1_b": vec(ks[1], 192),
        "b2_w": conv_w(ks[2], 160, 192, 1, 1), "b2_b": vec(ks[3], 160),
        "b3_w": conv_w(ks[4], 96, 160, 1, 1), "b3_b": vec(ks[5], 96),
        # after_features
        "a1_w": conv_w(ks[6], 96, 96, 3, 3), "a1_b": vec(ks[7], 96),
        "a2_w": conv_w(ks[8], 96, 96, 1, 1), "a2_b": vec(ks[9], 96),
        "a3_w": conv_w(ks[10], 10, 96, 1, 1), "a3_b": vec(ks[11], 10),
        # HyperNet: Linear(1, 230496) + two 1x1 convs
        "hyper_lin_w": 0.01 * jax.random.normal(ks[12], (230496, 1), jnp.float32),
        "hyper_lin_b": 0.001 * jax.random.normal(ks[13], (230496,), jnp.float32),
        "h1_w": conv_w(ks[14], 96, 96, 1, 1), "h1_b": vec(ks[15], 96),
        "h2_w": conv_w(ks[16], 96, 96, 1, 1), "h2_b": vec(ks[17], 96),
        # stand-in for EmbeddingBinarySelectionLayer(96)
        "sel_w": 0.1 * jax.random.normal(ks[18], (96, 2), jnp.float32),
        "sel_b": 0.01 * jax.random.normal(ks[19], (2,), jnp.float32),
    }


# ----------------------------------------------------------------------------
# Model forward (eval-mode semantics)
# ----------------------------------------------------------------------------
def hyper_forward(params, x, h_in):
    """HyperNet eval path for a (possibly doubled) group/batch axis G."""
    # eval path: h_in = (h_in > 1e-4) * INITIAL_SIGMA + h_in / SCALE_FACTOR
    h = (h_in > 1e-4).astype(jnp.float32) * INITIAL_SIGMA + h_in / SCALE_FACTOR
    # Linear(1, 230496): tiny outer product -> per-sample generated weights.
    tot = h @ params["hyper_lin_w"].T + params["hyper_lin_b"][None, :]
    G = x.shape[0]
    w_dyn = tot[:, :230400].reshape(G, 96, 96, 5, 5)
    b_dyn = tot[:, 230400:]
    y = dynamic_conv5x5(x, w_dyn, b_dyn, relu=True)            # conv + ReLU
    y = conv1x1_pair(y, params["h1_w"], params["h1_b"],        # 1x1+ReLU, 1x1+ReLU
                     params["h2_w"], params["h2_b"], relu1=True, relu2=True)
    y = pool2d(y, op="avg")                                    # AvgPool 3/2/1
    # Dropout(0.5) is identity in eval mode.
    return y


def shared_net_forward(params, x_nchw, binarize=False):
    x = jnp.transpose(x_nchw, (0, 2, 3, 1)).astype(jnp.float32)   # NCHW -> NHWC
    x = conv2d(x, params["b1_w"], params["b1_b"], padding=2, relu=True)
    x = conv1x1_pair(x, params["b2_w"], params["b2_b"],           # fused b2 -> b3
                     params["b3_w"], params["b3_b"], relu1=True, relu2=True)
    x = pool2d(x, op="max")
    # Dropout(0.5) identity in eval mode.

    # TODO(synk): EmbeddingBinarySelectionLayer source was not provided; using a
    # deterministic stand-in: global-avg-pool -> Linear(96, 2) -> softmax for
    # sigmas_r, hard threshold of column 1 for the binary gate sigmas_b.
    gap = jnp.mean(x, axis=(1, 2))                       # (B, 96)
    logits = gap @ params["sel_w"] + params["sel_b"]     # (B, 2)
    sigmas_r = jax.nn.softmax(logits, axis=-1)
    sigmas_b_r = sigmas_r[:, 1]
    sigmas_b = (sigmas_b_r > 0.5).astype(jnp.float32)

    # eval path of SharedNet.forward (binary=True branch in HyperNet).
    # Both hyper branches fused into one pass with group axis G = 2B.
    B = x.shape[0]
    gates = jnp.concatenate([1.0 - sigmas_b, sigmas_b], axis=0)[:, None]   # (2B, 1)
    x2 = jnp.concatenate([x, x], axis=0)                                   # (2B,...)
    y = hyper_forward(params, x2, gates)
    x = y[:B] + y[B:]

    x = conv2d(x, params["a1_w"], params["a1_b"], padding=1, relu=True)
    x = conv1x1_pair(x, params["a2_w"], params["a2_b"],           # fused a2 -> a3
                     params["a3_w"], params["a3_b"], relu1=True, relu2=False)
    x = jnp.transpose(x, (0, 3, 1, 2))                   # NHWC -> NCHW
    return x, sigmas_b, sigmas_r, sigmas_b_r


if __name__ == "__main__":
    key = jax.random.PRNGKey(0)
    pkey, xkey = jax.random.split(key)
    params = init_params(pkey, input_channels=3)
    x = jax.random.normal(xkey, (2, 3, 16, 16), jnp.float32)  # NCHW like PyTorch

    fwd = jax.jit(functools.partial(shared_net_forward, params))
    out, sigmas_b, sigmas_r, sigmas_b_r = fwd(x)
    jax.block_until_ready(out)

    assert out.shape == (2, 10, 4, 4), out.shape
    assert sigmas_r.shape == (2, 2) and sigmas_b.shape == (2,)
    assert bool(jnp.isfinite(out).all())
    print("KERNEL_OK")
</pallas_src>

<mosaic_0001>
module attributes {stable_mosaic.version = 11 : i64} {
  func.func @_mm_bias_kernel(%arg0: i32, %arg1: i32, %arg2: memref<1x256x75xbf16, #tpu.memory_space<vmem>>, %arg3: memref<1x75x192xbf16, #tpu.memory_space<vmem>>, %arg4: memref<1x1x192xf32, #tpu.memory_space<vmem>>, %arg5: memref<1x256x192xf32, #tpu.memory_space<vmem>>) attributes {dimension_semantics = [#tpu.dimension_semantics<parallel>, #tpu.dimension_semantics<parallel>], iteration_bounds = array<i64: 1, 2>, scalar_prefetch = 0 : i64, scratch_operands = 0 : i64, tpu.core_type = #tpu.core_type<tc>, window_params = [{transform_indices = @transform_0, window_bounds = array<i64: 1, 256, 75>}, {transform_indices = @transform_1, window_bounds = array<i64: 1, 75, 192>}, {transform_indices = @transform_2, window_bounds = array<i64: 1, 1, 192>}, {transform_indices = @transform_3, window_bounds = array<i64: 1, 256, 192>}]} {
    %c0 = arith.constant 0 : index
    %c0_0 = arith.constant 0 : index
    %c0_1 = arith.constant 0 : index
    %0 = vector.load %arg2[%c0, %c0_0, %c0_1] : memref<1x256x75xbf16, #tpu.memory_space<vmem>>, vector<1x256x75xbf16>
    %1 = vector.shape_cast %0 : vector<1x256x75xbf16> to vector<256x75xbf16>
    %c0_2 = arith.constant 0 : index
    %c0_3 = arith.constant 0 : index
    %c0_4 = arith.constant 0 : index
    %2 = vector.load %arg3[%c0_2, %c0_3, %c0_4] : memref<1x75x192xbf16, #tpu.memory_space<vmem>>, vector<1x75x192xbf16>
    %3 = vector.shape_cast %2 : vector<1x75x192xbf16> to vector<75x192xbf16>
    %cst = arith.constant dense<0.000000e+00> : vector<256x192xf32>
    %4 = tpu.matmul %1, %3, %cst {dimension_numbers = #tpu.dot_dimension_numbers<[1], [0], [0], [1], [0, 0, 1, 1], [], []>} : vector<256x75xbf16>, vector<75x192xbf16>, vector<256x192xf32> -> vector<256x192xf32>
    %c0_5 = arith.constant 0 : index
    %c0_6 = arith.constant 0 : index
    %c0_7 = arith.constant 0 : index
    %5 = vector.load %arg4[%c0_5, %c0_6, %c0_7] : memref<1x1x192xf32, #tpu.memory_space<vmem>>, vector<1x1x192xf32>
    %6 = vector.shape_cast %5 : vector<1x1x192xf32> to vector<1x192xf32>
    %7 = vector.broadcast %6 : vector<1x192xf32> to vector<256x192xf32>
    %8 = arith.addf %4, %7 : vector<256x192xf32>
    %cst_8 = arith.constant 0.000000e+00 : f32
    %9 = vector.broadcast %cst_8 : f32 to vector<256x192xf32>
    %10 = arith.maximumf %8, %9 : vector<256x192xf32>
    %c0_9 = arith.constant 0 : index
    %c0_10 = arith.constant 0 : index
    %c0_11 = arith.constant 0 : index
    %11 = vector.load %arg5[%c0_9, %c0_10, %c0_11] : memref<1x256x192xf32, #tpu.memory_space<vmem>>, vector<1x256x192xf32>
    %12 = vector.shape_cast %11 : vector<1x256x192xf32> to vector<256x192xf32>
    %13 = vector.shape_cast %10 : vector<256x192xf32> to vector<1x256x192xf32>
    tpu.vector_store %arg5[%c0_9, %c0_10, %c0_11], %13 {strides = array<i32>} : memref<1x256x192xf32, #tpu.memory_space<vmem>>, vector<1x256x192xf32>,
    return
  }
  func.func @transform_0(%arg0: i32, %arg1: i32) -> (i32, i32, i32) {
    %c0_i32 = arith.constant 0 : i32
    %c0_i32_0 = arith.constant 0 : i32
    return %arg0, %arg1, %c0_i32 : i32, i32, i32
  }
  func.func @transform_1(%arg0: i32, %arg1: i32) -> (i32, i32, i32) {
    %c0_i32 = arith.constant 0 : i32
    %c0_i32_0 = arith.constant 0 : i32
    %c0_i32_1 = arith.constant 0 : i32
    return %arg0, %c0_i32, %c0_i32_0 : i32, i32, i32
  }
  func.func @transform_2(%arg0: i32, %arg1: i32) -> (i32, i32, i32) {
    %c0_i32 = arith.constant 0 : i32
    %c0_i32_0 = arith.constant 0 : i32
    %c0_i32_1 = arith.constant 0 : i32
    return %arg0, %c0_i32, %c0_i32_0 : i32, i32, i32
  }
  func.func @transform_3(%arg0: i32, %arg1: i32) -> (i32, i32, i32) {
    %c0_i32 = arith.constant 0 : i32
    %c0_i32_0 = arith.constant 0 : i32
    return %arg0, %arg1, %c0_i32 : i32, i32, i32
  }
}

module attributes {stable_mosaic.version = 11 : i64} {
  func.func @_dual_mm_kernel(%arg0: i32, %arg1: memref<256x192xbf16, #tpu.memory_space<vmem>>, %arg2: memref<192x160xbf16, #tpu.memory_space<vmem>>, %arg3: memref<1x160xf32, #tpu.memory_space<vmem>>, %arg4: memref<160x96xbf16, #tpu.memory_space<vmem>>, %arg5: memref<1x96xf32, #tpu.memory_space<vmem>>, %arg6: memref<256x96xf32, #tpu.memory_space<vmem>>) attributes {dimension_semantics = [#tpu.dimension_semantics<parallel>], iteration_bounds = array<i64: 2>, scalar_prefetch = 0 : i64, scratch_operands = 0 : i64, tpu.core_type = #tpu.core_type<tc>, window_params = [{transform_indices = @transform_0, window_bounds = array<i64: 256, 192>}, {pipeline_mode = #tpu.pipeline_mode<synchronous>, transform_indices = @transform_1, window_bounds = array<i64: 192, 160>}, {pipeline_mode = #tpu.pipeline_mode<synchronous>, transform_indices = @transform_2, window_bounds = array<i64: 1, 160>}, {pipeline_mode = #tpu.pipeline_mode<synchronous>, transform_indices = @transform_3, window_bounds = array<i64: 160, 96>}, {pipeline_mode = #tpu.pipeline_mode<synchronous>, transform_indices = @transform_4, window_bounds = array<i64: 1, 96>}, {transform_indices = @transform_5, window_bounds = array<i64: 256, 96>}]} {
    %c0 = arith.constant 0 : index
    %c0_0 = arith.constant 0 : index
    %0 = vector.load %arg1[%c0, %c0_0] : memref<256x192xbf16, #tpu.memory_space<vmem>>, vector<256x192xbf16>
    %c0_1 = arith.constant 0 : index
    %c0_2 = arith.constant 0 : index
    %1 = vector.load %arg2[%c0_1, %c0_2] : memref<192x160xbf16, #tpu.memory_space<vmem>>, vector<192x160xbf16>
    %cst = arith.constant dense<0.000000e+00> : vector<256x160xf32>
    %2 = tpu.matmul %0, %1, %cst {dimension_numbers = #tpu.dot_dimension_numbers<[1], [0], [0], [1], [0, 0, 1, 1], [], []>} : vector<256x192xbf16>, vector<192x160xbf16>, vector<256x160xf32> -> vector<256x160xf32>
    %c0_3 = arith.constant 0 : index
    %c0_4 = arith.constant 0 : index
    %3 = vector.load %arg3[%c0_3, %c0_4] : memref<1x160xf32, #tpu.memory_space<vmem>>, vector<1x160xf32>
    %4 = vector.broadcast %3 : vector<1x160xf32> to vector<256x160xf32>
    %5 = arith.addf %2, %4 : vector<256x160xf32>
    %cst_5 = arith.constant 0.000000e+00 : f32
    %6 = vector.broadcast %cst_5 : f32 to vector<256x160xf32>
    %7 = arith.maximumf %5, %6 : vector<256x160xf32>
    %8 = arith.truncf %7 : vector<256x160xf32> to vector<256x160xbf16>
    %c0_6 = arith.constant 0 : index
    %c0_7 = arith.constant 0 : index
    %9 = vector.load %arg4[%c0_6, %c0_7] : memref<160x96xbf16, #tpu.memory_space<vmem>>, vector<160x96xbf16>
    %cst_8 = arith.constant dense<0.000000e+00> : vector<256x96xf32>
    %10 = tpu.matmul %8, %9, %cst_8 {dimension_numbers = #tpu.dot_dimension_numbers<[1], [0], [0], [1], [0, 0, 1, 1], [], []>} : vector<256x160xbf16>, vector<160x96xbf16>, vector<256x96xf32> -> vector<256x96xf32>
    %c0_9 = arith.constant 0 : index
    %c0_10 = arith.constant 0 : index
    %11 = vector.load %arg5[%c0_9, %c0_10] : memref<1x96xf32, #tpu.memory_space<vmem>>, vector<1x96xf32>
    %12 = vector.broadcast %11 : vector<1x96xf32> to vector<256x96xf32>
    %13 = arith.addf %10, %12 : vector<256x96xf32>
    %cst_11 = arith.constant 0.000000e+00 : f32
    %14 = vector.broadcast %cst_11 : f32 to vector<256x96xf32>
    %15 = arith.maximumf %13, %14 : vector<256x96xf32>
    %c0_12 = arith.constant 0 : index
    %c0_13 = arith.constant 0 : index
    %16 = vector.load %arg6[%c0_12, %c0_13] : memref<256x96xf32, #tpu.memory_space<vmem>>, vector<256x96xf32>
    tpu.vector_store %arg6[%c0_12, %c0_13], %15 {strides = array<i32>} : memref<256x96xf32, #tpu.memory_space<vmem>>, vector<256x96xf32>,
    return
  }
  func.func @transform_0(%arg0: i32) -> (i32, i32) {
    %c0_i32 = arith.constant 0 : i32
    %c0_i32_0 = arith.constant 0 : i32
    return %arg0, %c0_i32 : i32, i32
  }
  func.func @transform_1(%arg0: i32) -> (i32, i32) {
    %c0_i32 = arith.constant 0 : i32
    %c0_i32_0 = arith.constant 0 : i32
    %c0_i32_1 = arith.constant 0 : i32
    return %c0_i32, %c0_i32_0 : i32, i32
  }
  func.func @transform_2(%arg0: i32) -> (i32, i32) {
    %c0_i32 = arith.constant 0 : i32
    %c0_i32_0 = arith.constant 0 : i32
    %c0_i32_1 = arith.constant 0 : i32
    return %c0_i32, %c0_i32_0 : i32, i32
  }
  func.func @transform_3(%arg0: i32) -> (i32, i32) {
    %c0_i32 = arith.constant 0 : i32
    %c0_i32_0 = arith.constant 0 : i32
    %c0_i32_1 = arith.constant 0 : i32
    return %c0_i32, %c0_i32_0 : i32, i32
  }
  func.func @transform_4(%arg0: i32) -> (i32, i32) {
    %c0_i32 = arith.constant 0 : i32
    %c0_i32_0 = arith.constant 0 : i32
    %c0_i32_1 = arith.constant 0 : i32
    return %c0_i32, %c0_i32_0 : i32, i32
  }
  func.func @transform_5(%arg0: i32) -> (i32, i32) {
    %c0_i32 = arith.constant 0 : i32
    %c0_i32_0 = arith.constant 0 : i32
    return %arg0, %c0_i32 : i32, i32
  }
}

module attributes {stable_mosaic.version = 11 : i64} {
  func.func @_pool_kernel(%arg0: i32, %arg1: memref<1x9x8x96xf32, #tpu.memory_space<vmem>>, %arg2: memref<1x9x8x96xf32, #tpu.memory_space<vmem>>, %arg3: memref<1x9x8x96xf32, #tpu.memory_space<vmem>>, %arg4: memref<1x9x8x96xf32, #tpu.memory_space<vmem>>, %arg5: memref<1x9x8x96xf32, #tpu.memory_space<vmem>>, %arg6: memref<1x9x8x96xf32, #tpu.memory_space<vmem>>, %arg7: memref<1x8x8x96xf32, #tpu.memory_space<vmem>>) attributes {dimension_semantics = [#tpu.dimension_semantics<parallel>], iteration_bounds = array<i64: 2>, scalar_prefetch = 0 : i64, scratch_operands = 0 : i64, tpu.core_type = #tpu.core_type<tc>, window_params = [{transform_indices = @transform_0, window_bounds = array<i64: 1, 9, 8, 96>}, {transform_indices = @transform_1, window_bounds = array<i64: 1, 9, 8, 96>}, {transform_indices = @transform_2, window_bounds = array<i64: 1, 9, 8, 96>}, {transform_indices = @transform_3, window_bounds = array<i64: 1, 9, 8, 96>}, {transform_indices = @transform_4, window_bounds = array<i64: 1, 9, 8, 96>}, {transform_indices = @transform_5, window_bounds = array<i64: 1, 9, 8, 96>}, {transform_indices = @transform_6, window_bounds = array<i64: 1, 8, 8, 96>}]} {
    %c0 = arith.constant 0 : index
    %c0_0 = arith.constant 0 : index
    %c0_1 = arith.constant 0 : index
    %c0_2 = arith.constant 0 : index
    %0 = vector.load %arg1[%c0, %c0_0, %c0_1, %c0_2] : memref<1x9x8x96xf32, #tpu.memory_space<vmem>>, vector<1x9x8x96xf32>
    %1 = vector.shape_cast %0 : vector<1x9x8x96xf32> to vector<9x8x96xf32>
    %c0_3 = arith.constant 0 : index
    %c0_4 = arith.constant 0 : index
    %c0_5 = arith.constant 0 : index
    %c0_6 = arith.constant 0 : index
    %2 = vector.load %arg2[%c0_3, %c0_4, %c0_5, %c0_6] : memref<1x9x8x96xf32, #tpu.memory_space<vmem>>, vector<1x9x8x96xf32>
    %3 = vector.shape_cast %2 : vector<1x9x8x96xf32> to vector<9x8x96xf32>
    %4 = vector.extract_strided_slice %1 {offsets = [0, 0, 0], sizes = [8, 8, 96], strides = [1, 1, 1]} : vector<9x8x96xf32> to vector<8x8x96xf32>
    %5 = vector.extract_strided_slice %3 {offsets = [0, 0, 0], sizes = [8, 8, 96], strides = [1, 1, 1]} : vector<9x8x96xf32> to vector<8x8x96xf32>
    %6 = vector.extract_strided_slice %1 {offsets = [1, 0, 0], sizes = [8, 8, 96], strides = [1, 1, 1]} : vector<9x8x96xf32> to vector<8x8x96xf32>
    %c0_7 = arith.constant 0 : index
    %c0_8 = arith.constant 0 : index
    %c0_9 = arith.constant 0 : index
    %c0_10 = arith.constant 0 : index
    %7 = vector.load %arg3[%c0_7, %c0_8, %c0_9, %c0_10] : memref<1x9x8x96xf32, #tpu.memory_space<vmem>>, vector<1x9x8x96xf32>
    %8 = vector.shape_cast %7 : vector<1x9x8x96xf32> to vector<9x8x96xf32>
    %c0_11 = arith.constant 0 : index
    %c0_12 = arith.constant 0 : index
    %c0_13 = arith.constant 0 : index
    %c0_14 = arith.constant 0 : index
    %9 = vector.load %arg4[%c0_11, %c0_12, %c0_13, %c0_14] : memref<1x9x8x96xf32, #tpu.memory_space<vmem>>, vector<1x9x8x96xf32>
    %10 = vector.shape_cast %9 : vector<1x9x8x96xf32> to vector<9x8x96xf32>
    %11 = vector.extract_strided_slice %8 {offsets = [0, 0, 0], sizes = [8, 8, 96], strides = [1, 1, 1]} : vector<9x8x96xf32> to vector<8x8x96xf32>
    %12 = vector.extract_strided_slice %10 {offsets = [0, 0, 0], sizes = [8, 8, 96], strides = [1, 1, 1]} : vector<9x8x96xf32> to vector<8x8x96xf32>
    %13 = vector.extract_strided_slice %8 {offsets = [1, 0, 0], sizes = [8, 8, 96], strides = [1, 1, 1]} : vector<9x8x96xf32> to vector<8x8x96xf32>
    %c0_15 = arith.constant 0 : index
    %c0_16 = arith.constant 0 : index
    %c0_17 = arith.constant 0 : index
    %c0_18 = arith.constant 0 : index
    %14 = vector.load %arg5[%c0_15, %c0_16, %c0_17, %c0_18] : memref<1x9x8x96xf32, #tpu.memory_space<vmem>>, vector<1x9x8x96xf32>
    %15 = vector.shape_cast %14 : vector<1x9x8x96xf32> to vector<9x8x96xf32>
    %c0_19 = arith.constant 0 : index
    %c0_20 = arith.constant 0 : index
    %c0_21 = arith.constant 0 : index
    %c0_22 = arith.constant 0 : index
    %16 = vector.load %arg6[%c0_19, %c0_20, %c0_21, %c0_22] : memref<1x9x8x96xf32, #tpu.memory_space<vmem>>, vector<1x9x8x96xf32>
    %17 = vector.shape_cast %16 : vector<1x9x8x96xf32> to vector<9x8x96xf32>
    %18 = vector.extract_strided_slice %15 {offsets = [0, 0, 0], sizes = [8, 8, 96], strides = [1, 1, 1]} : vector<9x8x96xf32> to vector<8x8x96xf32>
    %19 = vector.extract_strided_slice %17 {offsets = [0, 0, 0], sizes = [8, 8, 96], strides = [1, 1, 1]} : vector<9x8x96xf32> to vector<8x8x96xf32>
    %20 = vector.extract_strided_slice %15 {offsets = [1, 0, 0], sizes = [8, 8, 96], strides = [1, 1, 1]} : vector<9x8x96xf32> to vector<8x8x96xf32>
    %21 = arith.maximumf %4, %5 : vector<8x8x96xf32>
    %22 = arith.maximumf %21, %6 : vector<8x8x96xf32>
    %23 = arith.maximumf %22, %11 : vector<8x8x96xf32>
    %24 = arith.maximumf %23, %12 : vector<8x8x96xf32>
    %25 = arith.maximumf %24, %13 : vector<8x8x96xf32>
    %26 = arith.maximumf %25, %18 : vector<8x8x96xf32>
    %27 = arith.maximumf %26, %19 : vector<8x8x96xf32>
    %28 = arith.maximumf %27, %20 : vector<8x8x96xf32>
    %c0_23 = arith.constant 0 : index
    %c0_24 = arith.constant 0 : index
    %c0_25 = arith.constant 0 : index
    %c0_26 = arith.constant 0 : index
    %29 = vector.load %arg7[%c0_23, %c0_24, %c0_25, %c0_26] : memref<1x8x8x96xf32, #tpu.memory_space<vmem>>, vector<1x8x8x96xf32>
    %30 = vector.shape_cast %29 : vector<1x8x8x96xf32> to vector<8x8x96xf32>
    %31 = vector.shape_cast %28 : vector<8x8x96xf32> to vector<1x8x8x96xf32>
    tpu.vector_store %arg7[%c0_23, %c0_24, %c0_25, %c0_26], %31 {strides = array<i32>} : memref<1x8x8x96xf32, #tpu.memory_space<vmem>>, vector<1x8x8x96xf32>,
    return
  }
  func.func @transform_0(%arg0: i32) -> (i32, i32, i32, i32) {
    %c0_i32 = arith.constant 0 : i32
    %c0_i32_0 = arith.constant 0 : i32
    %c0_i32_1 = arith.constant 0 : i32
    %c0_i32_2 = arith.constant 0 : i32
    return %arg0, %c0_i32, %c0_i32_0, %c0_i32_1 : i32, i32, i32, i32
  }
  func.func @transform_1(%arg0: i32) -> (i32, i32, i32, i32) {
    %c0_i32 = arith.constant 0 : i32
    %c0_i32_0 = arith.constant 0 : i32
    %c0_i32_1 = arith.constant 0 : i32
    %c0_i32_2 = arith.constant 0 : i32
    return %arg0, %c0_i32, %c0_i32_0, %c0_i32_1 : i32, i32, i32, i32
  }
  func.func @transform_2(%arg0: i32) -> (i32, i32, i32, i32) {
    %c0_i32 = arith.constant 0 : i32
    %c0_i32_0 = arith.constant 0 : i32
    %c0_i32_1 = arith.constant 0 : i32
    %c0_i32_2 = arith.constant 0 : i32
    return %arg0, %c0_i32, %c0_i32_0, %c0_i32_1 : i32, i32, i32, i32
  }
  func.func @transform_3(%arg0: i32) -> (i32, i32, i32, i32) {
    %c0_i32 = arith.constant 0 : i32
    %c0_i32_0 = arith.constant 0 : i32
    %c0_i32_1 = arith.constant 0 : i32
    %c0_i32_2 = arith.constant 0 : i32
    return %arg0, %c0_i32, %c0_i32_0, %c0_i32_1 : i32, i32, i32, i32
  }
  func.func @transform_4(%arg0: i32) -> (i32, i32, i32, i32) {
    %c0_i32 = arith.constant 0 : i32
    %c0_i32_0 = arith.constant 0 : i32
    %c0_i32_1 = arith.constant 0 : i32
    %c0_i32_2 = arith.constant 0 : i32
    return %arg0, %c0_i32, %c0_i32_0, %c0_i32_1 : i32, i32, i32, i32
  }
  func.func @transform_5(%arg0: i32) -> (i32, i32, i32, i32) {
    %c0_i32 = arith.constant 0 : i32
    %c0_i32_0 = arith.constant 0 : i32
    %c0_i32_1 = arith.constant 0 : i32
    %c0_i32_2 = arith.constant 0 : i32
    return %arg0, %c0_i32, %c0_i32_0, %c0_i32_1 : i32, i32, i32, i32
  }
  func.func @transform_6(%arg0: i32) -> (i32, i32, i32, i32) {
    %c0_i32 = arith.constant 0 : i32
    %c0_i32_0 = arith.constant 0 : i32
    %c0_i32_1 = arith.constant 0 : i32
    %c0_i32_2 = arith.constant 0 : i32
    return %arg0, %c0_i32, %c0_i32_0, %c0_i32_1 : i32, i32, i32, i32
  }
}

module attributes {stable_mosaic.version = 11 : i64} {
  func.func @_mm_bias_kernel(%arg0: i32, %arg1: i32, %arg2: memref<1x64x2400xbf16, #tpu.memory_space<vmem>>, %arg3: memref<1x2400x96xbf16, #tpu.memory_space<vmem>>, %arg4: memref<1x1x96xf32, #tpu.memory_space<vmem>>, %arg5: memref<1x64x96xf32, #tpu.memory_space<vmem>>) attributes {dimension_semantics = [#tpu.dimension_semantics<parallel>, #tpu.dimension_semantics<parallel>], iteration_bounds = array<i64: 4, 1>, scalar_prefetch = 0 : i64, scratch_operands = 0 : i64, tpu.core_type = #tpu.core_type<tc>, window_params = [{transform_indices = @transform_0, window_bounds = array<i64: 1, 64, 2400>}, {transform_indices = @transform_1, window_bounds = array<i64: 1, 2400, 96>}, {transform_indices = @transform_2, window_bounds = array<i64: 1, 1, 96>}, {transform_indices = @transform_3, window_bounds = array<i64: 1, 64, 96>}]} {
    %c0 = arith.constant 0 : index
    %c0_0 = arith.constant 0 : index
    %c0_1 = arith.constant 0 : index
    %0 = vector.load %arg2[%c0, %c0_0, %c0_1] : memref<1x64x2400xbf16, #tpu.memory_space<vmem>>, vector<1x64x2400xbf16>
    %1 = vector.shape_cast %0 : vector<1x64x2400xbf16> to vector<64x2400xbf16>
    %c0_2 = arith.constant 0 : index
    %c0_3 = arith.constant 0 : index
    %c0_4 = arith.constant 0 : index
    %2 = vector.load %arg3[%c0_2, %c0_3, %c0_4] : memref<1x2400x96xbf16, #tpu.memory_space<vmem>>, vector<1x2400x96xbf16>
    %3 = vector.shape_cast %2 : vector<1x2400x96xbf16> to vector<2400x96xbf16>
    %cst = arith.constant dense<0.000000e+00> : vector<64x96xf32>
    %4 = tpu.matmul %1, %3, %cst {dimension_numbers = #tpu.dot_dimension_numbers<[1], [0], [0], [1], [0, 0, 1, 1], [], []>} : vector<64x2400xbf16>, vector<2400x96xbf16>, vector<64x96xf32> -> vector<64x96xf32>
    %c0_5 = arith.constant 0 : index
    %c0_6 = arith.constant 0 : index
    %c0_7 = arith.constant 0 : index
    %5 = vector.load %arg4[%c0_5, %c0_6, %c0_7] : memref<1x1x96xf32, #tpu.memory_space<vmem>>, vector<1x1x96xf32>
    %6 = vector.shape_cast %5 : vector<1x1x96xf32> to vector<1x96xf32>
    %7 = vector.broadcast %6 : vector<1x96xf32> to vector<64x96xf32>
    %8 = arith.addf %4, %7 : vector<64x96xf32>
    %cst_8 = arith.constant 0.000000e+00 : f32
    %9 = vector.broadcast %cst_8 : f32 to vector<64x96xf32>
    %10 = arith.maximumf %8, %9 : vector<64x96xf32>
    %c0_9 = arith.constant 0 : index
    %c0_10 = arith.constant 0 : index
    %c0_11 = arith.constant 0 : index
    %11 = vector.load %arg5[%c0_9, %c0_10, %c0_11] : memref<1x64x96xf32, #tpu.memory_space<vmem>>, vector<1x64x96xf32>
    %12 = vector.shape_cast %11 : vector<1x64x96xf32> to vector<64x96xf32>
    %13 = vector.shape_cast %10 : vector<64x96xf32> to vector<1x64x96xf32>
    tpu.vector_store %arg5[%c0_9, %c0_10, %c0_11], %13 {strides = array<i32>} : memref<1x64x96xf32, #tpu.memory_space<vmem>>, vector<1x64x96xf32>,
    return
  }
  func.func @transform_0(%arg0: i32, %arg1: i32) -> (i32, i32, i32) {
    %c0_i32 = arith.constant 0 : i32
    %c0_i32_0 = arith.constant 0 : i32
    return %arg0, %arg1, %c0_i32 : i32, i32, i32
  }
  func.func @transform_1(%arg0: i32, %arg1: i32) -> (i32, i32, i32) {
    %c0_i32 = arith.constant 0 : i32
    %c0_i32_0 = arith.constant 0 : i32
    %c0_i32_1 = arith.constant 0 : i32
    return %arg0, %c0_i32, %c0_i32_0 : i32, i32, i32
  }
  func.func @transform_2(%arg0: i32, %arg1: i32) -> (i32, i32, i32) {
    %c0_i32 = arith.constant 0 : i32
    %c0_i32_0 = arith.constant 0 : i32
    %c0_i32_1 = arith.constant 0 : i32
    return %arg0, %c0_i32, %c0_i32_0 : i32, i32, i32
  }
  func.func @transform_3(%arg0: i32, %arg1: i32) -> (i32, i32, i32) {
    %c0_i32 = arith.constant 0 : i32
    %c0_i32_0 = arith.constant 0 : i32
    return %arg0, %arg1, %c0_i32 : i32, i32, i32
  }
}

module attributes {stable_mosaic.version = 11 : i64} {
  func.func @_dual_mm_kernel(%arg0: i32, %arg1: memref<256x96xbf16, #tpu.memory_space<vmem>>, %arg2: memref<96x96xbf16, #tpu.memory_space<vmem>>, %arg3: memref<1x96xf32, #tpu.memory_space<vmem>>, %arg4: memref<96x96xbf16, #tpu.memory_space<vmem>>, %arg5: memref<1x96xf32, #tpu.memory_space<vmem>>, %arg6: memref<256x96xf32, #tpu.memory_space<vmem>>) attributes {dimension_semantics = [#tpu.dimension_semantics<parallel>], iteration_bounds = array<i64: 1>, scalar_prefetch = 0 : i64, scratch_operands = 0 : i64, tpu.core_type = #tpu.core_type<tc>, window_params = [{transform_indices = @transform_0, window_bounds = array<i64: 256, 96>}, {pipeline_mode = #tpu.pipeline_mode<synchronous>, transform_indices = @transform_1, window_bounds = array<i64: 96, 96>}, {pipeline_mode = #tpu.pipeline_mode<synchronous>, transform_indices = @transform_2, window_bounds = array<i64: 1, 96>}, {pipeline_mode = #tpu.pipeline_mode<synchronous>, transform_indices = @transform_3, window_bounds = array<i64: 96, 96>}, {pipeline_mode = #tpu.pipeline_mode<synchronous>, transform_indices = @transform_4, window_bounds = array<i64: 1, 96>}, {transform_indices = @transform_5, window_bounds = array<i64: 256, 96>}]} {
    %c0 = arith.constant 0 : index
    %c0_0 = arith.constant 0 : index
    %0 = vector.load %arg1[%c0, %c0_0] : memref<256x96xbf16, #tpu.memory_space<vmem>>, vector<256x96xbf16>
    %c0_1 = arith.constant 0 : index
    %c0_2 = arith.constant 0 : index
    %1 = vector.load %arg2[%c0_1, %c0_2] : memref<96x96xbf16, #tpu.memory_space<vmem>>, vector<96x96xbf16>
    %cst = arith.constant dense<0.000000e+00> : vector<256x96xf32>
    %2 = tpu.matmul %0, %1, %cst {dimension_numbers = #tpu.dot_dimension_numbers<[1], [0], [0], [1], [0, 0, 1, 1], [], []>} : vector<256x96xbf16>, vector<96x96xbf16>, vector<256x96xf32> -> vector<256x96xf32>
    %c0_3 = arith.constant 0 : index
    %c0_4 = arith.constant 0 : index
    %3 = vector.load %arg3[%c0_3, %c0_4] : memref<1x96xf32, #tpu.memory_space<vmem>>, vector<1x96xf32>
    %4 = vector.broadcast %3 : vector<1x96xf32> to vector<256x96xf32>
    %5 = arith.addf %2, %4 : vector<256x96xf32>
    %cst_5 = arith.constant 0.000000e+00 : f32
    %6 = vector.broadcast %cst_5 : f32 to vector<256x96xf32>
    %7 = arith.maximumf %5, %6 : vector<256x96xf32>
    %8 = arith.truncf %7 : vector<256x96xf32> to vector<256x96xbf16>
    %c0_6 = arith.constant 0 : index
    %c0_7 = arith.constant 0 : index
    %9 = vector.load %arg4[%c0_6, %c0_7] : memref<96x96xbf16, #tpu.memory_space<vmem>>, vector<96x96xbf16>
    %cst_8 = arith.constant dense<0.000000e+00> : vector<256x96xf32>
    %10 = tpu.matmul %8, %9, %cst_8 {dimension_numbers = #tpu.dot_dimension_numbers<[1], [0], [0], [1], [0, 0, 1, 1], [], []>} : vector<256x96xbf16>, vector<96x96xbf16>, vector<256x96xf32> -> vector<256x96xf32>
    %c0_9 = arith.constant 0 : index
    %c0_10 = arith.constant 0 : index
    %11 = vector.load %arg5[%c0_9, %c0_10] : memref<1x96xf32, #tpu.memory_space<vmem>>, vector<1x96xf32>
    %12 = vector.broadcast %11 : vector<1x96xf32> to vector<256x96xf32>
    %13 = arith.addf %10, %12 : vector<256x96xf32>
    %cst_11 = arith.constant 0.000000e+00 : f32
    %14 = vector.broadcast %cst_11 : f32 to vector<256x96xf32>
    %15 = arith.maximumf %13, %14 : vector<256x96xf32>
    %c0_12 = arith.constant 0 : index
    %c0_13 = arith.constant 0 : index
    %16 = vector.load %arg6[%c0_12, %c0_13] : memref<256x96xf32, #tpu.memory_space<vmem>>, vector<256x96xf32>
    tpu.vector_store %arg6[%c0_12, %c0_13], %15 {strides = array<i32>} : memref<256x96xf32, #tpu.memory_space<vmem>>, vector<256x96xf32>,
    return
  }
  func.func @transform_0(%arg0: i32) -> (i32, i32) {
    %c0_i32 = arith.constant 0 : i32
    %c0_i32_0 = arith.constant 0 : i32
    return %arg0, %c0_i32 : i32, i32
  }
  func.func @transform_1(%arg0: i32) -> (i32, i32) {
    %c0_i32 = arith.constant 0 : i32
    %c0_i32_0 = arith.constant 0 : i32
    %c0_i32_1 = arith.constant 0 : i32
    return %c0_i32, %c0_i32_0 : i32, i32
  }
  func.func @transform_2(%arg0: i32) -> (i32, i32) {
    %c0_i32 = arith.constant 0 : i32
    %c0_i32_0 = arith.constant 0 : i32
    %c0_i32_1 = arith.constant 0 : i32
    return %c0_i32, %c0_i32_0 : i32, i32
  }
  func.func @transform_3(%arg0: i32) -> (i32, i32) {
    %c0_i32 = arith.constant 0 : i32
    %c0_i32_0 = arith.constant 0 : i32
    %c0_i32_1 = arith.constant 0 : i32
    return %c0_i32, %c0_i32_0 : i32, i32
  }
  func.func @transform_4(%arg0: i32) -> (i32, i32) {
    %c0_i32 = arith.constant 0 : i32
    %c0_i32_0 = arith.constant 0 : i32
    %c0_i32_1 = arith.constant 0 : i32
    return %c0_i32, %c0_i32_0 : i32, i32
  }
  func.func @transform_5(%arg0: i32) -> (i32, i32) {
    %c0_i32 = arith.constant 0 : i32
    %c0_i32_0 = arith.constant 0 : i32
    return %arg0, %c0_i32 : i32, i32
  }
}

module attributes {stable_mosaic.version = 11 : i64} {
  func.func @_pool_kernel(%arg0: i32, %arg1: memref<1x5x4x96xf32, #tpu.memory_space<vmem>>, %arg2: memref<1x5x4x96xf32, #tpu.memory_space<vmem>>, %arg3: memref<1x5x4x96xf32, #tpu.memory_space<vmem>>, %arg4: memref<1x5x4x96xf32, #tpu.memory_space<vmem>>, %arg5: memref<1x5x4x96xf32, #tpu.memory_space<vmem>>, %arg6: memref<1x5x4x96xf32, #tpu.memory_space<vmem>>, %arg7: memref<1x4x4x96xf32, #tpu.memory_space<vmem>>) attributes {dimension_semantics = [#tpu.dimension_semantics<parallel>], iteration_bounds = array<i64: 4>, scalar_prefetch = 0 : i64, scratch_operands = 0 : i64, tpu.core_type = #tpu.core_type<tc>, window_params = [{transform_indices = @transform_0, window_bounds = array<i64: 1, 5, 4, 96>}, {transform_indices = @transform_1, window_bounds = array<i64: 1, 5, 4, 96>}, {transform_indices = @transform_2, window_bounds = array<i64: 1, 5, 4, 96>}, {transform_indices = @transform_3, window_bounds = array<i64: 1, 5, 4, 96>}, {transform_indices = @transform_4, window_bounds = array<i64: 1, 5, 4, 96>}, {transform_indices = @transform_5, window_bounds = array<i64: 1, 5, 4, 96>}, {transform_indices = @transform_6, window_bounds = array<i64: 1, 4, 4, 96>}]} {
    %c0 = arith.constant 0 : index
    %c0_0 = arith.constant 0 : index
    %c0_1 = arith.constant 0 : index
    %c0_2 = arith.constant 0 : index
    %0 = vector.load %arg1[%c0, %c0_0, %c0_1, %c0_2] : memref<1x5x4x96xf32, #tpu.memory_space<vmem>>, vector<1x5x4x96xf32>
    %1 = vector.shape_cast %0 : vector<1x5x4x96xf32> to vector<5x4x96xf32>
    %c0_3 = arith.constant 0 : index
    %c0_4 = arith.constant 0 : index
    %c0_5 = arith.constant 0 : index
    %c0_6 = arith.constant 0 : index
    %2 = vector.load %arg2[%c0_3, %c0_4, %c0_5, %c0_6] : memref<1x5x4x96xf32, #tpu.memory_space<vmem>>, vector<1x5x4x96xf32>
    %3 = vector.shape_cast %2 : vector<1x5x4x96xf32> to vector<5x4x96xf32>
    %4 = vector.extract_strided_slice %1 {offsets = [0, 0, 0], sizes = [4, 4, 96], strides = [1, 1, 1]} : vector<5x4x96xf32> to vector<4x4x96xf32>
    %5 = vector.extract_strided_slice %3 {offsets = [0, 0, 0], sizes = [4, 4, 96], strides = [1, 1, 1]} : vector<5x4x96xf32> to vector<4x4x96xf32>
    %6 = vector.extract_strided_slice %1 {offsets = [1, 0, 0], sizes = [4, 4, 96], strides = [1, 1, 1]} : vector<5x4x96xf32> to vector<4x4x96xf32>
    %c0_7 = arith.constant 0 : index
    %c0_8 = arith.constant 0 : index
    %c0_9 = arith.constant 0 : index
    %c0_10 = arith.constant 0 : index
    %7 = vector.load %arg3[%c0_7, %c0_8, %c0_9, %c0_10] : memref<1x5x4x96xf32, #tpu.memory_space<vmem>>, vector<1x5x4x96xf32>
    %8 = vector.shape_cast %7 : vector<1x5x4x96xf32> to vector<5x4x96xf32>
    %c0_11 = arith.constant 0 : index
    %c0_12 = arith.constant 0 : index
    %c0_13 = arith.constant 0 : index
    %c0_14 = arith.constant 0 : index
    %9 = vector.load %arg4[%c0_11, %c0_12, %c0_13, %c0_14] : memref<1x5x4x96xf32, #tpu.memory_space<vmem>>, vector<1x5x4x96xf32>
    %10 = vector.shape_cast %9 : vector<1x5x4x96xf32> to vector<5x4x96xf32>
    %11 = vector.extract_strided_slice %8 {offsets = [0, 0, 0], sizes = [4, 4, 96], strides = [1, 1, 1]} : vector<5x4x96xf32> to vector<4x4x96xf32>
    %12 = vector.extract_strided_slice %10 {offsets = [0, 0, 0], sizes = [4, 4, 96], strides = [1, 1, 1]} : vector<5x4x96xf32> to vector<4x4x96xf32>
    %13 = vector.extract_strided_slice %8 {offsets = [1, 0, 0], sizes = [4, 4, 96], strides = [1, 1, 1]} : vector<5x4x96xf32> to vector<4x4x96xf32>
    %c0_15 = arith.constant 0 : index
    %c0_16 = arith.constant 0 : index
    %c0_17 = arith.constant 0 : index
    %c0_18 = arith.constant 0 : index
    %14 = vector.load %arg5[%c0_15, %c0_16, %c0_17, %c0_18] : memref<1x5x4x96xf32, #tpu.memory_space<vmem>>, vector<1x5x4x96xf32>
    %15 = vector.shape_cast %14 : vector<1x5x4x96xf32> to vector<5x4x96xf32>
    %c0_19 = arith.constant 0 : index
    %c0_20 = arith.constant 0 : index
    %c0_21 = arith.constant 0 : index
    %c0_22 = arith.constant 0 : index
    %16 = vector.load %arg6[%c0_19, %c0_20, %c0_21, %c0_22] : memref<1x5x4x96xf32, #tpu.memory_space<vmem>>, vector<1x5x4x96xf32>
    %17 = vector.shape_cast %16 : vector<1x5x4x96xf32> to vector<5x4x96xf32>
    %18 = vector.extract_strided_slice %15 {offsets = [0, 0, 0], sizes = [4, 4, 96], strides = [1, 1, 1]} : vector<5x4x96xf32> to vector<4x4x96xf32>
    %19 = vector.extract_strided_slice %17 {offsets = [0, 0, 0], sizes = [4, 4, 96], strides = [1, 1, 1]} : vector<5x4x96xf32> to vector<4x4x96xf32>
    %20 = vector.extract_strided_slice %15 {offsets = [1, 0, 0], sizes = [4, 4, 96], strides = [1, 1, 1]} : vector<5x4x96xf32> to vector<4x4x96xf32>
    %21 = arith.addf %4, %5 : vector<4x4x96xf32>
    %22 = arith.addf %21, %6 : vector<4x4x96xf32>
    %23 = arith.addf %22, %11 : vector<4x4x96xf32>
    %24 = arith.addf %23, %12 : vector<4x4x96xf32>
    %25 = arith.addf %24, %13 : vector<4x4x96xf32>
    %26 = arith.addf %25, %18 : vector<4x4x96xf32>
    %27 = arith.addf %26, %19 : vector<4x4x96xf32>
    %28 = arith.addf %27, %20 : vector<4x4x96xf32>
    %cst = arith.constant 0.111111112 : f32
    %29 = vector.broadcast %cst : f32 to vector<4x4x96xf32>
    %30 = arith.mulf %28, %29 : vector<4x4x96xf32>
    %c0_23 = arith.constant 0 : index
    %c0_24 = arith.constant 0 : index
    %c0_25 = arith.constant 0 : index
    %c0_26 = arith.constant 0 : index
    %31 = vector.load %arg7[%c0_23, %c0_24, %c0_25, %c0_26] : memref<1x4x4x96xf32, #tpu.memory_space<vmem>>, vector<1x4x4x96xf32>
    %32 = vector.shape_cast %31 : vector<1x4x4x96xf32> to vector<4x4x96xf32>
    %33 = vector.shape_cast %30 : vector<4x4x96xf32> to vector<1x4x4x96xf32>
    tpu.vector_store %arg7[%c0_23, %c0_24, %c0_25, %c0_26], %33 {strides = array<i32>} : memref<1x4x4x96xf32, #tpu.memory_space<vmem>>, vector<1x4x4x96xf32>,
    return
  }
  func.func @transform_0(%arg0: i32) -> (i32, i32, i32, i32) {
    %c0_i32 = arith.constant 0 : i32
    %c0_i32_0 = arith.constant 0 : i32
    %c0_i32_1 = arith.constant 0 : i32
    %c0_i32_2 = arith.constant 0 : i32
    return %arg0, %c0_i32, %c0_i32_0, %c0_i32_1 : i32, i32, i32, i32
  }
  func.func @transform_1(%arg0: i32) -> (i32, i32, i32, i32) {
    %c0_i32 = arith.constant 0 : i32
    %c0_i32_0 = arith.constant 0 : i32
    %c0_i32_1 = arith.constant 0 : i32
    %c0_i32_2 = arith.constant 0 : i32
    return %arg0, %c0_i32, %c0_i32_0, %c0_i32_1 : i32, i32, i32, i32
  }
  func.func @transform_2(%arg0: i32) -> (i32, i32, i32, i32) {
    %c0_i32 = arith.constant 0 : i32
    %c0_i32_0 = arith.constant 0 : i32
    %c0_i32_1 = arith.constant 0 : i32
    %c0_i32_2 = arith.constant 0 : i32
    return %arg0, %c0_i32, %c0_i32_0, %c0_i32_1 : i32, i32, i32, i32
  }
  func.func @transform_3(%arg0: i32) -> (i32, i32, i32, i32) {
    %c0_i32 = arith.constant 0 : i32
    %c0_i32_0 = arith.constant 0 : i32
    %c0_i32_1 = arith.constant 0 : i32
    %c0_i32_2 = arith.constant 0 : i32
    return %arg0, %c0_i32, %c0_i32_0, %c0_i32_1 : i32, i32, i32, i32
  }
  func.func @transform_4(%arg0: i32) -> (i32, i32, i32, i32) {
    %c0_i32 = arith.constant 0 : i32
    %c0_i32_0 = arith.constant 0 : i32
    %c0_i32_1 = arith.constant 0 : i32
    %c0_i32_2 = arith.constant 0 : i32
    return %arg0, %c0_i32, %c0_i32_0, %c0_i32_1 : i32, i32, i32, i32
  }
  func.func @transform_5(%arg0: i32) -> (i32, i32, i32, i32) {
    %c0_i32 = arith.constant 0 : i32
    %c0_i32_0 = arith.constant 0 : i32
    %c0_i32_1 = arith.constant 0 : i32
    %c0_i32_2 = arith.constant 0 : i32
    return %arg0, %c0_i32, %c0_i32_0, %c0_i32_1 : i32, i32, i32, i32
  }
  func.func @transform_6(%arg0: i32) -> (i32, i32, i32, i32) {
    %c0_i32 = arith.constant 0 : i32
    %c0_i32_0 = arith.constant 0 : i32
    %c0_i32_1 = arith.constant 0 : i32
    %c0_i32_2 = arith.constant 0 : i32
    return %arg0, %c0_i32, %c0_i32_0, %c0_i32_1 : i32, i32, i32, i32
  }
}

module attributes {stable_mosaic.version = 11 : i64} {
  func.func @_mm_bias_kernel(%arg0: i32, %arg1: i32, %arg2: memref<1x32x864xbf16, #tpu.memory_space<vmem>>, %arg3: memref<1x864x96xbf16, #tpu.memory_space<vmem>>, %arg4: memref<1x1x96xf32, #tpu.memory_space<vmem>>, %arg5: memref<1x32x96xf32, #tpu.memory_space<vmem>>) attributes {dimension_semantics = [#tpu.dimension_semantics<parallel>, #tpu.dimension_semantics<parallel>], iteration_bounds = array<i64: 1, 1>, scalar_prefetch = 0 : i64, scratch_operands = 0 : i64, tpu.core_type = #tpu.core_type<tc>, window_params = [{transform_indices = @transform_0, window_bounds = array<i64: 1, 32, 864>}, {transform_indices = @transform_1, window_bounds = array<i64: 1, 864, 96>}, {transform_indices = @transform_2, window_bounds = array<i64: 1, 1, 96>}, {transform_indices = @transform_3, window_bounds = array<i64: 1, 32, 96>}]} {
    %c0 = arith.constant 0 : index
    %c0_0 = arith.constant 0 : index
    %c0_1 = arith.constant 0 : index
    %0 = vector.load %arg2[%c0, %c0_0, %c0_1] : memref<1x32x864xbf16, #tpu.memory_space<vmem>>, vector<1x32x864xbf16>
    %1 = vector.shape_cast %0 : vector<1x32x864xbf16> to vector<32x864xbf16>
    %c0_2 = arith.constant 0 : index
    %c0_3 = arith.constant 0 : index
    %c0_4 = arith.constant 0 : index
    %2 = vector.load %arg3[%c0_2, %c0_3, %c0_4] : memref<1x864x96xbf16, #tpu.memory_space<vmem>>, vector<1x864x96xbf16>
    %3 = vector.shape_cast %2 : vector<1x864x96xbf16> to vector<864x96xbf16>
    %cst = arith.constant dense<0.000000e+00> : vector<32x96xf32>
    %4 = tpu.matmul %1, %3, %cst {dimension_numbers = #tpu.dot_dimension_numbers<[1], [0], [0], [1], [0, 0, 1, 1], [], []>} : vector<32x864xbf16>, vector<864x96xbf16>, vector<32x96xf32> -> vector<32x96xf32>
    %c0_5 = arith.constant 0 : index
    %c0_6 = arith.constant 0 : index
    %c0_7 = arith.constant 0 : index
    %5 = vector.load %arg4[%c0_5, %c0_6, %c0_7] : memref<1x1x96xf32, #tpu.memory_space<vmem>>, vector<1x1x96xf32>
    %6 = vector.shape_cast %5 : vector<1x1x96xf32> to vector<1x96xf32>
    %7 = vector.broadcast %6 : vector<1x96xf32> to vector<32x96xf32>
    %8 = arith.addf %4, %7 : vector<32x96xf32>
    %cst_8 = arith.constant 0.000000e+00 : f32
    %9 = vector.broadcast %cst_8 : f32 to vector<32x96xf32>
    %10 = arith.maximumf %8, %9 : vector<32x96xf32>
    %c0_9 = arith.constant 0 : index
    %c0_10 = arith.constant 0 : index
    %c0_11 = arith.constant 0 : index
    %11 = vector.load %arg5[%c0_9, %c0_10, %c0_11] : memref<1x32x96xf32, #tpu.memory_space<vmem>>, vector<1x32x96xf32>
    %12 = vector.shape_cast %11 : vector<1x32x96xf32> to vector<32x96xf32>
    %13 = vector.shape_cast %10 : vector<32x96xf32> to vector<1x32x96xf32>
    tpu.vector_store %arg5[%c0_9, %c0_10, %c0_11], %13 {strides = array<i32>} : memref<1x32x96xf32, #tpu.memory_space<vmem>>, vector<1x32x96xf32>,
    return
  }
  func.func @transform_0(%arg0: i32, %arg1: i32) -> (i32, i32, i32) {
    %c0_i32 = arith.constant 0 : i32
    %c0_i32_0 = arith.constant 0 : i32
    return %arg0, %arg1, %c0_i32 : i32, i32, i32
  }
  func.func @transform_1(%arg0: i32, %arg1: i32) -> (i32, i32, i32) {
    %c0_i32 = arith.constant 0 : i32
    %c0_i32_0 = arith.constant 0 : i32
    %c0_i32_1 = arith.constant 0 : i32
    return %arg0, %c0_i32, %c0_i32_0 : i32, i32, i32
  }
  func.func @transform_2(%arg0: i32, %arg1: i32) -> (i32, i32, i32) {
    %c0_i32 = arith.constant 0 : i32
    %c0_i32_0 = arith.constant 0 : i32
    %c0_i32_1 = arith.constant 0 : i32
    return %arg0, %c0_i32, %c0_i32_0 : i32, i32, i32
  }
  func.func @transform_3(%arg0: i32, %arg1: i32) -> (i32, i32, i32) {
    %c0_i32 = arith.constant 0 : i32
    %c0_i32_0 = arith.constant 0 : i32
    return %arg0, %arg1, %c0_i32 : i32, i32, i32
  }
}

module attributes {stable_mosaic.version = 11 : i64} {
  func.func @_dual_mm_kernel(%arg0: i32, %arg1: memref<32x96xbf16, #tpu.memory_space<vmem>>, %arg2: memref<96x96xbf16, #tpu.memory_space<vmem>>, %arg3: memref<1x96xf32, #tpu.memory_space<vmem>>, %arg4: memref<96x10xbf16, #tpu.memory_space<vmem>>, %arg5: memref<1x10xf32, #tpu.memory_space<vmem>>, %arg6: memref<32x10xf32, #tpu.memory_space<vmem>>) attributes {dimension_semantics = [#tpu.dimension_semantics<parallel>], iteration_bounds = array<i64: 1>, scalar_prefetch = 0 : i64, scratch_operands = 0 : i64, tpu.core_type = #tpu.core_type<tc>, window_params = [{transform_indices = @transform_0, window_bounds = array<i64: 32, 96>}, {pipeline_mode = #tpu.pipeline_mode<synchronous>, transform_indices = @transform_1, window_bounds = array<i64: 96, 96>}, {pipeline_mode = #tpu.pipeline_mode<synchronous>, transform_indices = @transform_2, window_bounds = array<i64: 1, 96>}, {pipeline_mode = #tpu.pipeline_mode<synchronous>, transform_indices = @transform_3, window_bounds = array<i64: 96, 10>}, {pipeline_mode = #tpu.pipeline_mode<synchronous>, transform_indices = @transform_4, window_bounds = array<i64: 1, 10>}, {transform_indices = @transform_5, window_bounds = array<i64: 32, 10>}]} {
    %c0 = arith.constant 0 : index
    %c0_0 = arith.constant 0 : index
    %0 = vector.load %arg1[%c0, %c0_0] : memref<32x96xbf16, #tpu.memory_space<vmem>>, vector<32x96xbf16>
    %c0_1 = arith.constant 0 : index
    %c0_2 = arith.constant 0 : index
    %1 = vector.load %arg2[%c0_1, %c0_2] : memref<96x96xbf16, #tpu.memory_space<vmem>>, vector<96x96xbf16>
    %cst = arith.constant dense<0.000000e+00> : vector<32x96xf32>
    %2 = tpu.matmul %0, %1, %cst {dimension_numbers = #tpu.dot_dimension_numbers<[1], [0], [0], [1], [0, 0, 1, 1], [], []>} : vector<32x96xbf16>, vector<96x96xbf16>, vector<32x96xf32> -> vector<32x96xf32>
    %c0_3 = arith.constant 0 : index
    %c0_4 = arith.constant 0 : index
    %3 = vector.load %arg3[%c0_3, %c0_4] : memref<1x96xf32, #tpu.memory_space<vmem>>, vector<1x96xf32>
    %4 = vector.broadcast %3 : vector<1x96xf32> to vector<32x96xf32>
    %5 = arith.addf %2, %4 : vector<32x96xf32>
    %cst_5 = arith.constant 0.000000e+00 : f32
    %6 = vector.broadcast %cst_5 : f32 to vector<32x96xf32>
    %7 = arith.maximumf %5, %6 : vector<32x96xf32>
    %8 = arith.truncf %7 : vector<32x96xf32> to vector<32x96xbf16>
    %c0_6 = arith.constant 0 : index
    %c0_7 = arith.constant 0 : index
    %9 = vector.load %arg4[%c0_6, %c0_7] : memref<96x10xbf16, #tpu.memory_space<vmem>>, vector<96x10xbf16>
    %cst_8 = arith.constant dense<0.000000e+00> : vector<32x10xf32>
    %10 = tpu.matmul %8, %9, %cst_8 {dimension_numbers = #tpu.dot_dimension_numbers<[1], [0], [0], [1], [0, 0, 1, 1], [], []>} : vector<32x96xbf16>, vector<96x10xbf16>, vector<32x10xf32> -> vector<32x10xf32>
    %c0_9 = arith.constant 0 : index
    %c0_10 = arith.constant 0 : index
    %11 = vector.load %arg5[%c0_9, %c0_10] : memref<1x10xf32, #tpu.memory_space<vmem>>, vector<1x10xf32>
    %12 = vector.broadcast %11 : vector<1x10xf32> to vector<32x10xf32>
    %13 = arith.addf %10, %12 : vector<32x10xf32>
    %c0_11 = arith.constant 0 : index
    %c0_12 = arith.constant 0 : index
    %14 = vector.load %arg6[%c0_11, %c0_12] : memref<32x10xf32, #tpu.memory_space<vmem>>, vector<32x10xf32>
    tpu.vector_store %arg6[%c0_11, %c0_12], %13 {strides = array<i32>} : memref<32x10xf32, #tpu.memory_space<vmem>>, vector<32x10xf32>,
    return
  }
  func.func @transform_0(%arg0: i32) -> (i32, i32) {
    %c0_i32 = arith.constant 0 : i32
    %c0_i32_0 = arith.constant 0 : i32
    return %arg0, %c0_i32 : i32, i32
  }
  func.func @transform_1(%arg0: i32) -> (i32, i32) {
    %c0_i32 = arith.constant 0 : i32
    %c0_i32_0 = arith.constant 0 : i32
    %c0_i32_1 = arith.constant 0 : i32
    return %c0_i32, %c0_i32_0 : i32, i32
  }
  func.func @transform_2(%arg0: i32) -> (i32, i32) {
    %c0_i32 = arith.constant 0 : i32
    %c0_i32_0 = arith.constant 0 : i32
    %c0_i32_1 = arith.constant 0 : i32
    return %c0_i32, %c0_i32_0 : i32, i32
  }
  func.func @transform_3(%arg0: i32) -> (i32, i32) {
    %c0_i32 = arith.constant 0 : i32
    %c0_i32_0 = arith.constant 0 : i32
    %c0_i32_1 = arith.constant 0 : i32
    return %c0_i32, %c0_i32_0 : i32, i32
  }
  func.func @transform_4(%arg0: i32) -> (i32, i32) {
    %c0_i32 = arith.constant 0 : i32
    %c0_i32_0 = arith.constant 0 : i32
    %c0_i32_1 = arith.constant 0 : i32
    return %c0_i32, %c0_i32_0 : i32, i32
  }
  func.func @transform_5(%arg0: i32) -> (i32, i32) {
    %c0_i32 = arith.constant 0 : i32
    %c0_i32_0 = arith.constant 0 : i32
    return %arg0, %c0_i32 : i32, i32
  }
}

</mosaic_0001>

<bundles_post_ra>
// kernel: shared_net_forward.8
= control target key start
LH: loop header
LB: loop body
LE: loop exit
PB: predicated region body
PF: predicated region fallthrough
CT: control target
= control target key end

     0   :  { %s1106_s12 = smov 0   ;;  %s1108_s13 = smov 0   ;;  %s1395_s0 = inlined_call_operand.vmem [shape: bf16[1,512,75], index: 0, kind: input, shape index: {}]   ;;  %s1396_s1 = inlined_call_operand.vmem [shape: bf16[1,75,192], index: 1, kind: input, shape index: {}]   ;;  %s1397_s2 = inlined_call_operand.vmem [shape: f32[1,1,192], index: 2, kind: input, shape index: {}]   ;;  %s1398_s3 = inlined_call_operand.vmem [shape: f32[1,512,192], index: 3, kind: output, shape index: {}]  }
   0x1   :  { %s1110_s14 = smov 0  }
   0x2 LB: > { %s22_s15 = sadd.s32 1, %s1078_s13  ;;  %p942_p0 = scmp.ge.s32.totalorder %s1082_s14, 1  ;;  %s1082_s14 = sphi %s1110_s14, %s13_s14   ;;  %s1078_s13 = sphi %s1108_s13, %s1400_s13   ;;  %s1074_s12 = sphi %s1106_s12, %s1399_s12  }
   0x3   : > { %p23_p1 = scmp.ge.s32.totalorder %s22_s15, 2  ;;  %p177_p2 = scmp.lt.s32.totalorder %s1082_s14, 3 }
   0x5   : > { %s1402_s15 = smov (%p23_p1, %s22_s15), 0  ;;  %p178_p3 = pnand %p942_p0, %p177_p2 }
   0x6   : > { %v1029_v0 = vld [vmem:[%s1396_s1 + $0x4] ss:$8 sps:$4 sm:$0xff] (!%p178_p3)   ;;  %v1031_v1 = vld [vmem:[%s1396_s1] ss:$8 sps:$4 sm:$0xff] (!%p178_p3)   ;;  %v1032_v2 = vld [vmem:[%s1396_s1 + $0x14] ss:$8 sps:$4 sm:$0xff] (!%p178_p3)   ;;  %v294_v32 = vlaneseq (!%p178_p3) }
   0x7   : > { %181 = sbr.rel (%p178_p3) target bundleno = 303 (0x12f), region = 32  ;;  %491 = vmatprep.subr.bf16.mxu0 (!%p178_p3), %v1029_v0  ;;  %993 = vmatprep.subr.bf16.mxu1 (!%p178_p3), %v1029_v0  ;;  %v1034_v3 = vld [vmem:[%s1396_s1 + $0x10] ss:$8 sps:$4 sm:$0xff] (!%p178_p3)   ;;  %vm481_vm0 = vcmask (!%p178_p3), 1044480   ;;  %v1035_v4 = vld [vmem:[%s1396_s1 + $0x24] ss:$8 sps:$4 sm:$0xff] (!%p178_p3)  }
   0x8   : > { %492 = vmatpush1.bf16.msra.mxu0 (!%p178_p3), %v1031_v1  ;;  %998 = vmatpush1.bf16.msra.mxu1 (!%p178_p3), %v1031_v1  ;;  %s943_s26 = sshll.u32 (!%p178_p3), %s1074_s12, 5  ;;  %v1084_v5 = vmov (!%p178_p3), 0   ;;  %vm482_vm1 = vcmask (!%p178_p3), 1045504   ;;  %v1085_v6 = vmov (!%p178_p3), 65535   ;;  %v1037_v8 = vld [vmem:[%s1396_s1 + $0x20] ss:$8 sps:$4 sm:$0xff] (!%p178_p3)  }
   0x9   : > { %493 = vmatprep.subr.bf16.mxu0 (!%p178_p3), %v1032_v2  ;;  %994 = vmatprep.subr.bf16.mxu1 (!%p178_p3), %v1032_v2  ;;  %p222_p4 = scmp.lt.s32.totalorder (!%p178_p3), %s943_s26, 63  ;;  %v483_v7 = vsel (!%p178_p3), %vm481_vm0, 4294967295, %v1085_v6  ;;  %v1038_v9 = vld [vmem:[%s1396_s1 + $0x34] ss:$8 sps:$4 sm:$0xff] (!%p178_p3)   ;;  %v1040_v13 = vld [vmem:[%s1396_s1 + $0x30] ss:$8 sps:$4 sm:$0xff] (!%p178_p3)  }
   0xa   : > { %523 = vmatprep.mubr.bf16.mxu0 (!%p178_p3), %v1084_v5  ;;  %603 = vmatprep.mubr.bf16.mxu1 (!%p178_p3), %v1084_v5  ;;  %v1041_v10 = vld [vmem:[%s1396_s1 + $0x44] ss:$8 sps:$4 sm:$0x3f] (!%p178_p3)   ;;  %v484_v11 = vsel (!%p178_p3), %vm482_vm1, %v483_v7, 0  ;;  %vm432_vm2 = vcmask (!%p178_p3), 613376   ;;  %v295_v33 = vshrl.u32 (!%p178_p3), %v294_v32, 7 }
   0xb   : > { %v1043_v12 = vld [vmem:[%s1396_s1 + $0x40] ss:$8 sps:$4 sm:$0x3f] (!%p178_p3)   ;;  %v489_v14 = vand.u32 (!%p178_p3), %v1041_v10, %v484_v11  ;;  %vm749_vm3 = vcmask (!%p178_p3), 523264  }
   0xc   : > { %494 = vmatpush1.bf16.msra.mxu0 (!%p178_p3), %v1034_v3  ;;  %999 = vmatpush1.bf16.msra.mxu1 (!%p178_p3), %v1034_v3  ;;  %v486_v15 = vand.u32 (!%p178_p3), %v1043_v12, %v484_v11  ;;  %v296_v34 = vsub.s32 (!%p178_p3), 0, %v295_v33  ;;  %v292_v35 = vld [vmem:[%s1397_s2] sm:$0x3] (!%p178_p3)  ;;  %v300_v36 = vsub.s32 (!%p178_p3), 1, %v295_v33 }
   0xd   : > { %495 = vmatprep.subr.bf16.mxu0 (!%p178_p3), %v1035_v4  ;;  %995 = vmatprep.subr.bf16.mxu1 (!%p178_p3), %v1035_v4 }
   0xe   : > { %s1404_s26 = smov (!%p222_p4, %s943_s26), 63  ;;  %v1216_v37 = vrot.slane %v292_v35, %v296_v34  ;;  %v1218_v38 = vrot.slane %v292_v35, %v300_v36 }
   0xf   : > { %s944_s6 = sshll.u32 %s1404_s26, 2  ;;  %s992_s19 = sshll.u32 %s1404_s26, 4 }
  0x10   : > { %s1162_s11 = scalar_lea.vmem %s1395_s0, %s944_s6  ;;  %496 = vmatpush1.bf16.msra.mxu0 %v1037_v8  ;;  %1000 = vmatpush1.bf16.msra.mxu1 %v1037_v8  ;;  %s1226_s22 = scalar_lea.vmem %s1398_s3, %s992_s19 }
  0x11   : > { %497 = vmatprep.subr.bf16.mxu0 %v1038_v9  ;;  %996 = vmatprep.subr.bf16.mxu1 %v1038_v9  ;;  %v1044_v16 = vld [vmem:[%s1162_s11] sm:$0xff]   ;;  %v1046_v18 = vld [vmem:[%s1162_s11 + $0x8] sm:$0xff]   ;;  %v1048_v20 = vld [vmem:[%s1162_s11 + $0x10] sm:$0xff]  }
  0x12   : > { %v1045_v17 = vld [vmem:[%s1162_s11 + $0x40] sm:$0xff]   ;;  %v1047_v19 = vld [vmem:[%s1162_s11 + $0x48] sm:$0xff]   ;;  %v1049_v21 = vld [vmem:[%s1162_s11 + $0x50] sm:$0xff]  }
  0x13   : > { %v1050_v22 = vld [vmem:[%s1162_s11 + $0x18] sm:$0xff]   ;;  %v1052_v24 = vld [vmem:[%s1162_s11 + $0x20] sm:$0xff]   ;;  %v1054_v26 = vld [vmem:[%s1162_s11 + $0x28] sm:$0xff]  }
  0x14   : > { %498 = vmatpush1.bf16.msra.mxu0 %v1040_v13  ;;  %1001 = vmatpush1.bf16.msra.mxu1 %v1040_v13  ;;  %v1051_v23 = vld [vmem:[%s1162_s11 + $0x58] sm:$0xff]   ;;  %v1053_v25 = vld [vmem:[%s1162_s11 + $0x60] sm:$0xff]   ;;  %v1055_v27 = vld [vmem:[%s1162_s11 + $0x68] sm:$0xff]  }
  0x15   : > { %499 = vmatprep.subr.bf16.mxu0 %v489_v14  ;;  %997 = vmatprep.subr.bf16.mxu1 %v489_v14  ;;  %v1056_v28 = vld [vmem:[%s1162_s11 + $0x30] sm:$0xff]   ;;  %v1058_v30 = vld [vmem:[%s1162_s11 + $0x38] sm:$0xff]  }
  0x16   : > { %v1057_v29 = vld [vmem:[%s1162_s11 + $0x70] sm:$0xff]   ;;  %v1059_v31 = vld [vmem:[%s1162_s11 + $0x78] sm:$0xff]  }
  0x18   : > { %500 = vmatpush1.bf16.msra.mxu0 %v486_v15  ;;  %1002 = vmatpush1.bf16.msra.mxu1 %v486_v15 }
  0x1b   : > { %974 = vmatmul.mubr.msk.bf16.vlgmr.msra.gmra.mrb[0].mxu0 %vm432_vm2, %v1044_v16  ;;  %982 = vmatmul.mubr.msk.bf16.vlgmr.msra.gmra.mrb[0].mxu1 %vm432_vm2, %v1045_v17 }
  0x1c   : > { %533 = vmatprep.mubr.bf16.mxu0 %v1084_v5  ;;  %613 = vmatprep.mubr.bf16.mxu1 %v1084_v5 }
  0x23   : > { %975 = vmatmul.mubr.msk.bf16.gmra.mrb[4].mxu0 %vm432_vm2, %v1046_v18  ;;  %983 = vmatmul.mubr.msk.bf16.gmra.mrb[4].mxu1 %vm432_vm2, %v1047_v19 }
  0x24   : > { %543 = vmatprep.mubr.bf16.mxu0 %v1084_v5  ;;  %623 = vmatprep.mubr.bf16.mxu1 %v1084_v5 }
  0x2b   : > { %976 = vmatmul.mubr.msk.bf16.gmra.mrb[8].mxu0 %vm432_vm2, %v1048_v20  ;;  %984 = vmatmul.mubr.msk.bf16.gmra.mrb[8].mxu1 %vm432_vm2, %v1049_v21 }
  0x2c   : > { %553 = vmatprep.mubr.bf16.mxu0 %v1084_v5  ;;  %633 = vmatprep.mubr.bf16.mxu1 %v1084_v5 }
  0x33   : > { %977 = vmatmul.mubr.msk.bf16.gmra.mrb[12].mxu0 %vm432_vm2, %v1050_v22  ;;  %985 = vmatmul.mubr.msk.bf16.gmra.mrb[12].mxu1 %vm432_vm2, %v1051_v23 }
  0x34   : > { %563 = vmatprep.mubr.bf16.mxu0 %v1084_v5  ;;  %643 = vmatprep.mubr.bf16.mxu1 %v1084_v5 }
  0x3b   : > { %978 = vmatmul.mubr.msk.bf16.gmra.mrb[16].mxu0 %vm432_vm2, %v1052_v24  ;;  %986 = vmatmul.mubr.msk.bf16.gmra.mrb[16].mxu1 %vm432_vm2, %v1053_v25 }
  0x3c   : > { %573 = vmatprep.mubr.bf16.mxu0 %v1084_v5  ;;  %653 = vmatprep.mubr.bf16.mxu1 %v1084_v5 }
  0x43   : > { %979 = vmatmul.mubr.msk.bf16.gmra.mrb[20].mxu0 %vm432_vm2, %v1054_v26  ;;  %987 = vmatmul.mubr.msk.bf16.gmra.mrb[20].mxu1 %vm432_vm2, %v1055_v27 }
  0x44   : > { %583 = vmatprep.mubr.bf16.mxu0 %v1084_v5  ;;  %663 = vmatprep.mubr.bf16.mxu1 %v1084_v5 }
  0x4b   : > { %980 = vmatmul.mubr.msk.bf16.gmra.mrb[24].mxu0 %vm432_vm2, %v1056_v28  ;;  %988 = vmatmul.mubr.msk.bf16.gmra.mrb[24].mxu1 %vm432_vm2, %v1057_v29 }
  0x4c   : > { %593 = vmatprep.mubr.bf16.mxu0 %v1084_v5  ;;  %673 = vmatprep.mubr.bf16.mxu1 %v1084_v5 }
  0x53   : > { %981 = vmatmul.mubr.msk.bf16.gmra.mrb[28].mxu0 %vm432_vm2, %v1058_v30  ;;  %989 = vmatmul.mubr.msk.bf16.gmra.mrb[28].mxu1 %vm432_vm2, %v1059_v31 }
  0xee   : > { %v525_v39 = vpop.f32.mrb[0].mxu0  ;;  %v605_v40 = vpop.f32.mrb[0].mxu1 }
  0xef   : > { %v526_v41 = vadd.f32 %v525_v39, %v1216_v37  ;;  %v606_v42 = vadd.f32 %v605_v40, %v1216_v37  ;;  %v527_v43 = vpop.f32.mrb[1].mxu0  ;;  %v607_v44 = vpop.f32.mrb[1].mxu1 }
  0xf0   : > { %v528_v45 = vadd.f32 %v527_v43, %v1218_v38  ;;  %v608_v46 = vadd.f32 %v607_v44, %v1218_v38  ;;  %v529_v47 = vpop.f32.mrb[2].mxu0  ;;  %v609_v48 = vpop.f32.mrb[2].mxu1 }
  0xf1   : > { %v684_v49 = vmax.f32 %v526_v41, 0.0  ;;  %v716_v50 = vmax.f32 %v606_v42, 0.0  ;;  %v530_v51 = vadd.f32 %v529_v47, %v1216_v37  ;;  %v610_v52 = vadd.f32 %v609_v48, %v1216_v37  ;;  %v531_v53 = vpop.f32.mrb[3].mxu0  ;;  %v611_v54 = vpop.f32.mrb[3].mxu1 }
  0xf2   : > { %v685_v55 = vmax.f32 %v528_v45, 0.0  ;;  %v717_v56 = vmax.f32 %v608_v46, 0.0  ;;  %v532_v57 = vadd.f32 %v531_v53, %v1218_v38  ;;  %v612_v58 = vadd.f32 %v611_v54, %v1218_v38 }
  0xf3   : > { %748 = vst [vmem:[%s1226_s22] sm:$0xff] %v684_v49  ;;  %781 = vst [vmem:[%s1226_s22 + $0x100] sm:$0xff] %v716_v50  ;;  %v686_v59 = vmax.f32 %v530_v51, 0.0  ;;  %v718_v60 = vmax.f32 %v610_v52, 0.0 }
  0xf4   : > { %750 = vst.msk [vmem:[%s1226_s22 + $0x8] sm:$0xff] %vm749_vm3, %v685_v55  ;;  %782 = vst.msk [vmem:[%s1226_s22 + $0x108] sm:$0xff] %vm749_vm3, %v717_v56  ;;  %v687_v61 = vmax.f32 %v532_v57, 0.0  ;;  %v719_v62 = vmax.f32 %v612_v58, 0.0 }
  0xf5   : > { %751 = vst [vmem:[%s1226_s22 + $0x10] sm:$0xff] %v686_v59  ;;  %783 = vst [vmem:[%s1226_s22 + $0x110] sm:$0xff] %v718_v60 }
  0xf6   : > { %752 = vst.msk [vmem:[%s1226_s22 + $0x18] sm:$0xff] %vm749_vm3, %v687_v61  ;;  %784 = vst.msk [vmem:[%s1226_s22 + $0x118] sm:$0xff] %vm749_vm3, %v719_v62  ;;  %v535_v63 = vpop.f32.mrb[4].mxu0  ;;  %v615_v0 = vpop.f32.mrb[4].mxu1 }
  0xf7   : > { %v536_v1 = vadd.f32 %v535_v63, %v1216_v37  ;;  %v616_v2 = vadd.f32 %v615_v0, %v1216_v37  ;;  %v537_v3 = vpop.f32.mrb[5].mxu0  ;;  %v617_v4 = vpop.f32.mrb[5].mxu1 }
  0xf8   : > { %v538_v5 = vadd.f32 %v537_v3, %v1218_v38  ;;  %v618_v6 = vadd.f32 %v617_v4, %v1218_v38  ;;  %v539_v7 = vpop.f32.mrb[6].mxu0  ;;  %v619_v8 = vpop.f32.mrb[6].mxu1 }
  0xf9   : > { %v688_v9 = vmax.f32 %v536_v1, 0.0  ;;  %v720_v10 = vmax.f32 %v616_v2, 0.0  ;;  %v540_v11 = vadd.f32 %v539_v7, %v1216_v37  ;;  %v620_v12 = vadd.f32 %v619_v8, %v1216_v37  ;;  %v541_v13 = vpop.f32.mrb[7].mxu0  ;;  %v621_v14 = vpop.f32.mrb[7].mxu1 }
  0xfa   : > { %v689_v15 = vmax.f32 %v538_v5, 0.0  ;;  %v721_v16 = vmax.f32 %v618_v6, 0.0  ;;  %v542_v17 = vadd.f32 %v541_v13, %v1218_v38  ;;  %v622_v18 = vadd.f32 %v621_v14, %v1218_v38 }
  0xfb   : > { %753 = vst [vmem:[%s1226_s22 + $0x20] sm:$0xff] %v688_v9  ;;  %785 = vst [vmem:[%s1226_s22 + $0x120] sm:$0xff] %v720_v10  ;;  %v690_v19 = vmax.f32 %v540_v11, 0.0  ;;  %v722_v20 = vmax.f32 %v620_v12, 0.0 }
  0xfc   : > { %754 = vst.msk [vmem:[%s1226_s22 + $0x28] sm:$0xff] %vm749_vm3, %v689_v15  ;;  %786 = vst.msk [vmem:[%s1226_s22 + $0x128] sm:$0xff] %vm749_vm3, %v721_v16  ;;  %v691_v21 = vmax.f32 %v542_v17, 0.0  ;;  %v723_v22 = vmax.f32 %v622_v18, 0.0 }
  0xfd   : > { %755 = vst [vmem:[%s1226_s22 + $0x30] sm:$0xff] %v690_v19  ;;  %787 = vst [vmem:[%s1226_s22 + $0x130] sm:$0xff] %v722_v20 }
  0xfe   : > { %756 = vst.msk [vmem:[%s1226_s22 + $0x38] sm:$0xff] %vm749_vm3, %v691_v21  ;;  %788 = vst.msk [vmem:[%s1226_s22 + $0x138] sm:$0xff] %vm749_vm3, %v723_v22  ;;  %v545_v23 = vpop.f32.mrb[8].mxu0  ;;  %v625_v24 = vpop.f32.mrb[8].mxu1 }
  0xff   : > { %v546_v25 = vadd.f32 %v545_v23, %v1216_v37  ;;  %v626_v26 = vadd.f32 %v625_v24, %v1216_v37  ;;  %v547_v27 = vpop.f32.mrb[9].mxu0  ;;  %v627_v28 = vpop.f32.mrb[9].mxu1 }
 0x100   : > { %v548_v29 = vadd.f32 %v547_v27, %v1218_v38  ;;  %v628_v30 = vadd.f32 %v627_v28, %v1218_v38  ;;  %v549_v31 = vpop.f32.mrb[10].mxu0  ;;  %v629_v32 = vpop.f32.mrb[10].mxu1 }
 0x101   : > { %v692_v33 = vmax.f32 %v546_v25, 0.0  ;;  %v724_v34 = vmax.f32 %v626_v26, 0.0  ;;  %v550_v35 = vadd.f32 %v549_v31, %v1216_v37  ;;  %v630_v36 = vadd.f32 %v629_v32, %v1216_v37  ;;  %v551_v39 = vpop.f32.mrb[11].mxu0  ;;  %v631_v40 = vpop.f32.mrb[11].mxu1 }
 0x102   : > { %v693_v41 = vmax.f32 %v548_v29, 0.0  ;;  %v725_v42 = vmax.f32 %v628_v30, 0.0  ;;  %v552_v43 = vadd.f32 %v551_v39, %v1218_v38  ;;  %v632_v44 = vadd.f32 %v631_v40, %v1218_v38 }
 0x103   : > { %757 = vst [vmem:[%s1226_s22 + $0x40] sm:$0xff] %v692_v33  ;;  %789 = vst [vmem:[%s1226_s22 + $0x140] sm:$0xff] %v724_v34  ;;  %v694_v45 = vmax.f32 %v550_v35, 0.0  ;;  %v726_v46 = vmax.f32 %v630_v36, 0.0 }
 0x104   : > { %758 = vst.msk [vmem:[%s1226_s22 + $0x48] sm:$0xff] %vm749_vm3, %v693_v41  ;;  %790 = vst.msk [vmem:[%s1226_s22 + $0x148] sm:$0xff] %vm749_vm3, %v725_v42  ;;  %v695_v47 = vmax.f32 %v552_v43, 0.0  ;;  %v727_v48 = vmax.f32 %v632_v44, 0.0 }
 0x105   : > { %759 = vst [vmem:[%s1226_s22 + $0x50] sm:$0xff] %v694_v45  ;;  %791 = vst [vmem:[%s1226_s22 + $0x150] sm:$0xff] %v726_v46 }
 0x106   : > { %760 = vst.msk [vmem:[%s1226_s22 + $0x58] sm:$0xff] %vm749_vm3, %v695_v47  ;;  %792 = vst.msk [vmem:[%s1226_s22 + $0x158] sm:$0xff] %vm749_vm3, %v727_v48  ;;  %v555_v49 = vpop.f32.mrb[12].mxu0  ;;  %v635_v50 = vpop.f32.mrb[12].mxu1 }
 0x107   : > { %v556_v51 = vadd.f32 %v555_v49, %v1216_v37  ;;  %v636_v52 = vadd.f32 %v635_v50, %v1216_v37  ;;  %v557_v53 = vpop.f32.mrb[13].mxu0  ;;  %v637_v54 = vpop.f32.mrb[13].mxu1 }
 0x108   : > { %v558_v55 = vadd.f32 %v557_v53, %v1218_v38  ;;  %v638_v56 = vadd.f32 %v637_v54, %v1218_v38  ;;  %v559_v57 = vpop.f32.mrb[14].mxu0  ;;  %v639_v58 = vpop.f32.mrb[14].mxu1 }
 0x109   : > { %v696_v59 = vmax.f32 %v556_v51, 0.0  ;;  %v728_v60 = vmax.f32 %v636_v52, 0.0  ;;  %v560_v61 = vadd.f32 %v559_v57, %v1216_v37  ;;  %v640_v62 = vadd.f32 %v639_v58, %v1216_v37  ;;  %v561_v63 = vpop.f32.mrb[15].mxu0  ;;  %v641_v0 = vpop.f32.mrb[15].mxu1 }
 0x10a   : > { %v697_v1 = vmax.f32 %v558_v55, 0.0  ;;  %v729_v2 = vmax.f32 %v638_v56, 0.0  ;;  %v562_v3 = vadd.f32 %v561_v63, %v1218_v38  ;;  %v642_v4 = vadd.f32 %v641_v0, %v1218_v38 }
 0x10b   : > { %761 = vst [vmem:[%s1226_s22 + $0x60] sm:$0xff] %v696_v59  ;;  %793 = vst [vmem:[%s1226_s22 + $0x160] sm:$0xff] %v728_v60  ;;  %v698_v5 = vmax.f32 %v560_v61, 0.0  ;;  %v730_v6 = vmax.f32 %v640_v62, 0.0 }
 0x10c   : > { %762 = vst.msk [vmem:[%s1226_s22 + $0x68] sm:$0xff] %vm749_vm3, %v697_v1  ;;  %794 = vst.msk [vmem:[%s1226_s22 + $0x168] sm:$0xff] %vm749_vm3, %v729_v2  ;;  %v699_v7 = vmax.f32 %v562_v3, 0.0  ;;  %v731_v8 = vmax.f32 %v642_v4, 0.0 }
 0x10d   : > { %763 = vst [vmem:[%s1226_s22 + $0x70] sm:$0xff] %v698_v5  ;;  %795 = vst [vmem:[%s1226_s22 + $0x170] sm:$0xff] %v730_v6 }
 0x10e   : > { %764 = vst.msk [vmem:[%s1226_s22 + $0x78] sm:$0xff] %vm749_vm3, %v699_v7  ;;  %796 = vst.msk [vmem:[%s1226_s22 + $0x178] sm:$0xff] %vm749_vm3, %v731_v8  ;;  %v565_v9 = vpop.f32.mrb[16].mxu0  ;;  %v645_v10 = vpop.f32.mrb[16].mxu1 }
 0x10f   : > { %v566_v11 = vadd.f32 %v565_v9, %v1216_v37  ;;  %v646_v12 = vadd.f32 %v645_v10, %v1216_v37  ;;  %v567_v13 = vpop.f32.mrb[17].mxu0  ;;  %v647_v14 = vpop.f32.mrb[17].mxu1 }
 0x110   : > { %v568_v15 = vadd.f32 %v567_v13, %v1218_v38  ;;  %v648_v16 = vadd.f32 %v647_v14, %v1218_v38  ;;  %v569_v17 = vpop.f32.mrb[18].mxu0  ;;  %v649_v18 = vpop.f32.mrb[18].mxu1 }
 0x111   : > { %v700_v19 = vmax.f32 %v566_v11, 0.0  ;;  %v732_v20 = vmax.f32 %v646_v12, 0.0  ;;  %v570_v21 = vadd.f32 %v569_v17, %v1216_v37  ;;  %v650_v22 = vadd.f32 %v649_v18, %v1216_v37  ;;  %v571_v23 = vpop.f32.mrb[19].mxu0  ;;  %v651_v24 = vpop.f32.mrb[19].mxu1 }
 0x112   : > { %v701_v25 = vmax.f32 %v568_v15, 0.0  ;;  %v733_v26 = vmax.f32 %v648_v16, 0.0  ;;  %v572_v27 = vadd.f32 %v571_v23, %v1218_v38  ;;  %v652_v28 = vadd.f32 %v651_v24, %v1218_v38 }
 0x113   : > { %765 = vst [vmem:[%s1226_s22 + $0x80] sm:$0xff] %v700_v19  ;;  %797 = vst [vmem:[%s1226_s22 + $0x180] sm:$0xff] %v732_v20  ;;  %v702_v29 = vmax.f32 %v570_v21, 0.0  ;;  %v734_v30 = vmax.f32 %v650_v22, 0.0 }
 0x114   : > { %766 = vst.msk [vmem:[%s1226_s22 + $0x88] sm:$0xff] %vm749_vm3, %v701_v25  ;;  %798 = vst.msk [vmem:[%s1226_s22 + $0x188] sm:$0xff] %vm749_vm3, %v733_v26  ;;  %v703_v31 = vmax.f32 %v572_v27, 0.0  ;;  %v735_v32 = vmax.f32 %v652_v28, 0.0 }
 0x115   : > { %767 = vst [vmem:[%s1226_s22 + $0x90] sm:$0xff] %v702_v29  ;;  %799 = vst [vmem:[%s1226_s22 + $0x190] sm:$0xff] %v734_v30 }
 0x116   : > { %768 = vst.msk [vmem:[%s1226_s22 + $0x98] sm:$0xff] %vm749_vm3, %v703_v31  ;;  %800 = vst.msk [vmem:[%s1226_s22 + $0x198] sm:$0xff] %vm749_vm3, %v735_v32  ;;  %v575_v33 = vpop.f32.mrb[20].mxu0  ;;  %v655_v34 = vpop.f32.mrb[20].mxu1 }
 0x117   : > { %v576_v35 = vadd.f32 %v575_v33, %v1216_v37  ;;  %v656_v36 = vadd.f32 %v655_v34, %v1216_v37  ;;  %v577_v39 = vpop.f32.mrb[21].mxu0  ;;  %v657_v40 = vpop.f32.mrb[21].mxu1 }
 0x118   : > { %v578_v41 = vadd.f32 %v577_v39, %v1218_v38  ;;  %v658_v42 = vadd.f32 %v657_v40, %v1218_v38  ;;  %v579_v43 = vpop.f32.mrb[22].mxu0  ;;  %v659_v44 = vpop.f32.mrb[22].mxu1 }
 0x119   : > { %v704_v45 = vmax.f32 %v576_v35, 0.0  ;;  %v736_v46 = vmax.f32 %v656_v36, 0.0  ;;  %v580_v47 = vadd.f32 %v579_v43, %v1216_v37  ;;  %v660_v48 = vadd.f32 %v659_v44, %v1216_v37  ;;  %v581_v49 = vpop.f32.mrb[23].mxu0  ;;  %v661_v50 = vpop.f32.mrb[23].mxu1 }
 0x11a   : > { %v705_v51 = vmax.f32 %v578_v41, 0.0  ;;  %v737_v52 = vmax.f32 %v658_v42, 0.0  ;;  %v582_v53 = vadd.f32 %v581_v49, %v1218_v38  ;;  %v662_v54 = vadd.f32 %v661_v50, %v1218_v38 }
 0x11b   : > { %769 = vst [vmem:[%s1226_s22 + $0xa0] sm:$0xff] %v704_v45  ;;  %801 = vst [vmem:[%s1226_s22 + $0x1a0] sm:$0xff] %v736_v46  ;;  %v706_v55 = vmax.f32 %v580_v47, 0.0  ;;  %v738_v56 = vmax.f32 %v660_v48, 0.0 }
 0x11c   : > { %770 = vst.msk [vmem:[%s1226_s22 + $0xa8] sm:$0xff] %vm749_vm3, %v705_v51  ;;  %802 = vst.msk [vmem:[%s1226_s22 + $0x1a8] sm:$0xff] %vm749_vm3, %v737_v52  ;;  %v707_v57 = vmax.f32 %v582_v53, 0.0  ;;  %v739_v58 = vmax.f32 %v662_v54, 0.0 }
 0x11d   : > { %771 = vst [vmem:[%s1226_s22 + $0xb0] sm:$0xff] %v706_v55  ;;  %803 = vst [vmem:[%s1226_s22 + $0x1b0] sm:$0xff] %v738_v56 }
 0x11e   : > { %772 = vst.msk [vmem:[%s1226_s22 + $0xb8] sm:$0xff] %vm749_vm3, %v707_v57  ;;  %804 = vst.msk [vmem:[%s1226_s22 + $0x1b8] sm:$0xff] %vm749_vm3, %v739_v58  ;;  %v585_v59 = vpop.f32.mrb[24].mxu0  ;;  %v665_v60 = vpop.f32.mrb[24].mxu1 }
 0x11f   : > { %v586_v61 = vadd.f32 %v585_v59, %v1216_v37  ;;  %v666_v62 = vadd.f32 %v665_v60, %v1216_v37  ;;  %v587_v63 = vpop.f32.mrb[25].mxu0  ;;  %v667_v0 = vpop.f32.mrb[25].mxu1 }
 0x120   : > { %v588_v1 = vadd.f32 %v587_v63, %v1218_v38  ;;  %v668_v2 = vadd.f32 %v667_v0, %v1218_v38  ;;  %v589_v3 = vpop.f32.mrb[26].mxu0  ;;  %v669_v4 = vpop.f32.mrb[26].mxu1 }
 0x121   : > { %v708_v5 = vmax.f32 %v586_v61, 0.0  ;;  %v740_v6 = vmax.f32 %v666_v62, 0.0  ;;  %v590_v7 = vadd.f32 %v589_v3, %v1216_v37  ;;  %v670_v8 = vadd.f32 %v669_v4, %v1216_v37  ;;  %v591_v9 = vpop.f32.mrb[27].mxu0  ;;  %v671_v10 = vpop.f32.mrb[27].mxu1 }
 0x122   : > { %v709_v11 = vmax.f32 %v588_v1, 0.0  ;;  %v741_v12 = vmax.f32 %v668_v2, 0.0  ;;  %v592_v13 = vadd.f32 %v591_v9, %v1218_v38  ;;  %v672_v14 = vadd.f32 %v671_v10, %v1218_v38 }
 0x123   : > { %773 = vst [vmem:[%s1226_s22 + $0xc0] sm:$0xff] %v708_v5  ;;  %805 = vst [vmem:[%s1226_s22 + $0x1c0] sm:$0xff] %v740_v6  ;;  %v710_v15 = vmax.f32 %v590_v7, 0.0  ;;  %v742_v16 = vmax.f32 %v670_v8, 0.0 }
 0x124   : > { %774 = vst.msk [vmem:[%s1226_s22 + $0xc8] sm:$0xff] %vm749_vm3, %v709_v11  ;;  %806 = vst.msk [vmem:[%s1226_s22 + $0x1c8] sm:$0xff] %vm749_vm3, %v741_v12  ;;  %v711_v17 = vmax.f32 %v592_v13, 0.0  ;;  %v743_v18 = vmax.f32 %v672_v14, 0.0 }
 0x125   : > { %775 = vst [vmem:[%s1226_s22 + $0xd0] sm:$0xff] %v710_v15  ;;  %807 = vst [vmem:[%s1226_s22 + $0x1d0] sm:$0xff] %v742_v16 }
 0x126   : > { %776 = vst.msk [vmem:[%s1226_s22 + $0xd8] sm:$0xff] %vm749_vm3, %v711_v17  ;;  %808 = vst.msk [vmem:[%s1226_s22 + $0x1d8] sm:$0xff] %vm749_vm3, %v743_v18  ;;  %v595_v19 = vpop.f32.mrb[28].mxu0  ;;  %v675_v20 = vpop.f32.mrb[28].mxu1 }
 0x127   : > { %v596_v21 = vadd.f32 %v595_v19, %v1216_v37  ;;  %v676_v22 = vadd.f32 %v675_v20, %v1216_v37  ;;  %v597_v23 = vpop.f32.mrb[29].mxu0  ;;  %v677_v24 = vpop.f32.mrb[29].mxu1 }
 0x128   : > { %v598_v25 = vadd.f32 %v597_v23, %v1218_v38  ;;  %v678_v26 = vadd.f32 %v677_v24, %v1218_v38  ;;  %v599_v27 = vpop.f32.mrb[30].mxu0  ;;  %v679_v28 = vpop.f32.mrb[30].mxu1 }
 0x129   : > { %v712_v29 = vmax.f32 %v596_v21, 0.0  ;;  %v744_v30 = vmax.f32 %v676_v22, 0.0  ;;  %v600_v31 = vadd.f32 %v599_v27, %v1216_v37  ;;  %v680_v32 = vadd.f32 %v679_v28, %v1216_v37  ;;  %v601_v33 = vpop.f32.mrb[31].mxu0  ;;  %v681_v34 = vpop.f32.mrb[31].mxu1 }
 0x12a   : > { %v713_v35 = vmax.f32 %v598_v25, 0.0  ;;  %v745_v36 = vmax.f32 %v678_v26, 0.0  ;;  %v602_v39 = vadd.f32 %v601_v33, %v1218_v38  ;;  %v682_v40 = vadd.f32 %v681_v34, %v1218_v38 }
 0x12b   : > { %777 = vst [vmem:[%s1226_s22 + $0xe0] sm:$0xff] %v712_v29  ;;  %809 = vst [vmem:[%s1226_s22 + $0x1e0] sm:$0xff] %v744_v30  ;;  %v714_v41 = vmax.f32 %v600_v31, 0.0  ;;  %v746_v42 = vmax.f32 %v680_v32, 0.0 }
 0x12c   : > { %778 = vst.msk [vmem:[%s1226_s22 + $0xe8] sm:$0xff] %vm749_vm3, %v713_v35  ;;  %810 = vst.msk [vmem:[%s1226_s22 + $0x1e8] sm:$0xff] %vm749_vm3, %v745_v36  ;;  %v715_v37 = vmax.f32 %v602_v39, 0.0  ;;  %v747_v43 = vmax.f32 %v682_v40, 0.0 }
 0x12d   : > { %779 = vst [vmem:[%s1226_s22 + $0xf0] sm:$0xff] %v714_v41  ;;  %811 = vst [vmem:[%s1226_s22 + $0x1f0] sm:$0xff] %v746_v42 }
 0x12e   : > { %780 = vst.msk [vmem:[%s1226_s22 + $0xf8] sm:$0xff] %vm749_vm3, %v715_v37  ;;  %812 = vst.msk [vmem:[%s1226_s22 + $0x1f8] sm:$0xff] %vm749_vm3, %v747_v43 }
 0x12f PF: > { %s13_s14 = sadd.s32 1, %s1082_s14   ;;  %s1399_s12 = smov %s1078_s13 }
 0x130   : > { %p10_p5 = scmp.ge.s32.totalorder %s13_s14, 4   ;;  %s1400_s13 = smov %s1402_s15 }
 0x132   :  { %12 = sbr.rel (!%p10_p5) target bundleno = 2 (0x2), region = 68 }

// kernel: shared_net_forward.9
= control target key start
LH: loop header
LB: loop body
LE: loop exit
PB: predicated region body
PF: predicated region fallthrough
CT: control target
= control target key end

     0   :  { %s1574_s18 = smov 0   ;;  %s1950_s0 = inlined_call_operand.vmem [shape: bf16[512,192], index: 0, kind: input, shape index: {}]   ;;  %s1951_s1 = inlined_call_operand.vmem [shape: bf16[192,160], index: 1, kind: input, shape index: {}]   ;;  %s1952_s2 = inlined_call_operand.vmem [shape: f32[1,160], index: 2, kind: input, shape index: {}]   ;;  %s1953_s3 = inlined_call_operand.vmem [shape: bf16[160,96], index: 3, kind: input, shape index: {}]   ;;  %s1954_s4 = inlined_call_operand.vmem [shape: f32[1,96], index: 4, kind: input, shape index: {}]   ;;  %s1955_s5 = inlined_call_operand.vmem [shape: f32[512,96], index: 5, kind: output, shape index: {}]  }
   0x1 LB: > { %s1320_s19 = sadd.s32 4294967295, %s1541_s18   ;;  %p1324_p0 = scmp.ge.s32.totalorder %s1541_s18, 1  ;;  %s1541_s18 = sphi %s1574_s18, %s15_s18  }
   0x2   : > { %p189_p1 = scmp.lt.s32.totalorder %s1541_s18, 3 }
   0x4   : > { %p190_p2 = pnand %p1324_p0, %p189_p1 }
   0x5   : > { %v1441_v0 = vld [vmem:[%s1951_s1 + $0x4] ss:$8 sps:$4 sm:$0xff] (!%p190_p2)   ;;  %s1325_s22 = sshll.u32 (!%p190_p2), %s1320_s19, 5  ;;  %v1443_v1 = vld [vmem:[%s1951_s1] ss:$8 sps:$4 sm:$0xff] (!%p190_p2)   ;;  %vm564_vm0 = vcmask (!%p190_p2), 523264  }
   0x6   : > { %193 = sbr.rel (%p190_p2) target bundleno = 615 (0x267), region = 40  ;;  %613 = vmatprep.subr.bf16.mxu0 (!%p190_p2), %v1441_v0  ;;  %v1444_v2 = vld [vmem:[%s1951_s1 + $0x14] ss:$8 sps:$4 sm:$0xff] (!%p190_p2)   ;;  %v1446_v3 = vld [vmem:[%s1951_s1 + $0x10] ss:$8 sps:$4 sm:$0xff] (!%p190_p2)   ;;  %p219_p3 = scmp.lt.s32.totalorder (!%p190_p2), %s1325_s22, 63 }
   0x7   : > { %614 = vmatpush1.bf16.msra.mxu0 (!%p190_p2), %v1443_v1  ;;  %v1447_v4 = vld [vmem:[%s1951_s1 + $0x24] ss:$8 sps:$4 sm:$0xff] (!%p190_p2)   ;;  %v1449_v5 = vld [vmem:[%s1951_s1 + $0x20] ss:$8 sps:$4 sm:$0xff] (!%p190_p2)   ;;  %v1450_v6 = vld [vmem:[%s1951_s1 + $0x34] ss:$8 sps:$4 sm:$0xff] (!%p190_p2)  }
   0x8   : > { %615 = vmatprep.subr.bf16.mxu0 (!%p190_p2), %v1444_v2  ;;  %v1452_v7 = vld [vmem:[%s1951_s1 + $0x30] ss:$8 sps:$4 sm:$0xff] (!%p190_p2)   ;;  %v1453_v8 = vld [vmem:[%s1951_s1 + $0x44] ss:$8 sps:$4 sm:$0xff] (!%p190_p2)   ;;  %v1455_v9 = vld [vmem:[%s1951_s1 + $0x40] ss:$8 sps:$4 sm:$0xff] (!%p190_p2)  }
   0x9   : > { %v1456_v10 = vld [vmem:[%s1951_s1 + $0x54] ss:$8 sps:$4 sm:$0xff] (!%p190_p2)   ;;  %v1458_v12 = vld [vmem:[%s1951_s1 + $0x50] ss:$8 sps:$4 sm:$0xff] (!%p190_p2)   ;;  %v1459_v13 = vld [vmem:[%s1951_s1 + $0x64] ss:$8 sps:$4 sm:$0xff] (!%p190_p2)  }
   0xa   : > { %v1461_v14 = vld [vmem:[%s1951_s1 + $0x60] ss:$8 sps:$4 sm:$0xff] (!%p190_p2)   ;;  %v1462_v15 = vld [vmem:[%s1951_s1 + $0x74] ss:$8 sps:$4 sm:$0xff] (!%p190_p2)   ;;  %v1464_v16 = vld [vmem:[%s1951_s1 + $0x70] ss:$8 sps:$4 sm:$0xff] (!%p190_p2)  }
   0xb   : > { %616 = vmatpush1.bf16.msra.mxu0 (!%p190_p2), %v1446_v3  ;;  %v1465_v17 = vld [vmem:[%s1951_s1 + $0x84] ss:$8 sps:$4 sm:$0xff] (!%p190_p2)   ;;  %v1467_v18 = vld [vmem:[%s1951_s1 + $0x80] ss:$8 sps:$4 sm:$0xff] (!%p190_p2)   ;;  %v1468_v19 = vld [vmem:[%s1951_s1 + $0x94] ss:$8 sps:$4 sm:$0xff] (!%p190_p2)   ;;  %v290_v3 = vlaneseq (!%p190_p2) }
   0xc   : > { %617 = vmatprep.subr.bf16.mxu0 (!%p190_p2), %v1447_v4  ;;  %v1470_v20 = vld [vmem:[%s1951_s1 + $0x90] ss:$8 sps:$4 sm:$0xff] (!%p190_p2)   ;;  %v1471_v21 = vld [vmem:[%s1951_s1 + $0xa4] ss:$8 sps:$4 sm:$0xff] (!%p190_p2)   ;;  %v1473_v22 = vld [vmem:[%s1951_s1 + $0xa0] ss:$8 sps:$4 sm:$0xff] (!%p190_p2)  }
   0xd   : > { %s1957_s22 = smov (!%p219_p3, %s1325_s22), 63  ;;  %v1474_v23 = vld [vmem:[%s1951_s1 + $0xb4] ss:$8 sps:$4 sm:$0xff]   ;;  %v1525_v24 = vld [vmem:[%s1953_s3] sm:$0xff]   ;;  %v1476_v25 = vld [vmem:[%s1951_s1 + $0xb0] ss:$8 sps:$4 sm:$0xff]  }
   0xe   : > { %s1431_s12 = sshll.u32 %s1957_s22, 3  ;;  %v1543_v26 = vmov 0   ;;  %v1526_v27 = vld [vmem:[%s1953_s3 + $0x8] sm:$0xff]   ;;  %v1527_v30 = vld [vmem:[%s1953_s3 + $0x10] sm:$0xff]   ;;  %v1528_v31 = vld [vmem:[%s1953_s3 + $0x18] sm:$0xff]   ;;  %v291_v4 = vshrl.u32 %v290_v3, 7 }
   0xf   : > { %618 = vmatpush1.bf16.msra.mxu0 %v1449_v5  ;;  %s1617_s17 = scalar_lea.vmem %s1950_s0, %s1431_s12  ;;  %1038 = vmatprep.subr.bf16.mxu1 %v1543_v26  ;;  %v1529_v34 = vld [vmem:[%s1953_s3 + $0x20] sm:$0xff]   ;;  %v1530_v35 = vld [vmem:[%s1953_s3 + $0x28] sm:$0xff]   ;;  %v1531_v38 = vld [vmem:[%s1953_s3 + $0x30] sm:$0xff]   ;;  %vm989_vm1 = vcmask 261120   ;;  %s1850_s8 = scalar_lea.vmem %s1955_s5, %s1431_s12  ;;  %vm1231_vm2 = vcmask 785408  }
  0x10   : > { %619 = vmatprep.subr.bf16.mxu0 %v1450_v6  ;;  %v1479_v11 = vld [vmem:[%s1617_s17 + $0x4] ss:$8 sps:$4 sm:$0xff]   ;;  %1039 = vmatpush1.bf16.msra.mxu1 %v1525_v24  ;;  %v1477_v28 = vld [vmem:[%s1617_s17] ss:$8 sps:$4 sm:$0xff]   ;;  %v1480_v29 = vld [vmem:[%s1617_s17 + $0x14] ss:$8 sps:$4 sm:$0xff]  }
  0x11   : > { %1386 = vmatprep.mubr.msk.bf16.mxu0 %vm564_vm0, %v1479_v11  ;;  %1040 = vmatprep.subr.bf16.mxu1 %v1543_v26  ;;  %v1482_v32 = vld [vmem:[%s1617_s17 + $0x10] ss:$8 sps:$4 sm:$0xff]   ;;  %v1483_v33 = vld [vmem:[%s1617_s17 + $0x24] ss:$8 sps:$4 sm:$0xff]   ;;  %v1485_v36 = vld [vmem:[%s1617_s17 + $0x20] ss:$8 sps:$4 sm:$0xff]  }
  0x12   : > { %v1486_v37 = vld [vmem:[%s1617_s17 + $0x34] ss:$8 sps:$4 sm:$0xff]   ;;  %v1488_v39 = vld [vmem:[%s1617_s17 + $0x30] ss:$8 sps:$4 sm:$0xff]   ;;  %v1489_v40 = vld [vmem:[%s1617_s17 + $0x44] ss:$8 sps:$4 sm:$0xff]  }
  0x13   : > { %620 = vmatpush1.bf16.msra.mxu0 %v1452_v7  ;;  %v1491_v41 = vld [vmem:[%s1617_s17 + $0x40] ss:$8 sps:$4 sm:$0xff]   ;;  %v1492_v42 = vld [vmem:[%s1617_s17 + $0x54] ss:$8 sps:$4 sm:$0xff]   ;;  %v1494_v43 = vld [vmem:[%s1617_s17 + $0x50] ss:$8 sps:$4 sm:$0xff]  }
  0x14   : > { %621 = vmatprep.subr.bf16.mxu0 %v1453_v8  ;;  %1041 = vmatpush1.bf16.msra.mxu1 %v1526_v27  ;;  %v1495_v44 = vld [vmem:[%s1617_s17 + $0x64] ss:$8 sps:$4 sm:$0xff]   ;;  %v1497_v45 = vld [vmem:[%s1617_s17 + $0x60] ss:$8 sps:$4 sm:$0xff]   ;;  %v1498_v46 = vld [vmem:[%s1617_s17 + $0x74] ss:$8 sps:$4 sm:$0xff]  }
  0x15   : > { %1042 = vmatprep.subr.bf16.mxu1 %v1543_v26  ;;  %v1500_v47 = vld [vmem:[%s1617_s17 + $0x70] ss:$8 sps:$4 sm:$0xff]   ;;  %v1501_v48 = vld [vmem:[%s1617_s17 + $0x84] ss:$8 sps:$4 sm:$0xff]   ;;  %v1503_v49 = vld [vmem:[%s1617_s17 + $0x80] ss:$8 sps:$4 sm:$0xff]  }
  0x16   : > { %v1504_v50 = vld [vmem:[%s1617_s17 + $0x94] ss:$8 sps:$4 sm:$0xff]   ;;  %v1506_v51 = vld [vmem:[%s1617_s17 + $0x90] ss:$8 sps:$4 sm:$0xff]   ;;  %v1507_v52 = vld [vmem:[%s1617_s17 + $0xa4] ss:$8 sps:$4 sm:$0xff]  }
  0x17   : > { %622 = vmatpush1.bf16.msra.mxu0 %v1455_v9  ;;  %v1509_v53 = vld [vmem:[%s1617_s17 + $0xa0] ss:$8 sps:$4 sm:$0xff]   ;;  %v1510_v54 = vld [vmem:[%s1617_s17 + $0xb4] ss:$8 sps:$4 sm:$0xff]   ;;  %v1512_v56 = vld [vmem:[%s1617_s17 + $0xb0] ss:$8 sps:$4 sm:$0xff]  }
  0x18   : > { %623 = vmatprep.subr.bf16.mxu0 %v1456_v10  ;;  %1043 = vmatpush1.bf16.msra.mxu1 %v1527_v30  ;;  %v1532_v55 = vld [vmem:[%s1953_s3 + $0x38] sm:$0xff]   ;;  %v1513_v57 = vld [vmem:[%s1617_s17 + $0xc4] ss:$8 sps:$4 sm:$0xff]   ;;  %v1515_v60 = vld [vmem:[%s1617_s17 + $0xc0] ss:$8 sps:$4 sm:$0xff]   ;;  %v292_v5 = vsub.s32 0, %v291_v4 }
  0x19   : > { %1044 = vmatprep.subr.bf16.mxu1 %v1543_v26  ;;  %v1533_v58 = vld [vmem:[%s1953_s3 + $0x40] sm:$0xff]   ;;  %v1534_v59 = vld [vmem:[%s1953_s3 + $0x48] sm:$0xff]   ;;  %v1516_v61 = vld [vmem:[%s1617_s17 + $0xd4] ss:$8 sps:$4 sm:$0xff]   ;;  %v296_v7 = vsub.s32 1, %v291_v4 }
  0x1a   : > { %v1518_v62 = vld [vmem:[%s1617_s17 + $0xd0] ss:$8 sps:$4 sm:$0xff]   ;;  %v1519_v63 = vld [vmem:[%s1617_s17 + $0xe4] ss:$8 sps:$4 sm:$0xff]   ;;  %v1521_v0 = vld [vmem:[%s1617_s17 + $0xe0] ss:$8 sps:$4 sm:$0xff]  }
  0x1b   : > { %624 = vmatpush1.bf16.msra.mxu0 %v1458_v12  ;;  %v1522_v1 = vld [vmem:[%s1617_s17 + $0xf4] ss:$8 sps:$4 sm:$0xff]   ;;  %v1524_v2 = vld [vmem:[%s1617_s17 + $0xf0] ss:$8 sps:$4 sm:$0xff]   ;;  %v288_v6 = vld [vmem:[%s1952_s2] sm:$0x3] }
  0x1c   : > { %625 = vmatprep.subr.bf16.mxu0 %v1459_v13  ;;  %1045 = vmatpush1.bf16.msra.mxu1 %v1528_v31  ;;  %v1755_v8 = vrot.slane %v288_v6, %v292_v5  ;;  %v1757_v9 = vrot.slane %v288_v6, %v296_v7 }
  0x1d   : > { %1046 = vmatprep.subr.bf16.mxu1 %v1543_v26 }
  0x1f   : > { %626 = vmatpush1.bf16.msra.mxu0 %v1461_v14 }
  0x20   : > { %627 = vmatprep.subr.bf16.mxu0 %v1462_v15  ;;  %1047 = vmatpush1.bf16.msra.mxu1 %v1529_v34 }
  0x21   : > { %1048 = vmatprep.subr.bf16.mxu1 %v1543_v26 }
  0x23   : > { %628 = vmatpush1.bf16.msra.mxu0 %v1464_v16 }
  0x24   : > { %629 = vmatprep.subr.bf16.mxu0 %v1465_v17  ;;  %1049 = vmatpush1.bf16.msra.mxu1 %v1530_v35 }
  0x25   : > { %1050 = vmatprep.subr.bf16.mxu1 %v1543_v26 }
  0x27   : > { %630 = vmatpush1.bf16.msra.mxu0 %v1467_v18 }
  0x28   : > { %631 = vmatprep.subr.bf16.mxu0 %v1468_v19  ;;  %1051 = vmatpush1.bf16.msra.mxu1 %v1531_v38 }
  0x29   : > { %1052 = vmatprep.subr.bf16.mxu1 %v1543_v26 }
  0x2b   : > { %632 = vmatpush1.bf16.msra.mxu0 %v1470_v20 }
  0x2c   : > { %633 = vmatprep.subr.bf16.mxu0 %v1471_v21  ;;  %1053 = vmatpush1.bf16.msra.mxu1 %v1532_v55 }
  0x2d   : > { %1054 = vmatprep.subr.bf16.mxu1 %v1543_v26 }
  0x2f   : > { %634 = vmatpush1.bf16.msra.mxu0 %v1473_v22 }
  0x30   : > { %635 = vmatprep.subr.bf16.mxu0 %v1474_v23  ;;  %1055 = vmatpush1.bf16.msra.mxu1 %v1533_v58 }
  0x31   : > { %1056 = vmatprep.subr.bf16.mxu1 %v1543_v26 }
  0x33   : > { %636 = vmatpush1.bf16.msra.mxu0 %v1476_v25 }
  0x34   : > { %1057 = vmatpush1.bf16.msra.mxu1 %v1534_v59 }
  0x36   : > { %646 = vmatmul.mubr.bf16.vlgmr.msra.gmra.mrb[0].mxu0 %v1477_v28 }
  0x37   : > { %1387 = vmatprep.mubr.msk.bf16.mxu0 %vm564_vm0, %v1480_v29 }
  0x3e   : > { %656 = vmatmul.mubr.bf16.gmra.mrb[4].mxu0 %v1482_v32 }
  0x3f   : > { %1388 = vmatprep.mubr.msk.bf16.mxu0 %vm564_vm0, %v1483_v33 }
  0x46   : > { %666 = vmatmul.mubr.bf16.gmra.mrb[8].mxu0 %v1485_v36 }
  0x47   : > { %1389 = vmatprep.mubr.msk.bf16.mxu0 %vm564_vm0, %v1486_v37 }
  0x4e   : > { %676 = vmatmul.mubr.bf16.gmra.mrb[12].mxu0 %v1488_v39 }
  0x4f   : > { %1390 = vmatprep.mubr.msk.bf16.mxu0 %vm564_vm0, %v1489_v40 }
  0x56   : > { %686 = vmatmul.mubr.bf16.gmra.mrb[16].mxu0 %v1491_v41 }
  0x57   : > { %1391 = vmatprep.mubr.msk.bf16.mxu0 %vm564_vm0, %v1492_v42 }
  0x5e   : > { %696 = vmatmul.mubr.bf16.gmra.mrb[20].mxu0 %v1494_v43 }
  0x5f   : > { %1392 = vmatprep.mubr.msk.bf16.mxu0 %vm564_vm0, %v1495_v44 }
  0x66   : > { %706 = vmatmul.mubr.bf16.gmra.mrb[24].mxu0 %v1497_v45 }
  0x67   : > { %1393 = vmatprep.mubr.msk.bf16.mxu0 %vm564_vm0, %v1498_v46 }
  0x6e   : > { %716 = vmatmul.mubr.bf16.gmra.mrb[28].mxu0 %v1500_v47 }
  0x6f   : > { %1394 = vmatprep.mubr.msk.bf16.mxu0 %vm564_vm0, %v1501_v48 }
  0x76   : > { %726 = vmatmul.mubr.bf16.gmra.mrb[32].mxu0 %v1503_v49 }
  0x77   : > { %1395 = vmatprep.mubr.msk.bf16.mxu0 %vm564_vm0, %v1504_v50 }
  0x7e   : > { %736 = vmatmul.mubr.bf16.gmra.mrb[36].mxu0 %v1506_v51 }
  0x7f   : > { %1396 = vmatprep.mubr.msk.bf16.mxu0 %vm564_vm0, %v1507_v52 }
  0x86   : > { %746 = vmatmul.mubr.bf16.gmra.mrb[40].mxu0 %v1509_v53 }
  0x87   : > { %1397 = vmatprep.mubr.msk.bf16.mxu0 %vm564_vm0, %v1510_v54 }
  0x8e   : > { %756 = vmatmul.mubr.bf16.gmra.mrb[44].mxu0 %v1512_v56 }
  0x8f   : > { %1398 = vmatprep.mubr.msk.bf16.mxu0 %vm564_vm0, %v1513_v57 }
  0x96   : > { %766 = vmatmul.mubr.bf16.gmra.mrb[48].mxu0 %v1515_v60 }
  0x97   : > { %1399 = vmatprep.mubr.msk.bf16.mxu0 %vm564_vm0, %v1516_v61 }
  0x9e   : > { %776 = vmatmul.mubr.bf16.gmra.mrb[52].mxu0 %v1518_v62 }
  0x9f   : > { %1400 = vmatprep.mubr.msk.bf16.mxu0 %vm564_vm0, %v1519_v63 }
  0xa6   : > { %786 = vmatmul.mubr.bf16.gmra.mrb[56].mxu0 %v1521_v0 }
  0xa7   : > { %1401 = vmatprep.mubr.msk.bf16.mxu0 %vm564_vm0, %v1522_v1 }
  0xae   : > { %796 = vmatmul.mubr.bf16.gmra.mrb[60].mxu0 %v1524_v2 }
 0x109   : > { %v647_v10 = vpop.f32.mrb[0].mxu0 }
 0x10a   : > { %v648_v11 = vadd.f32 %v647_v10, %v1755_v8  ;;  %v649_v12 = vpop.f32.mrb[1].mxu0 }
 0x10b   : > { %v650_v13 = vadd.f32 %v649_v12, %v1757_v9  ;;  %v651_v14 = vpop.f32.mrb[2].mxu0 }
 0x10c   : > { %v652_v15 = vadd.f32 %v651_v14, %v1755_v8  ;;  %v653_v16 = vpop.f32.mrb[3].mxu0  ;;  %v806_v18 = vmax.f32 %v648_v11, 0.0 }
 0x10d   : > { %v654_v17 = vadd.f32 %v653_v16, %v1757_v9  ;;  %v807_v20 = vmax.f32 %v650_v13, 0.0 }
 0x10e   : > { %v808_v19 = vmax.f32 %v652_v15, 0.0 }
 0x10f   : > { %v809_v21 = vmax.f32 %v654_v17, 0.0 }
 0x110   : > { %v870_v22 = vpack.c.bf16 %v808_v19, %v806_v18 }
 0x111   : > { %v657_v23 = vpop.f32.mrb[4].mxu0  ;;  %v871_v24 = vpack.c.bf16 %v809_v21, %v807_v20 }
 0x112   : > { %v658_v25 = vadd.f32 %v657_v23, %v1755_v8  ;;  %v659_v26 = vpop.f32.mrb[5].mxu0 }
 0x113   : > { %v660_v27 = vadd.f32 %v659_v26, %v1757_v9  ;;  %v661_v28 = vpop.f32.mrb[6].mxu0  ;;  %1413 = vmatprep.mubr.msk.bf16.mxu1 %vm989_vm1, %v871_v24 }
 0x114   : > { %v662_v29 = vadd.f32 %v661_v28, %v1755_v8  ;;  %v663_v30 = vpop.f32.mrb[7].mxu0  ;;  %1071 = vmatmul.mubr.bf16.vlgmr.msra.gmra.mrb[0].mxu1 %v870_v22  ;;  %v810_v32 = vmax.f32 %v658_v25, 0.0 }
 0x115   : > { %v664_v31 = vadd.f32 %v663_v30, %v1757_v9  ;;  %v811_v34 = vmax.f32 %v660_v27, 0.0 }
 0x116   : > { %v812_v33 = vmax.f32 %v662_v29, 0.0 }
 0x117   : > { %v813_v35 = vmax.f32 %v664_v31, 0.0 }
 0x118   : > { %v872_v36 = vpack.c.bf16 %v812_v33, %v810_v32 }
 0x119   : > { %v873_v37 = vpack.c.bf16 %v813_v35, %v811_v34  ;;  %v667_v38 = vpop.f32.mrb[8].mxu0 }
 0x11a   : > { %v668_v39 = vadd.f32 %v667_v38, %v1755_v8  ;;  %v669_v40 = vpop.f32.mrb[9].mxu0 }
 0x11b   : > { %v670_v41 = vadd.f32 %v669_v40, %v1757_v9  ;;  %v671_v42 = vpop.f32.mrb[10].mxu0  ;;  %1414 = vmatprep.mubr.msk.bf16.mxu1 %vm989_vm1, %v873_v37 }
 0x11c   : > { %v672_v43 = vadd.f32 %v671_v42, %v1755_v8  ;;  %v673_v44 = vpop.f32.mrb[11].mxu0  ;;  %1079 = vmatmul.mubr.bf16.gmra.mrb[4].mxu1 %v872_v36  ;;  %v814_v46 = vmax.f32 %v668_v39, 0.0 }
 0x11d   : > { %v674_v45 = vadd.f32 %v673_v44, %v1757_v9  ;;  %v815_v48 = vmax.f32 %v670_v41, 0.0 }
 0x11e   : > { %v816_v47 = vmax.f32 %v672_v43, 0.0 }
 0x11f   : > { %v817_v49 = vmax.f32 %v674_v45, 0.0 }
 0x120   : > { %v874_v50 = vpack.c.bf16 %v816_v47, %v814_v46 }
 0x121   : > { %v875_v51 = vpack.c.bf16 %v817_v49, %v815_v48  ;;  %v677_v52 = vpop.f32.mrb[12].mxu0 }
 0x122   : > { %v678_v53 = vadd.f32 %v677_v52, %v1755_v8  ;;  %v679_v54 = vpop.f32.mrb[13].mxu0 }
 0x123   : > { %v680_v55 = vadd.f32 %v679_v54, %v1757_v9  ;;  %v681_v56 = vpop.f32.mrb[14].mxu0  ;;  %1415 = vmatprep.mubr.msk.bf16.mxu1 %vm989_vm1, %v875_v51 }
 0x124   : > { %v682_v57 = vadd.f32 %v681_v56, %v1755_v8  ;;  %v683_v58 = vpop.f32.mrb[15].mxu0  ;;  %1087 = vmatmul.mubr.bf16.gmra.mrb[8].mxu1 %v874_v50  ;;  %v818_v60 = vmax.f32 %v678_v53, 0.0 }
 0x125   : > { %v684_v59 = vadd.f32 %v683_v58, %v1757_v9  ;;  %v819_v62 = vmax.f32 %v680_v55, 0.0 }
 0x126   : > { %v820_v61 = vmax.f32 %v682_v57, 0.0 }
 0x127   : > { %v821_v63 = vmax.f32 %v684_v59, 0.0 }
 0x128   : > { %v876_v0 = vpack.c.bf16 %v820_v61, %v818_v60 }
 0x129   : > { %v877_v1 = vpack.c.bf16 %v821_v63, %v819_v62  ;;  %v687_v2 = vpop.f32.mrb[16].mxu0 }
 0x12a   : > { %v688_v3 = vadd.f32 %v687_v2, %v1755_v8  ;;  %v689_v4 = vpop.f32.mrb[17].mxu0 }
 0x12b   : > { %v690_v5 = vadd.f32 %v689_v4, %v1757_v9  ;;  %v691_v6 = vpop.f32.mrb[18].mxu0  ;;  %1416 = vmatprep.mubr.msk.bf16.mxu1 %vm989_vm1, %v877_v1 }
 0x12c   : > { %v692_v7 = vadd.f32 %v691_v6, %v1755_v8  ;;  %v693_v10 = vpop.f32.mrb[19].mxu0  ;;  %1095 = vmatmul.mubr.bf16.gmra.mrb[12].mxu1 %v876_v0  ;;  %v822_v12 = vmax.f32 %v688_v3, 0.0 }
 0x12d   : > { %v694_v11 = vadd.f32 %v693_v10, %v1757_v9  ;;  %v823_v14 = vmax.f32 %v690_v5, 0.0 }
 0x12e   : > { %v824_v13 = vmax.f32 %v692_v7, 0.0 }
 0x12f   : > { %v825_v15 = vmax.f32 %v694_v11, 0.0 }
 0x130   : > { %v878_v16 = vpack.c.bf16 %v824_v13, %v822_v12 }
 0x131   : > { %v879_v17 = vpack.c.bf16 %v825_v15, %v823_v14  ;;  %v697_v18 = vpop.f32.mrb[20].mxu0 }
 0x132   : > { %v698_v19 = vadd.f32 %v697_v18, %v1755_v8  ;;  %v699_v20 = vpop.f32.mrb[21].mxu0 }
 0x133   : > { %v700_v21 = vadd.f32 %v699_v20, %v1757_v9  ;;  %v701_v22 = vpop.f32.mrb[22].mxu0  ;;  %1417 = vmatprep.mubr.msk.bf16.mxu1 %vm989_vm1, %v879_v17 }
 0x134   : > { %v702_v23 = vadd.f32 %v701_v22, %v1755_v8  ;;  %v703_v24 = vpop.f32.mrb[23].mxu0  ;;  %1103 = vmatmul.mubr.bf16.gmra.mrb[16].mxu1 %v878_v16  ;;  %v826_v26 = vmax.f32 %v698_v19, 0.0 }
 0x135   : > { %v704_v25 = vadd.f32 %v703_v24, %v1757_v9  ;;  %v827_v28 = vmax.f32 %v700_v21, 0.0 }
 0x136   : > { %v828_v27 = vmax.f32 %v702_v23, 0.0 }
 0x137   : > { %v829_v29 = vmax.f32 %v704_v25, 0.0 }
 0x138   : > { %v880_v30 = vpack.c.bf16 %v828_v27, %v826_v26 }
 0x139   : > { %v881_v31 = vpack.c.bf16 %v829_v29, %v827_v28  ;;  %v707_v32 = vpop.f32.mrb[24].mxu0 }
 0x13a   : > { %v708_v33 = vadd.f32 %v707_v32, %v1755_v8  ;;  %v709_v34 = vpop.f32.mrb[25].mxu0 }
 0x13b   : > { %v710_v35 = vadd.f32 %v709_v34, %v1757_v9  ;;  %v711_v36 = vpop.f32.mrb[26].mxu0  ;;  %1418 = vmatprep.mubr.msk.bf16.mxu1 %vm989_vm1, %v881_v31 }
 0x13c   : > { %v712_v37 = vadd.f32 %v711_v36, %v1755_v8  ;;  %v713_v38 = vpop.f32.mrb[27].mxu0  ;;  %1111 = vmatmul.mubr.bf16.gmra.mrb[20].mxu1 %v880_v30  ;;  %v830_v40 = vmax.f32 %v708_v33, 0.0 }
 0x13d   : > { %v714_v39 = vadd.f32 %v713_v38, %v1757_v9  ;;  %v831_v42 = vmax.f32 %v710_v35, 0.0 }
 0x13e   : > { %v832_v41 = vmax.f32 %v712_v37, 0.0 }
 0x13f   : > { %v833_v43 = vmax.f32 %v714_v39, 0.0 }
 0x140   : > { %v882_v44 = vpack.c.bf16 %v832_v41, %v830_v40 }
 0x141   : > { %v883_v45 = vpack.c.bf16 %v833_v43, %v831_v42  ;;  %v717_v46 = vpop.f32.mrb[28].mxu0 }
 0x142   : > { %v718_v47 = vadd.f32 %v717_v46, %v1755_v8  ;;  %v719_v48 = vpop.f32.mrb[29].mxu0 }
 0x143   : > { %v720_v49 = vadd.f32 %v719_v48, %v1757_v9  ;;  %v721_v50 = vpop.f32.mrb[30].mxu0  ;;  %1419 = vmatprep.mubr.msk.bf16.mxu1 %vm989_vm1, %v883_v45 }
 0x144   : > { %v722_v51 = vadd.f32 %v721_v50, %v1755_v8  ;;  %v723_v52 = vpop.f32.mrb[31].mxu0  ;;  %1119 = vmatmul.mubr.bf16.gmra.mrb[24].mxu1 %v882_v44  ;;  %v834_v54 = vmax.f32 %v718_v47, 0.0 }
 0x145   : > { %v724_v53 = vadd.f32 %v723_v52, %v1757_v9  ;;  %v835_v56 = vmax.f32 %v720_v49, 0.0 }
 0x146   : > { %v836_v55 = vmax.f32 %v722_v51, 0.0 }
 0x147   : > { %v837_v57 = vmax.f32 %v724_v53, 0.0 }
 0x148   : > { %v884_v58 = vpack.c.bf16 %v836_v55, %v834_v54 }
 0x149   : > { %v885_v59 = vpack.c.bf16 %v837_v57, %v835_v56  ;;  %v727_v60 = vpop.f32.mrb[32].mxu0 }
 0x14a   : > { %v728_v61 = vadd.f32 %v727_v60, %v1755_v8  ;;  %v729_v62 = vpop.f32.mrb[33].mxu0 }
 0x14b   : > { %v730_v63 = vadd.f32 %v729_v62, %v1757_v9  ;;  %v731_v0 = vpop.f32.mrb[34].mxu0  ;;  %1420 = vmatprep.mubr.msk.bf16.mxu1 %vm989_vm1, %v885_v59 }
 0x14c   : > { %v732_v1 = vadd.f32 %v731_v0, %v1755_v8  ;;  %v733_v2 = vpop.f32.mrb[35].mxu0  ;;  %1127 = vmatmul.mubr.bf16.gmra.mrb[28].mxu1 %v884_v58  ;;  %v838_v4 = vmax.f32 %v728_v61, 0.0 }
 0x14d   : > { %v734_v3 = vadd.f32 %v733_v2, %v1757_v9  ;;  %v839_v6 = vmax.f32 %v730_v63, 0.0 }
 0x14e   : > { %v840_v5 = vmax.f32 %v732_v1, 0.0 }
 0x14f   : > { %v841_v7 = vmax.f32 %v734_v3, 0.0 }
 0x150   : > { %v886_v10 = vpack.c.bf16 %v840_v5, %v838_v4 }
 0x151   : > { %v887_v11 = vpack.c.bf16 %v841_v7, %v839_v6  ;;  %v737_v12 = vpop.f32.mrb[36].mxu0 }
 0x152   : > { %v738_v13 = vadd.f32 %v737_v12, %v1755_v8  ;;  %v739_v14 = vpop.f32.mrb[37].mxu0 }
 0x153   : > { %v740_v15 = vadd.f32 %v739_v14, %v1757_v9  ;;  %v741_v16 = vpop.f32.mrb[38].mxu0  ;;  %1421 = vmatprep.mubr.msk.bf16.mxu1 %vm989_vm1, %v887_v11 }
 0x154   : > { %v742_v17 = vadd.f32 %v741_v16, %v1755_v8  ;;  %v743_v18 = vpop.f32.mrb[39].mxu0  ;;  %1135 = vmatmul.mubr.bf16.gmra.mrb[32].mxu1 %v886_v10  ;;  %v842_v20 = vmax.f32 %v738_v13, 0.0 }
 0x155   : > { %v744_v19 = vadd.f32 %v743_v18, %v1757_v9  ;;  %v843_v22 = vmax.f32 %v740_v15, 0.0 }
 0x156   : > { %v844_v21 = vmax.f32 %v742_v17, 0.0 }
 0x157   : > { %v845_v23 = vmax.f32 %v744_v19, 0.0 }
 0x158   : > { %v888_v24 = vpack.c.bf16 %v844_v21, %v842_v20 }
 0x159   : > { %v889_v25 = vpack.c.bf16 %v845_v23, %v843_v22  ;;  %v747_v26 = vpop.f32.mrb[40].mxu0 }
 0x15a   : > { %v748_v27 = vadd.f32 %v747_v26, %v1755_v8  ;;  %v749_v28 = vpop.f32.mrb[41].mxu0 }
 0x15b   : > { %v750_v29 = vadd.f32 %v749_v28, %v1757_v9  ;;  %v751_v30 = vpop.f32.mrb[42].mxu0  ;;  %1422 = vmatprep.mubr.msk.bf16.mxu1 %vm989_vm1, %v889_v25 }
 0x15c   : > { %v752_v31 = vadd.f32 %v751_v30, %v1755_v8  ;;  %v753_v32 = vpop.f32.mrb[43].mxu0  ;;  %1143 = vmatmul.mubr.bf16.gmra.mrb[36].mxu1 %v888_v24  ;;  %v846_v34 = vmax.f32 %v748_v27, 0.0 }
 0x15d   : > { %v754_v33 = vadd.f32 %v753_v32, %v1757_v9  ;;  %v847_v36 = vmax.f32 %v750_v29, 0.0 }
 0x15e   : > { %v848_v35 = vmax.f32 %v752_v31, 0.0 }
 0x15f   : > { %v849_v37 = vmax.f32 %v754_v33, 0.0 }
 0x160   : > { %v890_v38 = vpack.c.bf16 %v848_v35, %v846_v34 }
 0x161   : > { %v891_v39 = vpack.c.bf16 %v849_v37, %v847_v36  ;;  %v757_v40 = vpop.f32.mrb[44].mxu0 }
 0x162   : > { %v758_v41 = vadd.f32 %v757_v40, %v1755_v8  ;;  %v759_v42 = vpop.f32.mrb[45].mxu0 }
 0x163   : > { %v760_v43 = vadd.f32 %v759_v42, %v1757_v9  ;;  %v761_v44 = vpop.f32.mrb[46].mxu0  ;;  %1423 = vmatprep.mubr.msk.bf16.mxu1 %vm989_vm1, %v891_v39 }
 0x164   : > { %v762_v45 = vadd.f32 %v761_v44, %v1755_v8  ;;  %v763_v46 = vpop.f32.mrb[47].mxu0  ;;  %1151 = vmatmul.mubr.bf16.gmra.mrb[40].mxu1 %v890_v38  ;;  %v850_v48 = vmax.f32 %v758_v41, 0.0 }
 0x165   : > { %v764_v47 = vadd.f32 %v763_v46, %v1757_v9  ;;  %v851_v50 = vmax.f32 %v760_v43, 0.0 }
 0x166   : > { %v852_v49 = vmax.f32 %v762_v45, 0.0 }
 0x167   : > { %v853_v51 = vmax.f32 %v764_v47, 0.0 }
 0x168   : > { %v892_v52 = vpack.c.bf16 %v852_v49, %v850_v48  ;;  %v1842_v48 = vld [vmem:[%s1954_s4] ss:$0 sm:$0xff] }
 0x169   : > { %v893_v53 = vpack.c.bf16 %v853_v51, %v851_v50  ;;  %v767_v54 = vpop.f32.mrb[48].mxu0 }
 0x16a   : > { %v768_v55 = vadd.f32 %v767_v54, %v1755_v8  ;;  %v769_v56 = vpop.f32.mrb[49].mxu0 }
 0x16b   : > { %v770_v57 = vadd.f32 %v769_v56, %v1757_v9  ;;  %v771_v58 = vpop.f32.mrb[50].mxu0  ;;  %1424 = vmatprep.mubr.msk.bf16.mxu1 %vm989_vm1, %v893_v53 }
 0x16c   : > { %v772_v59 = vadd.f32 %v771_v58, %v1755_v8  ;;  %v773_v60 = vpop.f32.mrb[51].mxu0  ;;  %1159 = vmatmul.mubr.bf16.gmra.mrb[44].mxu1 %v892_v52  ;;  %v854_v62 = vmax.f32 %v768_v55, 0.0 }
 0x16d   : > { %v774_v61 = vadd.f32 %v773_v60, %v1757_v9  ;;  %v855_v0 = vmax.f32 %v770_v57, 0.0 }
 0x16e   : > { %v856_v63 = vmax.f32 %v772_v59, 0.0 }
 0x16f   : > { %v857_v1 = vmax.f32 %v774_v61, 0.0 }
 0x170   : > { %v894_v2 = vpack.c.bf16 %v856_v63, %v854_v62 }
 0x171   : > { %v895_v3 = vpack.c.bf16 %v857_v1, %v855_v0  ;;  %v777_v4 = vpop.f32.mrb[52].mxu0 }
 0x172   : > { %v778_v5 = vadd.f32 %v777_v4, %v1755_v8  ;;  %v779_v6 = vpop.f32.mrb[53].mxu0 }
 0x173   : > { %v780_v7 = vadd.f32 %v779_v6, %v1757_v9  ;;  %v781_v10 = vpop.f32.mrb[54].mxu0  ;;  %1425 = vmatprep.mubr.msk.bf16.mxu1 %vm989_vm1, %v895_v3 }
 0x174   : > { %v782_v11 = vadd.f32 %v781_v10, %v1755_v8  ;;  %v783_v12 = vpop.f32.mrb[55].mxu0  ;;  %1167 = vmatmul.mubr.bf16.gmra.mrb[48].mxu1 %v894_v2  ;;  %v858_v14 = vmax.f32 %v778_v5, 0.0 }
 0x175   : > { %v784_v13 = vadd.f32 %v783_v12, %v1757_v9  ;;  %v859_v16 = vmax.f32 %v780_v7, 0.0 }
 0x176   : > { %v860_v15 = vmax.f32 %v782_v11, 0.0 }
 0x177   : > { %v861_v17 = vmax.f32 %v784_v13, 0.0 }
 0x178   : > { %v896_v18 = vpack.c.bf16 %v860_v15, %v858_v14 }
 0x179   : > { %v897_v19 = vpack.c.bf16 %v861_v17, %v859_v16  ;;  %v787_v20 = vpop.f32.mrb[56].mxu0 }
 0x17a   : > { %v788_v21 = vadd.f32 %v787_v20, %v1755_v8  ;;  %v789_v22 = vpop.f32.mrb[57].mxu0 }
 0x17b   : > { %v790_v23 = vadd.f32 %v789_v22, %v1757_v9  ;;  %v791_v24 = vpop.f32.mrb[58].mxu0  ;;  %1426 = vmatprep.mubr.msk.bf16.mxu1 %vm989_vm1, %v897_v19 }
 0x17c   : > { %v792_v25 = vadd.f32 %v791_v24, %v1755_v8  ;;  %v793_v26 = vpop.f32.mrb[59].mxu0  ;;  %1175 = vmatmul.mubr.bf16.gmra.mrb[52].mxu1 %v896_v18  ;;  %v862_v28 = vmax.f32 %v788_v21, 0.0 }
 0x17d   : > { %v794_v27 = vadd.f32 %v793_v26, %v1757_v9  ;;  %v863_v30 = vmax.f32 %v790_v23, 0.0 }
 0x17e   : > { %v864_v29 = vmax.f32 %v792_v25, 0.0 }
 0x17f   : > { %v865_v31 = vmax.f32 %v794_v27, 0.0 }
 0x180   : > { %v898_v32 = vpack.c.bf16 %v864_v29, %v862_v28 }
 0x181   : > { %v899_v33 = vpack.c.bf16 %v865_v31, %v863_v30  ;;  %v797_v34 = vpop.f32.mrb[60].mxu0 }
 0x182   : > { %v798_v35 = vadd.f32 %v797_v34, %v1755_v8  ;;  %v799_v36 = vpop.f32.mrb[61].mxu0 }
 0x183   : > { %v800_v37 = vadd.f32 %v799_v36, %v1757_v9  ;;  %v801_v38 = vpop.f32.mrb[62].mxu0  ;;  %1427 = vmatprep.mubr.msk.bf16.mxu1 %vm989_vm1, %v899_v33 }
 0x184   : > { %v802_v39 = vadd.f32 %v801_v38, %v1755_v8  ;;  %v803_v40 = vpop.f32.mrb[63].mxu0  ;;  %1183 = vmatmul.mubr.bf16.gmra.mrb[56].mxu1 %v898_v32  ;;  %v866_v42 = vmax.f32 %v798_v35, 0.0 }
 0x185   : > { %v804_v41 = vadd.f32 %v803_v40, %v1757_v9  ;;  %v867_v44 = vmax.f32 %v800_v37, 0.0 }
 0x186   : > { %v868_v43 = vmax.f32 %v802_v39, 0.0 }
 0x187   : > { %v869_v45 = vmax.f32 %v804_v41, 0.0 }
 0x188   : > { %v900_v46 = vpack.c.bf16 %v868_v43, %v866_v42 }
 0x189   : > { %v901_v47 = vpack.c.bf16 %v869_v45, %v867_v44 }
 0x18b   : > { %1428 = vmatprep.mubr.msk.bf16.mxu1 %vm989_vm1, %v901_v47 }
 0x18c   : > { %1191 = vmatmul.mubr.bf16.gmra.mrb[60].mxu1 %v900_v46 }
 0x1e7   : > { %v1072_v8 = vpop.f32.mrb[0].mxu1 }
 0x1e8   : > { %v1073_v49 = vadd.f32 %v1842_v48, %v1072_v8  ;;  %v1074_v50 = vpop.f32.mrb[1].mxu1 }
 0x1e9   : > { %v1075_v9 = vpop.f32.mrb[2].mxu1 }
 0x1ea   : > { %v1199_v51 = vmax.f32 %v1073_v49, 0.0  ;;  %v1076_v52 = vadd.f32 %v1842_v48, %v1075_v9  ;;  %v1077_v53 = vpop.f32.mrb[3].mxu1 }
 0x1ec   : > { %1232 = vst.msk [vmem:[%s1850_s8] sm:$0xff] %vm1231_vm2, %v1199_v51  ;;  %v1200_v54 = vmax.f32 %v1076_v52, 0.0 }
 0x1ee   : > { %1233 = vst.msk [vmem:[%s1850_s8 + $0x8] sm:$0xff] %vm1231_vm2, %v1200_v54 }
 0x1ef   : > { %v1080_v55 = vpop.f32.mrb[4].mxu1 }
 0x1f0   : > { %v1081_v56 = vadd.f32 %v1842_v48, %v1080_v55  ;;  %v1082_v57 = vpop.f32.mrb[5].mxu1 }
 0x1f1   : > { %v1083_v58 = vpop.f32.mrb[6].mxu1 }
 0x1f2   : > { %v1201_v59 = vmax.f32 %v1081_v56, 0.0  ;;  %v1084_v60 = vadd.f32 %v1842_v48, %v1083_v58  ;;  %v1085_v61 = vpop.f32.mrb[7].mxu1 }
 0x1f4   : > { %1234 = vst.msk [vmem:[%s1850_s8 + $0x10] sm:$0xff] %vm1231_vm2, %v1201_v59  ;;  %v1202_v62 = vmax.f32 %v1084_v60, 0.0 }
 0x1f6   : > { %1235 = vst.msk [vmem:[%s1850_s8 + $0x18] sm:$0xff] %vm1231_vm2, %v1202_v62 }
 0x1f7   : > { %v1088_v63 = vpop.f32.mrb[8].mxu1 }
 0x1f8   : > { %v1089_v0 = vadd.f32 %v1842_v48, %v1088_v63  ;;  %v1090_v1 = vpop.f32.mrb[9].mxu1 }
 0x1f9   : > { %v1091_v2 = vpop.f32.mrb[10].mxu1 }
 0x1fa   : > { %v1203_v3 = vmax.f32 %v1089_v0, 0.0  ;;  %v1092_v4 = vadd.f32 %v1842_v48, %v1091_v2  ;;  %v1093_v5 = vpop.f32.mrb[11].mxu1 }
 0x1fc   : > { %1236 = vst.msk [vmem:[%s1850_s8 + $0x20] sm:$0xff] %vm1231_vm2, %v1203_v3  ;;  %v1204_v6 = vmax.f32 %v1092_v4, 0.0 }
 0x1fe   : > { %1237 = vst.msk [vmem:[%s1850_s8 + $0x28] sm:$0xff] %vm1231_vm2, %v1204_v6 }
 0x1ff   : > { %v1096_v7 = vpop.f32.mrb[12].mxu1 }
 0x200   : > { %v1097_v10 = vadd.f32 %v1842_v48, %v1096_v7  ;;  %v1098_v11 = vpop.f32.mrb[13].mxu1 }
 0x201   : > { %v1099_v12 = vpop.f32.mrb[14].mxu1 }
 0x202   : > { %v1205_v13 = vmax.f32 %v1097_v10, 0.0  ;;  %v1100_v14 = vadd.f32 %v1842_v48, %v1099_v12  ;;  %v1101_v15 = vpop.f32.mrb[15].mxu1 }
 0x204   : > { %1238 = vst.msk [vmem:[%s1850_s8 + $0x30] sm:$0xff] %vm1231_vm2, %v1205_v13  ;;  %v1206_v16 = vmax.f32 %v1100_v14, 0.0 }
 0x206   : > { %1239 = vst.msk [vmem:[%s1850_s8 + $0x38] sm:$0xff] %vm1231_vm2, %v1206_v16 }
 0x207   : > { %v1104_v17 = vpop.f32.mrb[16].mxu1 }
 0x208   : > { %v1105_v18 = vadd.f32 %v1842_v48, %v1104_v17  ;;  %v1106_v19 = vpop.f32.mrb[17].mxu1 }
 0x209   : > { %v1107_v20 = vpop.f32.mrb[18].mxu1 }
 0x20a   : > { %v1207_v21 = vmax.f32 %v1105_v18, 0.0  ;;  %v1108_v22 = vadd.f32 %v1842_v48, %v1107_v20  ;;  %v1109_v23 = vpop.f32.mrb[19].mxu1 }
 0x20c   : > { %1240 = vst.msk [vmem:[%s1850_s8 + $0x40] sm:$0xff] %vm1231_vm2, %v1207_v21  ;;  %v1208_v24 = vmax.f32 %v1108_v22, 0.0 }
 0x20e   : > { %1241 = vst.msk [vmem:[%s1850_s8 + $0x48] sm:$0xff] %vm1231_vm2, %v1208_v24 }
 0x20f   : > { %v1112_v25 = vpop.f32.mrb[20].mxu1 }
 0x210   : > { %v1113_v26 = vadd.f32 %v1842_v48, %v1112_v25  ;;  %v1114_v27 = vpop.f32.mrb[21].mxu1 }
 0x211   : > { %v1115_v28 = vpop.f32.mrb[22].mxu1 }
 0x212   : > { %v1209_v29 = vmax.f32 %v1113_v26, 0.0  ;;  %v1116_v30 = vadd.f32 %v1842_v48, %v1115_v28  ;;  %v1117_v31 = vpop.f32.mrb[23].mxu1 }
 0x214   : > { %1242 = vst.msk [vmem:[%s1850_s8 + $0x50] sm:$0xff] %vm1231_vm2, %v1209_v29  ;;  %v1210_v32 = vmax.f32 %v1116_v30, 0.0 }
 0x216   : > { %1243 = vst.msk [vmem:[%s1850_s8 + $0x58] sm:$0xff] %vm1231_vm2, %v1210_v32 }
 0x217   : > { %v1120_v33 = vpop.f32.mrb[24].mxu1 }
 0x218   : > { %v1121_v34 = vadd.f32 %v1842_v48, %v1120_v33  ;;  %v1122_v35 = vpop.f32.mrb[25].mxu1 }
 0x219   : > { %v1123_v36 = vpop.f32.mrb[26].mxu1 }
 0x21a   : > { %v1211_v37 = vmax.f32 %v1121_v34, 0.0  ;;  %v1124_v38 = vadd.f32 %v1842_v48, %v1123_v36  ;;  %v1125_v39 = vpop.f32.mrb[27].mxu1 }
 0x21c   : > { %1244 = vst.msk [vmem:[%s1850_s8 + $0x60] sm:$0xff] %vm1231_vm2, %v1211_v37  ;;  %v1212_v40 = vmax.f32 %v1124_v38, 0.0 }
 0x21e   : > { %1245 = vst.msk [vmem:[%s1850_s8 + $0x68] sm:$0xff] %vm1231_vm2, %v1212_v40 }
 0x21f   : > { %v1128_v41 = vpop.f32.mrb[28].mxu1 }
 0x220   : > { %v1129_v42 = vadd.f32 %v1842_v48, %v1128_v41  ;;  %v1130_v43 = vpop.f32.mrb[29].mxu1 }
 0x221   : > { %v1131_v44 = vpop.f32.mrb[30].mxu1 }
 0x222   : > { %v1213_v45 = vmax.f32 %v1129_v42, 0.0  ;;  %v1132_v46 = vadd.f32 %v1842_v48, %v1131_v44  ;;  %v1133_v47 = vpop.f32.mrb[31].mxu1 }
 0x224   : > { %1246 = vst.msk [vmem:[%s1850_s8 + $0x70] sm:$0xff] %vm1231_vm2, %v1213_v45  ;;  %v1214_v8 = vmax.f32 %v1132_v46, 0.0 }
 0x226   : > { %1247 = vst.msk [vmem:[%s1850_s8 + $0x78] sm:$0xff] %vm1231_vm2, %v1214_v8 }
 0x227   : > { %v1136_v49 = vpop.f32.mrb[32].mxu1 }
 0x228   : > { %v1137_v50 = vadd.f32 %v1842_v48, %v1136_v49  ;;  %v1138_v9 = vpop.f32.mrb[33].mxu1 }
 0x229   : > { %v1139_v51 = vpop.f32.mrb[34].mxu1 }
 0x22a   : > { %v1215_v52 = vmax.f32 %v1137_v50, 0.0  ;;  %v1140_v53 = vadd.f32 %v1842_v48, %v1139_v51  ;;  %v1141_v54 = vpop.f32.mrb[35].mxu1 }
 0x22c   : > { %1248 = vst.msk [vmem:[%s1850_s8 + $0x80] sm:$0xff] %vm1231_vm2, %v1215_v52  ;;  %v1216_v55 = vmax.f32 %v1140_v53, 0.0 }
 0x22e   : > { %1249 = vst.msk [vmem:[%s1850_s8 + $0x88] sm:$0xff] %vm1231_vm2, %v1216_v55 }
 0x22f   : > { %v1144_v56 = vpop.f32.mrb[36].mxu1 }
 0x230   : > { %v1145_v57 = vadd.f32 %v1842_v48, %v1144_v56  ;;  %v1146_v58 = vpop.f32.mrb[37].mxu1 }
 0x231   : > { %v1147_v59 = vpop.f32.mrb[38].mxu1 }
 0x232   : > { %v1217_v60 = vmax.f32 %v1145_v57, 0.0  ;;  %v1148_v61 = vadd.f32 %v1842_v48, %v1147_v59  ;;  %v1149_v62 = vpop.f32.mrb[39].mxu1 }
 0x234   : > { %1250 = vst.msk [vmem:[%s1850_s8 + $0x90] sm:$0xff] %vm1231_vm2, %v1217_v60  ;;  %v1218_v63 = vmax.f32 %v1148_v61, 0.0 }
 0x236   : > { %1251 = vst.msk [vmem:[%s1850_s8 + $0x98] sm:$0xff] %vm1231_vm2, %v1218_v63 }
 0x237   : > { %v1152_v0 = vpop.f32.mrb[40].mxu1 }
 0x238   : > { %v1153_v1 = vadd.f32 %v1842_v48, %v1152_v0  ;;  %v1154_v2 = vpop.f32.mrb[41].mxu1 }
 0x239   : > { %v1155_v3 = vpop.f32.mrb[42].mxu1 }
 0x23a   : > { %v1219_v4 = vmax.f32 %v1153_v1, 0.0  ;;  %v1156_v5 = vadd.f32 %v1842_v48, %v1155_v3  ;;  %v1157_v6 = vpop.f32.mrb[43].mxu1 }
 0x23c   : > { %1252 = vst.msk [vmem:[%s1850_s8 + $0xa0] sm:$0xff] %vm1231_vm2, %v1219_v4  ;;  %v1220_v7 = vmax.f32 %v1156_v5, 0.0 }
 0x23e   : > { %1253 = vst.msk [vmem:[%s1850_s8 + $0xa8] sm:$0xff] %vm1231_vm2, %v1220_v7 }
 0x23f   : > { %v1160_v10 = vpop.f32.mrb[44].mxu1 }
 0x240   : > { %v1161_v11 = vadd.f32 %v1842_v48, %v1160_v10  ;;  %v1162_v12 = vpop.f32.mrb[45].mxu1 }
 0x241   : > { %v1163_v13 = vpop.f32.mrb[46].mxu1 }
 0x242   : > { %v1221_v14 = vmax.f32 %v1161_v11, 0.0  ;;  %v1164_v15 = vadd.f32 %v1842_v48, %v1163_v13  ;;  %v1165_v16 = vpop.f32.mrb[47].mxu1 }
 0x244   : > { %1254 = vst.msk [vmem:[%s1850_s8 + $0xb0] sm:$0xff] %vm1231_vm2, %v1221_v14  ;;  %v1222_v17 = vmax.f32 %v1164_v15, 0.0 }
 0x246   : > { %1255 = vst.msk [vmem:[%s1850_s8 + $0xb8] sm:$0xff] %vm1231_vm2, %v1222_v17 }
 0x247   : > { %v1168_v18 = vpop.f32.mrb[48].mxu1 }
 0x248   : > { %v1169_v19 = vadd.f32 %v1842_v48, %v1168_v18  ;;  %v1170_v20 = vpop.f32.mrb[49].mxu1 }
 0x249   : > { %v1171_v21 = vpop.f32.mrb[50].mxu1 }
 0x24a   : > { %v1223_v22 = vmax.f32 %v1169_v19, 0.0  ;;  %v1172_v23 = vadd.f32 %v1842_v48, %v1171_v21  ;;  %v1173_v24 = vpop.f32.mrb[51].mxu1 }
 0x24c   : > { %1256 = vst.msk [vmem:[%s1850_s8 + $0xc0] sm:$0xff] %vm1231_vm2, %v1223_v22  ;;  %v1224_v25 = vmax.f32 %v1172_v23, 0.0 }
 0x24e   : > { %1257 = vst.msk [vmem:[%s1850_s8 + $0xc8] sm:$0xff] %vm1231_vm2, %v1224_v25 }
 0x24f   : > { %v1176_v26 = vpop.f32.mrb[52].mxu1 }
 0x250   : > { %v1177_v27 = vadd.f32 %v1842_v48, %v1176_v26  ;;  %v1178_v28 = vpop.f32.mrb[53].mxu1 }
 0x251   : > { %v1179_v29 = vpop.f32.mrb[54].mxu1 }
 0x252   : > { %v1225_v30 = vmax.f32 %v1177_v27, 0.0  ;;  %v1180_v31 = vadd.f32 %v1842_v48, %v1179_v29  ;;  %v1181_v32 = vpop.f32.mrb[55].mxu1 }
 0x254   : > { %1258 = vst.msk [vmem:[%s1850_s8 + $0xd0] sm:$0xff] %vm1231_vm2, %v1225_v30  ;;  %v1226_v33 = vmax.f32 %v1180_v31, 0.0 }
 0x256   : > { %1259 = vst.msk [vmem:[%s1850_s8 + $0xd8] sm:$0xff] %vm1231_vm2, %v1226_v33 }
 0x257   : > { %v1184_v34 = vpop.f32.mrb[56].mxu1 }
 0x258   : > { %v1185_v35 = vadd.f32 %v1842_v48, %v1184_v34  ;;  %v1186_v36 = vpop.f32.mrb[57].mxu1 }
 0x259   : > { %v1187_v37 = vpop.f32.mrb[58].mxu1 }
 0x25a   : > { %v1227_v38 = vmax.f32 %v1185_v35, 0.0  ;;  %v1188_v39 = vadd.f32 %v1842_v48, %v1187_v37  ;;  %v1189_v40 = vpop.f32.mrb[59].mxu1 }
 0x25c   : > { %1260 = vst.msk [vmem:[%s1850_s8 + $0xe0] sm:$0xff] %vm1231_vm2, %v1227_v38  ;;  %v1228_v41 = vmax.f32 %v1188_v39, 0.0 }
 0x25e   : > { %1261 = vst.msk [vmem:[%s1850_s8 + $0xe8] sm:$0xff] %vm1231_vm2, %v1228_v41 }
 0x25f   : > { %v1192_v42 = vpop.f32.mrb[60].mxu1 }
 0x260   : > { %v1193_v43 = vadd.f32 %v1842_v48, %v1192_v42  ;;  %v1194_v44 = vpop.f32.mrb[61].mxu1 }
 0x261   : > { %v1195_v45 = vpop.f32.mrb[62].mxu1 }
 0x262   : > { %v1229_v46 = vmax.f32 %v1193_v43, 0.0  ;;  %v1196_v47 = vadd.f32 %v1842_v48, %v1195_v45  ;;  %v1197_v8 = vpop.f32.mrb[63].mxu1 }
 0x264   : > { %1262 = vst.msk [vmem:[%s1850_s8 + $0xf0] sm:$0xff] %vm1231_vm2, %v1229_v46  ;;  %v1230_v49 = vmax.f32 %v1196_v47, 0.0 }
 0x266   : > { %1263 = vst.msk [vmem:[%s1850_s8 + $0xf8] sm:$0xff] %vm1231_vm2, %v1230_v49 }
 0x267 PF: > { %s15_s18 = sadd.s32 1, %s1541_s18  }
 0x268   : > { %p12_p4 = scmp.ge.s32.totalorder %s15_s18, 4  }
 0x26a   :  { %14 = sbr.rel (!%p12_p4) target bundleno = 1 (0x1), region = 70 }

// kernel: shared_net_forward.10
= control target key start
LH: loop header
LB: loop body
LE: loop exit
PB: predicated region body
PF: predicated region fallthrough
CT: control target
= control target key end

     0   :  { %s659_s21 = smov 0   ;;  %s784_s0 = inlined_call_operand.vmem [shape: f32[2,9,8,96], index: 0, kind: input, shape index: {}]   ;;  %s785_s1 = inlined_call_operand.vmem [shape: f32[2,9,8,96], index: 1, kind: input, shape index: {}]   ;;  %s786_s2 = inlined_call_operand.vmem [shape: f32[2,9,8,96], index: 2, kind: input, shape index: {}]   ;;  %s787_s3 = inlined_call_operand.vmem [shape: f32[2,9,8,96], index: 3, kind: input, shape index: {}]   ;;  %s788_s4 = inlined_call_operand.vmem [shape: f32[2,9,8,96], index: 4, kind: input, shape index: {}]   ;;  %s789_s5 = inlined_call_operand.vmem [shape: f32[2,9,8,96], index: 5, kind: input, shape index: {}]   ;;  %s790_s6 = inlined_call_operand.vmem [shape: f32[2,8,8,96], index: 6, kind: output, shape index: {}]  }
   0x1 LB: > { %s591_s22 = sadd.s32 4294967295, %s622_s21   ;;  %p595_p0 = scmp.ge.s32.totalorder %s622_s21, 1  ;;  %s622_s21 = sphi %s659_s21, %s16_s21  }
   0x2   : > { %p262_p1 = scmp.lt.s32.totalorder %s622_s21, 3 }
   0x4   : > { %p263_p2 = pnand %p595_p0, %p262_p1 }
   0x5   : > { %p317_p3 = scmp.lt.s32.totalorder (!%p263_p2), %s591_s22, 1  ;;  %vm467_vm0 = vcmask (!%p263_p2), 785408  }
   0x6   : > { %266 = sbr.rel (%p263_p2) target bundleno = 47 (0x2f), region = 44 }
   0xd   : > { %s792_s22 = smov (!%p317_p3, %s591_s22), 1 }
   0xe   : > { %s670_s23 = smul.u32 72, %s792_s22  ;;  %s606_s18 = sshll.u32 %s792_s22, 6 }
   0xf   : > { %s749_s22 = scalar_lea.vmem %s790_s6, %s606_s18 }
  0x10   : > { %s676_s26 = scalar_lea.vmem %s784_s0, %s670_s23  ;;  %s682_s29 = scalar_lea.vmem %s785_s1, %s670_s23 }
  0x11   : > { %s688_s8 = scalar_lea.vmem %s786_s2, %s670_s23  ;;  %v352_v0 = vld [vmem:[%s676_s26] sm:$0xff]  ;;  %v353_v1 = vld [vmem:[%s676_s26 + $0x8] sm:$0xff]  ;;  %v354_v2 = vld [vmem:[%s676_s26 + $0x10] sm:$0xff]  ;;  %s697_s11 = scalar_lea.vmem %s787_s3, %s670_s23 }
  0x12   : > { %v361_v3 = vld [vmem:[%s682_s29] sm:$0xff]  ;;  %v362_v4 = vld [vmem:[%s682_s29 + $0x8] sm:$0xff]  ;;  %v363_v5 = vld [vmem:[%s682_s29 + $0x10] sm:$0xff]  ;;  %s711_s14 = scalar_lea.vmem %s788_s4, %s670_s23  ;;  %s721_s17 = scalar_lea.vmem %s789_s5, %s670_s23 }
  0x13   : > { %v403_v6 = vmax.f32 %v352_v0, %v361_v3  ;;  %v404_v7 = vmax.f32 %v353_v1, %v362_v4  ;;  %v355_v8 = vld [vmem:[%s676_s26 + $0x18] sm:$0xff]  ;;  %v369_v9 = vld [vmem:[%s688_s8] sm:$0xff]  ;;  %v370_v10 = vld [vmem:[%s688_s8 + $0x8] sm:$0xff]  ;;  %v405_v11 = vmax.f32 %v354_v2, %v363_v5 }
  0x14   : > { %v371_v12 = vld [vmem:[%s688_s8 + $0x10] sm:$0xff]  ;;  %v378_v13 = vld [vmem:[%s697_s11] sm:$0xff]  ;;  %v379_v16 = vld [vmem:[%s697_s11 + $0x8] sm:$0xff] }
  0x15   : > { %v411_v14 = vmax.f32 %v403_v6, %v353_v1  ;;  %v412_v15 = vmax.f32 %v404_v7, %v354_v2  ;;  %v413_v17 = vmax.f32 %v405_v11, %v355_v8  ;;  %v356_v18 = vld [vmem:[%s676_s26 + $0x20] sm:$0xff]  ;;  %v364_v19 = vld [vmem:[%s682_s29 + $0x18] sm:$0xff]  ;;  %v380_v22 = vld [vmem:[%s697_s11 + $0x10] sm:$0xff] }
  0x16   : > { %v406_v23 = vmax.f32 %v355_v8, %v364_v19  ;;  %v372_v25 = vld [vmem:[%s688_s8 + $0x18] sm:$0xff]  ;;  %v365_v26 = vld [vmem:[%s682_s29 + $0x20] sm:$0xff]  ;;  %v387_v28 = vld [vmem:[%s711_s14 + $0x8] sm:$0xff] }
  0x17   : > { %v419_v20 = vmax.f32 %v411_v14, %v369_v9  ;;  %v420_v21 = vmax.f32 %v412_v15, %v370_v10  ;;  %v421_v24 = vmax.f32 %v413_v17, %v371_v12  ;;  %v386_v27 = vld [vmem:[%s711_s14] sm:$0xff]  ;;  %v357_v32 = vld [vmem:[%s676_s26 + $0x28] sm:$0xff]  ;;  %v407_v33 = vmax.f32 %v356_v18, %v365_v26  ;;  %v381_v36 = vld [vmem:[%s697_s11 + $0x18] sm:$0xff] }
  0x18   : > { %v414_v31 = vmax.f32 %v406_v23, %v356_v18  ;;  %v373_v35 = vld [vmem:[%s688_s8 + $0x20] sm:$0xff]  ;;  %v366_v37 = vld [vmem:[%s682_s29 + $0x28] sm:$0xff]  ;;  %v388_v41 = vld [vmem:[%s711_s14 + $0x10] sm:$0xff] }
  0x19   : > { %v427_v29 = vmax.f32 %v419_v20, %v378_v13  ;;  %v428_v30 = vmax.f32 %v420_v21, %v379_v16  ;;  %v429_v34 = vmax.f32 %v421_v24, %v380_v22  ;;  %v395_v38 = vld [vmem:[%s721_s17] sm:$0xff]  ;;  %v415_v43 = vmax.f32 %v407_v33, %v357_v32  ;;  %v358_v44 = vld [vmem:[%s676_s26 + $0x30] sm:$0xff]  ;;  %v396_v45 = vld [vmem:[%s721_s17 + $0x8] sm:$0xff] }
  0x1a   : > { %v422_v42 = vmax.f32 %v414_v31, %v372_v25  ;;  %v382_v47 = vld [vmem:[%s697_s11 + $0x20] sm:$0xff]  ;;  %v408_v48 = vmax.f32 %v357_v32, %v366_v37  ;;  %v367_v49 = vld [vmem:[%s682_s29 + $0x30] sm:$0xff]  ;;  %v374_v55 = vld [vmem:[%s688_s8 + $0x28] sm:$0xff] }
  0x1b   : > { %v435_v39 = vmax.f32 %v427_v29, %v370_v10  ;;  %v436_v40 = vmax.f32 %v428_v30, %v371_v12  ;;  %v437_v46 = vmax.f32 %v429_v34, %v372_v25  ;;  %v397_v52 = vld [vmem:[%s721_s17 + $0x10] sm:$0xff]  ;;  %v423_v53 = vmax.f32 %v415_v43, %v373_v35  ;;  %v359_v56 = vld [vmem:[%s676_s26 + $0x38] sm:$0xff]  ;;  %v383_v3 = vld [vmem:[%s697_s11 + $0x28] sm:$0xff] }
  0x1c   : > { %v430_v54 = vmax.f32 %v422_v42, %v381_v36  ;;  %v389_v58 = vld [vmem:[%s711_s14 + $0x18] sm:$0xff]  ;;  %v416_v59 = vmax.f32 %v408_v48, %v358_v44  ;;  %v409_v60 = vmax.f32 %v358_v44, %v367_v49  ;;  %v375_v2 = vld [vmem:[%s688_s8 + $0x30] sm:$0xff]  ;;  %v360_v4 = vld [vmem:[%s676_s26 + $0x40] sm:$0xff] }
  0x1d   : > { %v443_v50 = vmax.f32 %v435_v39, %v386_v27  ;;  %v444_v51 = vmax.f32 %v436_v40, %v387_v28  ;;  %v445_v57 = vmax.f32 %v437_v46, %v388_v41  ;;  %v368_v61 = vld [vmem:[%s682_s29 + $0x38] sm:$0xff]  ;;  %v431_v1 = vmax.f32 %v423_v53, %v382_v47  ;;  %v390_v6 = vld [vmem:[%s711_s14 + $0x20] sm:$0xff]  ;;  %v384_v16 = vld [vmem:[%s697_s11 + $0x30] sm:$0xff] }
  0x1e   : > { %v438_v0 = vmax.f32 %v430_v54, %v373_v35  ;;  %v398_v7 = vld [vmem:[%s721_s17 + $0x18] sm:$0xff]  ;;  %v424_v8 = vmax.f32 %v416_v59, %v374_v55  ;;  %v417_v9 = vmax.f32 %v409_v60, %v359_v56  ;;  %v410_v10 = vmax.f32 %v359_v56, %v368_v61  ;;  %v399_v18 = vld [vmem:[%s721_s17 + $0x20] sm:$0xff]  ;;  %v391_v24 = vld [vmem:[%s711_s14 + $0x28] sm:$0xff] }
  0x1f   : > { %v451_v62 = vmax.f32 %v443_v50, %v395_v38  ;;  %v452_v63 = vmax.f32 %v444_v51, %v396_v45  ;;  %v453_v5 = vmax.f32 %v445_v57, %v397_v52  ;;  %v439_v14 = vmax.f32 %v431_v1, %v374_v55  ;;  %v376_v15 = vld [vmem:[%s688_s8 + $0x38] sm:$0xff]  ;;  %v392_v31 = vld [vmem:[%s711_s14 + $0x30] sm:$0xff]  ;;  %v400_v32 = vld [vmem:[%s721_s17 + $0x28] sm:$0xff] }
  0x20   : > { %v446_v13 = vmax.f32 %v438_v0, %v389_v58  ;;  %v425_v19 = vmax.f32 %v417_v9, %v375_v2  ;;  %v432_v20 = vmax.f32 %v424_v8, %v383_v3  ;;  %v418_v21 = vmax.f32 %v410_v10, %v360_v4  ;;  %v385_v25 = vld [vmem:[%s697_s11 + $0x38] sm:$0xff]  ;;  %v377_v33 = vld [vmem:[%s688_s8 + $0x40] sm:$0xff]  ;;  %v401_v39 = vld [vmem:[%s721_s17 + $0x30] sm:$0xff] }
  0x21   : > { %v459_v11 = vmax.f32 %v451_v62, %v387_v28  ;;  %v460_v12 = vmax.f32 %v452_v63, %v388_v41  ;;  %v461_v17 = vmax.f32 %v453_v5, %v389_v58  ;;  %v447_v22 = vmax.f32 %v439_v14, %v390_v6  ;;  %v393_v38 = vld [vmem:[%s711_s14 + $0x38] sm:$0xff]  ;;  %v394_v47 = vld [vmem:[%s711_s14 + $0x40] sm:$0xff] }
  0x22   : > { %v454_v23 = vmax.f32 %v446_v13, %v398_v7  ;;  %v440_v26 = vmax.f32 %v432_v20, %v375_v2  ;;  %v426_v27 = vmax.f32 %v418_v21, %v376_v15  ;;  %v433_v28 = vmax.f32 %v425_v19, %v384_v16  ;;  %v402_v43 = vld [vmem:[%s721_s17 + $0x38] sm:$0xff] }
  0x23   : > { %468 = vst.msk [vmem:[%s749_s22] sm:$0xff] %vm467_vm0, %v459_v11  ;;  %469 = vst.msk [vmem:[%s749_s22 + $0x8] sm:$0xff] %vm467_vm0, %v460_v12  ;;  %v455_v30 = vmax.f32 %v447_v22, %v399_v18 }
  0x24   : > { %470 = vst.msk [vmem:[%s749_s22 + $0x10] sm:$0xff] %vm467_vm0, %v461_v17  ;;  %v462_v29 = vmax.f32 %v454_v23, %v390_v6  ;;  %v448_v34 = vmax.f32 %v440_v26, %v391_v24  ;;  %v441_v35 = vmax.f32 %v433_v28, %v376_v15  ;;  %v434_v36 = vmax.f32 %v426_v27, %v385_v25 }
  0x25   : > { %v463_v37 = vmax.f32 %v455_v30, %v391_v24 }
  0x26   : > { %471 = vst.msk [vmem:[%s749_s22 + $0x18] sm:$0xff] %vm467_vm0, %v462_v29  ;;  %v449_v40 = vmax.f32 %v441_v35, %v392_v31  ;;  %v456_v41 = vmax.f32 %v448_v34, %v400_v32  ;;  %v442_v42 = vmax.f32 %v434_v36, %v377_v33 }
  0x27   : > { %472 = vst.msk [vmem:[%s749_s22 + $0x20] sm:$0xff] %vm467_vm0, %v463_v37 }
  0x28   : > { %v464_v44 = vmax.f32 %v456_v41, %v392_v31  ;;  %v450_v45 = vmax.f32 %v442_v42, %v393_v38  ;;  %v457_v46 = vmax.f32 %v449_v40, %v401_v39 }
  0x2a   : > { %473 = vst.msk [vmem:[%s749_s22 + $0x28] sm:$0xff] %vm467_vm0, %v464_v44  ;;  %v465_v48 = vmax.f32 %v457_v46, %v393_v38  ;;  %v458_v49 = vmax.f32 %v450_v45, %v402_v43 }
  0x2c   : > { %474 = vst.msk [vmem:[%s749_s22 + $0x30] sm:$0xff] %vm467_vm0, %v465_v48  ;;  %v466_v50 = vmax.f32 %v458_v49, %v394_v47 }
  0x2e   : > { %475 = vst.msk [vmem:[%s749_s22 + $0x38] sm:$0xff] %vm467_vm0, %v466_v50 }
  0x2f PF: > { %s16_s21 = sadd.s32 1, %s622_s21  }
  0x30   : > { %p13_p4 = scmp.ge.s32.totalorder %s16_s21, 4  }
  0x32   :  { %15 = sbr.rel (!%p13_p4) target bundleno = 1 (0x1), region = 89 }

// kernel: shared_net_forward.11
= control target key start
LH: loop header
LB: loop body
LE: loop exit
PB: predicated region body
PF: predicated region fallthrough
CT: control target
= control target key end

     0   :  { %s3670_s12 = smov 0   ;;  %s3672_s13 = smov 0   ;;  %s3973_s0 = inlined_call_operand.vmem [shape: bf16[4,64,2400], index: 0, kind: input, shape index: {}]   ;;  %s3974_s1 = inlined_call_operand.vmem [shape: bf16[4,2400,96], index: 1, kind: input, shape index: {}]   ;;  %s3975_s2 = inlined_call_operand.vmem [shape: f32[4,1,96], index: 2, kind: input, shape index: {}]   ;;  %s3976_s3 = inlined_call_operand.vmem [shape: f32[4,64,96], index: 3, kind: output, shape index: {}]  }
   0x1   :  { %s3674_s14 = smov 0  }
   0x2 LB: > { %s25_s15 = sadd.s32 1, %s3644_s13  ;;  %p2709_p0 = scmp.ge.s32.totalorder %s3648_s14, 1  ;;  %s3648_s14 = sphi %s3674_s14, %s13_s14   ;;  %s3644_s13 = sphi %s3672_s13, %s3978_s13   ;;  %s3640_s12 = sphi %s3670_s12, %s3977_s12  }
   0x3   : > { %p27_p1 = scmp.ge.s32.totalorder %s25_s15, 4  ;;  %p177_p2 = scmp.lt.s32.totalorder %s3648_s14, 5 }
   0x5   : > { %s3980_s15 = smov (%p27_p1, %s25_s15), 0  ;;  %p178_p3 = pnand %p2709_p0, %p177_p2 }
   0x6   : > { %p219_p4 = scmp.lt.s32.totalorder (!%p178_p3), %s3640_s12, 3  ;;  %vm1915_vm0 = vcmask (!%p178_p3), 785408  }
   0x7   : > { %181 = sbr.rel (%p178_p3) target bundleno = 427 (0x1ab), region = 32 }
   0xe   : > { %s3982_s12 = smov (!%p219_p4, %s3640_s12), 3 }
   0xf   : > { %s3339_s16 = smul.u32 1200, %s3982_s12  ;;  %s236_s26 = scalar_lea.vmem %s3975_s2, %s3982_s12 }
  0x10   : > { %s3338_s20 = smul.u32 608, %s3982_s12  ;;  %s2947_s27 = sshll.u32 %s3982_s12, 6 }
  0x11   : > { %s3694_s19 = scalar_lea.vmem %s3974_s1, %s3339_s16  ;;  %s3944_s30 = scalar_lea.vmem %s3976_s3, %s2947_s27 }
  0x12   : > { %v3364_v0 = vld [vmem:[%s3694_s19 + $0x40] sm:$0xff]   ;;  %v3368_v4 = vld [vmem:[%s3694_s19 + $0x48] sm:$0xff]   ;;  %v3372_v8 = vld [vmem:[%s3694_s19 + $0x50] sm:$0xff]   ;;  %s3729_s23 = scalar_lea.vmem %s3973_s0, %s3338_s20 }
  0x13   : > { %v3365_v1 = vld [vmem:[%s3694_s19] sm:$0xff]   ;;  %2948 = vmatprep.subr.bf16.mxu0 %v3364_v0  ;;  %v3369_v5 = vld [vmem:[%s3694_s19 + $0x8] sm:$0xff]   ;;  %v3373_v9 = vld [vmem:[%s3694_s19 + $0x10] sm:$0xff]  }
  0x14   : > { %v3366_v2 = vld [vmem:[%s3694_s19 + $0xc0] sm:$0xff]   ;;  %2949 = vmatpush3.bf16.msra.mxu0 %v3365_v1  ;;  %v3370_v6 = vld [vmem:[%s3694_s19 + $0xc8] sm:$0xff]   ;;  %v3374_v10 = vld [vmem:[%s3694_s19 + $0xd0] sm:$0xff]  }
  0x15   : > { %v3367_v3 = vld [vmem:[%s3694_s19 + $0x80] sm:$0xff]   ;;  %2988 = vmatprep.subr.bf16.mxu1 %v3366_v2  ;;  %2950 = vmatprep.subr.bf16.mxu0 %v3368_v4  ;;  %v3371_v7 = vld [vmem:[%s3694_s19 + $0x88] sm:$0xff]   ;;  %v3375_v11 = vld [vmem:[%s3694_s19 + $0x90] sm:$0xff]  }
  0x16   : > { %2989 = vmatpush3.bf16.msra.mxu1 %v3367_v3  ;;  %v3376_v12 = vld [vmem:[%s3694_s19 + $0x58] sm:$0xff]   ;;  %v3380_v16 = vld [vmem:[%s3694_s19 + $0x60] sm:$0xff]   ;;  %v3384_v20 = vld [vmem:[%s3694_s19 + $0x68] sm:$0xff]  }
  0x17   : > { %2990 = vmatprep.subr.bf16.mxu1 %v3370_v6  ;;  %v3377_v13 = vld [vmem:[%s3694_s19 + $0x18] sm:$0xff]   ;;  %v3381_v17 = vld [vmem:[%s3694_s19 + $0x20] sm:$0xff]   ;;  %v3385_v21 = vld [vmem:[%s3694_s19 + $0x28] sm:$0xff]  }
  0x18   : > { %2951 = vmatpush3.bf16.msra.mxu0 %v3369_v5  ;;  %v3378_v14 = vld [vmem:[%s3694_s19 + $0xd8] sm:$0xff]   ;;  %v3382_v18 = vld [vmem:[%s3694_s19 + $0xe0] sm:$0xff]   ;;  %v3386_v22 = vld [vmem:[%s3694_s19 + $0xe8] sm:$0xff]  }
  0x19   : > { %2952 = vmatprep.subr.bf16.mxu0 %v3372_v8  ;;  %v3379_v15 = vld [vmem:[%s3694_s19 + $0x98] sm:$0xff]   ;;  %v3383_v19 = vld [vmem:[%s3694_s19 + $0xa0] sm:$0xff]   ;;  %v3387_v23 = vld [vmem:[%s3694_s19 + $0xa8] sm:$0xff]  }
  0x1a   : > { %2991 = vmatpush3.bf16.msra.mxu1 %v3371_v7  ;;  %v3388_v24 = vld [vmem:[%s3694_s19 + $0x70] sm:$0xff]   ;;  %v3392_v28 = vld [vmem:[%s3694_s19 + $0x78] sm:$0xff]   ;;  %v3395_v31 = vld [vmem:[%s3729_s23] ss:$76 sps:$4 sm:$0xff]  }
  0x1b   : > { %2992 = vmatprep.subr.bf16.mxu1 %v3374_v10  ;;  %v3389_v25 = vld [vmem:[%s3694_s19 + $0x30] sm:$0xff]   ;;  %v3393_v29 = vld [vmem:[%s3694_s19 + $0x38] sm:$0xff]   ;;  %v3399_v34 = vld [vmem:[%s3694_s19 + $0x140] sm:$0xff]  }
  0x1c   : > { %2953 = vmatpush3.bf16.msra.mxu0 %v3373_v9  ;;  %v3390_v26 = vld [vmem:[%s3694_s19 + $0xf0] sm:$0xff]   ;;  %v3394_v30 = vld [vmem:[%s3694_s19 + $0xf8] sm:$0xff]   ;;  %v3403_v37 = vld [vmem:[%s3694_s19 + $0x100] sm:$0xff]  }
  0x1d   : > { %2954 = vmatprep.subr.bf16.mxu0 %v3376_v12  ;;  %v3391_v27 = vld [vmem:[%s3694_s19 + $0xb0] sm:$0xff]   ;;  %v3398_v33 = vld [vmem:[%s3694_s19 + $0xb8] sm:$0xff]   ;;  %v3404_v38 = vld [vmem:[%s3694_s19 + $0x1c0] sm:$0xff]  }
  0x1e   : > { %2993 = vmatpush3.bf16.msra.mxu1 %v3375_v11  ;;  %v3397_v32 = vld [vmem:[%s3729_s23 + $0x4] ss:$76 sps:$4 sm:$0xff]   ;;  %v3400_v35 = vld [vmem:[%s3729_s23 + $0x8] ss:$76 sps:$4 sm:$0xff]   ;;  %v3402_v36 = vld [vmem:[%s3729_s23 + $0xc] ss:$76 sps:$4 sm:$0xff]  }
  0x1f   : > { %2994 = vmatprep.subr.bf16.mxu1 %v3378_v14  ;;  %1960 = vmatprep.mubr.bf16.mxu0 %v3397_v32  ;;  %v3405_v39 = vld [vmem:[%s3694_s19 + $0x180] sm:$0xff]   ;;  %v3406_v40 = vld [vmem:[%s3694_s19 + $0x148] sm:$0xff]   ;;  %v3413_v46 = vld [vmem:[%s3694_s19 + $0x150] sm:$0xff]  }
  0x20   : > { %2955 = vmatpush3.bf16.msra.mxu0 %v3377_v13  ;;  %2025 = vmatprep.mubr.bf16.mxu1 %v3402_v36  ;;  %v3407_v41 = vld [vmem:[%s3694_s19 + $0x108] sm:$0xff]   ;;  %v3412_v45 = vld [vmem:[%s3729_s23 + $0x98] ss:$76 sps:$4 sm:$0xff]   ;;  %v3416_v48 = vld [vmem:[%s3694_s19 + $0x110] sm:$0xff]  }
  0x21   : > { %2956 = vmatprep.subr.bf16.mxu0 %v3380_v16  ;;  %v3408_v42 = vld [vmem:[%s3694_s19 + $0x1c8] sm:$0xff]   ;;  %v3414_v47 = vld [vmem:[%s3729_s23 + $0xa4] ss:$76 sps:$4 sm:$0xff]   ;;  %v3420_v52 = vld [vmem:[%s3694_s19 + $0x158] sm:$0xff]  }
  0x22   : > { %2995 = vmatpush3.bf16.msra.mxu1 %v3379_v15  ;;  %v3409_v43 = vld [vmem:[%s3729_s23 + $0x9c] ss:$76 sps:$4 sm:$0xff]   ;;  %v3417_v49 = vld [vmem:[%s3729_s23 + $0xa0] ss:$76 sps:$4 sm:$0xff]   ;;  %v3418_v50 = vld [vmem:[%s3694_s19 + $0x1d0] sm:$0xff]  }
  0x23   : > { %2996 = vmatprep.subr.bf16.mxu1 %v3382_v18  ;;  %v3411_v44 = vld [vmem:[%s3694_s19 + $0x188] sm:$0xff]   ;;  %v3419_v51 = vld [vmem:[%s3694_s19 + $0x190] sm:$0xff]   ;;  %v3421_v53 = vld [vmem:[%s3694_s19 + $0x118] sm:$0xff]  }
  0x24   : > { %2957 = vmatpush3.bf16.msra.mxu0 %v3381_v17  ;;  %v3422_v54 = vld [vmem:[%s3694_s19 + $0x1d8] sm:$0xff]   ;;  %v3423_v55 = vld [vmem:[%s3729_s23 + $0x134] ss:$76 sps:$4 sm:$0xff]   ;;  %v3434_v0 = vld [vmem:[%s3694_s19 + $0x168] sm:$0xff]  }
  0x25   : > { %2958 = vmatprep.subr.bf16.mxu0 %v3384_v20  ;;  %v3425_v56 = vld [vmem:[%s3694_s19 + $0x198] sm:$0xff]   ;;  %v3427_v58 = vld [vmem:[%s3694_s19 + $0x160] sm:$0xff]   ;;  %v3435_v1 = vld [vmem:[%s3694_s19 + $0x128] sm:$0xff]  }
  0x26   : > { %2997 = vmatpush3.bf16.msra.mxu1 %v3383_v19  ;;  %v3426_v57 = vld [vmem:[%s3729_s23 + $0x130] ss:$76 sps:$4 sm:$0xff]   ;;  %v3430_v60 = vld [vmem:[%s3694_s19 + $0x120] sm:$0xff]   ;;  %v3436_v2 = vld [vmem:[%s3694_s19 + $0x1e8] sm:$0xff]  }
  0x27   : > { %2998 = vmatprep.subr.bf16.mxu1 %v3386_v22  ;;  %v3428_v59 = vld [vmem:[%s3729_s23 + $0x13c] ss:$76 sps:$4 sm:$0xff]   ;;  %v3431_v61 = vld [vmem:[%s3729_s23 + $0x138] ss:$76 sps:$4 sm:$0xff]   ;;  %v3441_v6 = vld [vmem:[%s3694_s19 + $0x170] sm:$0xff]  }
  0x28   : > { %2959 = vmatpush3.bf16.msra.mxu0 %v3385_v21  ;;  %v3432_v62 = vld [vmem:[%s3694_s19 + $0x1e0] sm:$0xff]   ;;  %v3437_v3 = vld [vmem:[%s3729_s23 + $0x1cc] ss:$76 sps:$4 sm:$0xff]   ;;  %v3440_v5 = vld [vmem:[%s3729_s23 + $0x1c8] ss:$76 sps:$4 sm:$0xff]  }
  0x29   : > { %2960 = vmatprep.subr.bf16.mxu0 %v3388_v24  ;;  %v3433_v63 = vld [vmem:[%s3694_s19 + $0x1a0] sm:$0xff]   ;;  %v3439_v4 = vld [vmem:[%s3694_s19 + $0x1a8] sm:$0xff]   ;;  %v3444_v8 = vld [vmem:[%s3694_s19 + $0x130] sm:$0xff]  }
  0x2a   : > { %2999 = vmatpush3.bf16.msra.mxu1 %v3387_v23  ;;  %v3442_v7 = vld [vmem:[%s3729_s23 + $0x1d4] ss:$76 sps:$4 sm:$0xff]   ;;  %v3445_v9 = vld [vmem:[%s3729_s23 + $0x1d0] ss:$76 sps:$4 sm:$0xff]   ;;  %v3456_v19 = vld [vmem:[%s3729_s23 + $0x18] ss:$76 sps:$4 sm:$0xff]  }
  0x2b   : > { %3000 = vmatprep.subr.bf16.mxu1 %v3390_v26  ;;  %v3446_v10 = vld [vmem:[%s3694_s19 + $0x1f0] sm:$0xff]   ;;  %v3448_v12 = vld [vmem:[%s3694_s19 + $0x178] sm:$0xff]   ;;  %v3455_v18 = vld [vmem:[%s3694_s19 + $0x240] sm:$0xff]  }
  0x2c   : > { %2961 = vmatpush3.bf16.msra.mxu0 %v3389_v25  ;;  %v3447_v11 = vld [vmem:[%s3694_s19 + $0x1b0] sm:$0xff]   ;;  %v3449_v13 = vld [vmem:[%s3694_s19 + $0x138] sm:$0xff]   ;;  %v3459_v21 = vld [vmem:[%s3694_s19 + $0x200] sm:$0xff]  }
  0x2d   : > { %2962 = vmatprep.subr.bf16.mxu0 %v3392_v28  ;;  %v3450_v14 = vld [vmem:[%s3694_s19 + $0x1f8] sm:$0xff]   ;;  %v3453_v16 = vld [vmem:[%s3729_s23 + $0x14] ss:$76 sps:$4 sm:$0xff]   ;;  %v3462_v24 = vld [vmem:[%s3694_s19 + $0x248] sm:$0xff]  }
  0x2e   : > { %3001 = vmatpush3.bf16.msra.mxu1 %v3391_v27  ;;  %v3451_v15 = vld [vmem:[%s3729_s23 + $0x10] ss:$76 sps:$4 sm:$0xff]   ;;  %v3460_v22 = vld [vmem:[%s3694_s19 + $0x2c0] sm:$0xff]   ;;  %v3463_v25 = vld [vmem:[%s3694_s19 + $0x208] sm:$0xff]  }
  0x2f   : > { %3002 = vmatprep.subr.bf16.mxu1 %v3394_v30  ;;  %v3454_v17 = vld [vmem:[%s3694_s19 + $0x1b8] sm:$0xff]   ;;  %v3461_v23 = vld [vmem:[%s3694_s19 + $0x280] sm:$0xff]   ;;  %v3464_v26 = vld [vmem:[%s3694_s19 + $0x2c8] sm:$0xff]  }
  0x30   : > { %2963 = vmatpush3.bf16.msra.mxu0 %v3393_v29  ;;  %v3458_v20 = vld [vmem:[%s3729_s23 + $0x1c] ss:$76 sps:$4 sm:$0xff]   ;;  %v3465_v27 = vld [vmem:[%s3729_s23 + $0xac] ss:$76 sps:$4 sm:$0xff]   ;;  %v3469_v30 = vld [vmem:[%s3694_s19 + $0x250] sm:$0xff]  }
  0x31   : > { %3028 = vmatprep.subr.bf16.mxu0 %v3399_v34  ;;  %v3467_v28 = vld [vmem:[%s3694_s19 + $0x288] sm:$0xff]   ;;  %v3472_v32 = vld [vmem:[%s3694_s19 + $0x210] sm:$0xff]   ;;  %v3476_v36 = vld [vmem:[%s3694_s19 + $0x258] sm:$0xff]  }
  0x32   : > { %3003 = vmatpush3.bf16.msra.mxu1 %v3398_v33  ;;  %v3468_v29 = vld [vmem:[%s3729_s23 + $0xa8] ss:$76 sps:$4 sm:$0xff]   ;;  %v3473_v33 = vld [vmem:[%s3729_s23 + $0xb0] ss:$76 sps:$4 sm:$0xff]  }
  0x33   : > { %1961 = vmatmul.mubr.bf16.vlgmr.msra.gmra.mrb[0].mxu0 %v3395_v31  ;;  %3068 = vmatprep.subr.bf16.mxu1 %v3404_v38  ;;  %v3470_v31 = vld [vmem:[%s3729_s23 + $0xb4] ss:$76 sps:$4 sm:$0xff]   ;;  %v3478_v38 = vld [vmem:[%s3694_s19 + $0x2d8] sm:$0xff]  }
  0x34   : > { %3029 = vmatpush3.bf16.msra.mxu0 %v3403_v37  ;;  %1968 = vmatprep.mubr.bf16.mxu0 %v3409_v43  ;;  %v3474_v34 = vld [vmem:[%s3694_s19 + $0x2d0] sm:$0xff]   ;;  %v3477_v37 = vld [vmem:[%s3694_s19 + $0x218] sm:$0xff]  }
  0x35   : > { %2026 = vmatmul.mubr.bf16.vlgmr.msra.gmra.mrb[0].mxu1 %v3400_v35  ;;  %3030 = vmatprep.subr.bf16.mxu0 %v3406_v40  ;;  %v3475_v35 = vld [vmem:[%s3694_s19 + $0x290] sm:$0xff]   ;;  %v3481_v40 = vld [vmem:[%s3694_s19 + $0x298] sm:$0xff]  }
  0x36   : > { %3069 = vmatpush3.bf16.msra.mxu1 %v3405_v39  ;;  %2033 = vmatprep.mubr.bf16.mxu1 %v3414_v47  ;;  %v3479_v39 = vld [vmem:[%s3729_s23 + $0x144] ss:$76 sps:$4 sm:$0xff]   ;;  %v3484_v43 = vld [vmem:[%s3729_s23 + $0x14c] ss:$76 sps:$4 sm:$0xff]  }
  0x37   : > { %3070 = vmatprep.subr.bf16.mxu1 %v3408_v42  ;;  %v3483_v42 = vld [vmem:[%s3694_s19 + $0x260] sm:$0xff]  }
  0x38   : > { %3031 = vmatpush3.bf16.msra.mxu0 %v3407_v41  ;;  %v3482_v41 = vld [vmem:[%s3729_s23 + $0x140] ss:$76 sps:$4 sm:$0xff]  }
  0x39   : > { %3032 = vmatprep.subr.bf16.mxu0 %v3413_v46  ;;  %v3488_v46 = vld [vmem:[%s3694_s19 + $0x2e0] sm:$0xff]  }
  0x3a   : > { %3071 = vmatpush3.bf16.msra.mxu1 %v3411_v44  ;;  %v3486_v44 = vld [vmem:[%s3694_s19 + $0x220] sm:$0xff]  }
  0x3b   : > { %1969 = vmatmul.mubr.bf16.gmra.mrb[4].mxu0 %v3412_v45  ;;  %3072 = vmatprep.subr.bf16.mxu1 %v3418_v50  ;;  %v3487_v45 = vld [vmem:[%s3729_s23 + $0x148] ss:$76 sps:$4 sm:$0xff]   ;;  %v3489_v47 = vld [vmem:[%s3694_s19 + $0x2a0] sm:$0xff]  }
  0x3c   : > { %3033 = vmatpush3.bf16.msra.mxu0 %v3416_v48  ;;  %1976 = vmatprep.mubr.bf16.mxu0 %v3423_v55  ;;  %v3490_v48 = vld [vmem:[%s3694_s19 + $0x268] sm:$0xff]   ;;  %v3498_v55 = vld [vmem:[%s3729_s23 + $0x1e4] ss:$76 sps:$4 sm:$0xff]  }
  0x3d   : > { %2034 = vmatmul.mubr.bf16.gmra.mrb[4].mxu1 %v3417_v49  ;;  %3034 = vmatprep.subr.bf16.mxu0 %v3420_v52  ;;  %v3491_v49 = vld [vmem:[%s3694_s19 + $0x228] sm:$0xff]  }
  0x3e   : > { %3073 = vmatpush3.bf16.msra.mxu1 %v3419_v51  ;;  %2041 = vmatprep.mubr.bf16.mxu1 %v3428_v59  ;;  %v3492_v50 = vld [vmem:[%s3694_s19 + $0x2e8] sm:$0xff]   ;;  %v3503_v59 = vld [vmem:[%s3694_s19 + $0x2b0] sm:$0xff]  }
  0x3f   : > { %3074 = vmatprep.subr.bf16.mxu1 %v3422_v54  ;;  %v3493_v51 = vld [vmem:[%s3729_s23 + $0x1dc] ss:$76 sps:$4 sm:$0xff]   ;;  %v3497_v54 = vld [vmem:[%s3694_s19 + $0x270] sm:$0xff]  }
  0x40   : > { %3035 = vmatpush3.bf16.msra.mxu0 %v3421_v53  ;;  %v3495_v52 = vld [vmem:[%s3694_s19 + $0x2a8] sm:$0xff]   ;;  %v3496_v53 = vld [vmem:[%s3729_s23 + $0x1d8] ss:$76 sps:$4 sm:$0xff]  }
  0x41   : > { %3036 = vmatprep.subr.bf16.mxu0 %v3427_v58  ;;  %v3502_v58 = vld [vmem:[%s3694_s19 + $0x2f0] sm:$0xff]  }
  0x42   : > { %3075 = vmatpush3.bf16.msra.mxu1 %v3425_v56  ;;  %v3500_v56 = vld [vmem:[%s3694_s19 + $0x230] sm:$0xff]  }
  0x43   : > { %1977 = vmatmul.mubr.bf16.gmra.mrb[8].mxu0 %v3426_v57  ;;  %3076 = vmatprep.subr.bf16.mxu1 %v3432_v62  ;;  %v3501_v57 = vld [vmem:[%s3729_s23 + $0x1e0] ss:$76 sps:$4 sm:$0xff]   ;;  %v3506_v62 = vld [vmem:[%s3694_s19 + $0x2f8] sm:$0xff]  }
  0x44   : > { %3037 = vmatpush3.bf16.msra.mxu0 %v3430_v60  ;;  %1984 = vmatprep.mubr.bf16.mxu0 %v3437_v3  ;;  %v3504_v60 = vld [vmem:[%s3694_s19 + $0x278] sm:$0xff]   ;;  %v3512_v3 = vld [vmem:[%s3729_s23 + $0x28] ss:$76 sps:$4 sm:$0xff]  }
  0x45   : > { %2042 = vmatmul.mubr.bf16.gmra.mrb[8].mxu1 %v3431_v61  ;;  %3038 = vmatprep.subr.bf16.mxu0 %v3434_v0  ;;  %v3505_v61 = vld [vmem:[%s3694_s19 + $0x238] sm:$0xff]   ;;  %v3509_v0 = vld [vmem:[%s3729_s23 + $0x24] ss:$76 sps:$4 sm:$0xff]  }
  0x46   : > { %3077 = vmatpush3.bf16.msra.mxu1 %v3433_v63  ;;  %2049 = vmatprep.mubr.bf16.mxu1 %v3442_v7  ;;  %v3507_v63 = vld [vmem:[%s3729_s23 + $0x20] ss:$76 sps:$4 sm:$0xff]  }
  0x47   : > { %3078 = vmatprep.subr.bf16.mxu1 %v3436_v2  ;;  %v3511_v2 = vld [vmem:[%s3694_s19 + $0x340] sm:$0xff]  }
  0x48   : > { %3039 = vmatpush3.bf16.msra.mxu0 %v3435_v1  ;;  %v3510_v1 = vld [vmem:[%s3694_s19 + $0x2b8] sm:$0xff]   ;;  %v3517_v7 = vld [vmem:[%s3694_s19 + $0x380] sm:$0xff]  }
  0x49   : > { %3040 = vmatprep.subr.bf16.mxu0 %v3441_v6  ;;  %v3516_v6 = vld [vmem:[%s3694_s19 + $0x3c0] sm:$0xff]  }
  0x4a   : > { %3079 = vmatpush3.bf16.msra.mxu1 %v3439_v4  ;;  %v3514_v4 = vld [vmem:[%s3729_s23 + $0x2c] ss:$76 sps:$4 sm:$0xff]  }
  0x4b   : > { %1985 = vmatmul.mubr.bf16.gmra.mrb[12].mxu0 %v3440_v5  ;;  %3080 = vmatprep.subr.bf16.mxu1 %v3446_v10  ;;  %v3515_v5 = vld [vmem:[%s3694_s19 + $0x300] sm:$0xff]   ;;  %v3520_v10 = vld [vmem:[%s3694_s19 + $0x3c8] sm:$0xff]  }
  0x4c   : > { %3041 = vmatpush3.bf16.msra.mxu0 %v3444_v8  ;;  %2090 = vmatprep.mubr.bf16.mxu0 %v3453_v16  ;;  %v3518_v8 = vld [vmem:[%s3694_s19 + $0x348] sm:$0xff]   ;;  %v3528_v16 = vld [vmem:[%s3694_s19 + $0x310] sm:$0xff]  }
  0x4d   : > { %2050 = vmatmul.mubr.bf16.gmra.mrb[12].mxu1 %v3445_v9  ;;  %3042 = vmatprep.subr.bf16.mxu0 %v3448_v12  ;;  %v3519_v9 = vld [vmem:[%s3694_s19 + $0x308] sm:$0xff]  }
  0x4e   : > { %3081 = vmatpush3.bf16.msra.mxu1 %v3447_v11  ;;  %2155 = vmatprep.mubr.bf16.mxu1 %v3458_v20  ;;  %v3521_v11 = vld [vmem:[%s3729_s23 + $0xbc] ss:$76 sps:$4 sm:$0xff]  }
  0x4f   : > { %3082 = vmatprep.subr.bf16.mxu1 %v3450_v14  ;;  %v3523_v12 = vld [vmem:[%s3694_s19 + $0x388] sm:$0xff]   ;;  %v3525_v14 = vld [vmem:[%s3694_s19 + $0x350] sm:$0xff]   ;;  %v3532_v20 = vld [vmem:[%s3694_s19 + $0x358] sm:$0xff]  }
  0x50   : > { %3043 = vmatpush3.bf16.msra.mxu0 %v3449_v13  ;;  %v3524_v13 = vld [vmem:[%s3729_s23 + $0xb8] ss:$76 sps:$4 sm:$0xff]  }
  0x51   : > { %3108 = vmatprep.subr.bf16.mxu0 %v3455_v18  ;;  %v3530_v18 = vld [vmem:[%s3694_s19 + $0x3d0] sm:$0xff]  }
  0x52   : > { %3083 = vmatpush3.bf16.msra.mxu1 %v3454_v17  ;;  %v3529_v17 = vld [vmem:[%s3729_s23 + $0xc0] ss:$76 sps:$4 sm:$0xff]  }
  0x53   : > { %2091 = vmatmul.mubr.bf16.vlgmr.msra.gmra.mrb[16].mxu0 %v3451_v15  ;;  %3148 = vmatprep.subr.bf16.mxu1 %v3460_v22  ;;  %v3526_v15 = vld [vmem:[%s3729_s23 + $0xc4] ss:$76 sps:$4 sm:$0xff]   ;;  %v3534_v22 = vld [vmem:[%s3694_s19 + $0x3d8] sm:$0xff]  }
  0x54   : > { %3109 = vmatpush3.bf16.msra.mxu0 %v3459_v21  ;;  %2098 = vmatprep.mubr.bf16.mxu0 %v3465_v27  ;;  %v3533_v21 = vld [vmem:[%s3694_s19 + $0x318] sm:$0xff]  }
  0x55   : > { %2156 = vmatmul.mubr.bf16.vlgmr.msra.gmra.mrb[16].mxu1 %v3456_v19  ;;  %3110 = vmatprep.subr.bf16.mxu0 %v3462_v24  ;;  %v3531_v19 = vld [vmem:[%s3694_s19 + $0x390] sm:$0xff]   ;;  %v3537_v24 = vld [vmem:[%s3694_s19 + $0x398] sm:$0xff]  }
  0x56   : > { %3149 = vmatpush3.bf16.msra.mxu1 %v3461_v23  ;;  %2163 = vmatprep.mubr.bf16.mxu1 %v3470_v31  ;;  %v3535_v23 = vld [vmem:[%s3729_s23 + $0x154] ss:$76 sps:$4 sm:$0xff]   ;;  %v3540_v27 = vld [vmem:[%s3729_s23 + $0x15c] ss:$76 sps:$4 sm:$0xff]  }
  0x57   : > { %3150 = vmatprep.subr.bf16.mxu1 %v3464_v26  ;;  %v3539_v26 = vld [vmem:[%s3694_s19 + $0x360] sm:$0xff]  }
  0x58   : > { %3111 = vmatpush3.bf16.msra.mxu0 %v3463_v25  ;;  %v3538_v25 = vld [vmem:[%s3729_s23 + $0x150] ss:$76 sps:$4 sm:$0xff]   ;;  %v3545_v31 = vld [vmem:[%s3694_s19 + $0x3a0] sm:$0xff]  }
  0x59   : > { %3112 = vmatprep.subr.bf16.mxu0 %v3469_v30  ;;  %v3544_v30 = vld [vmem:[%s3694_s19 + $0x3e0] sm:$0xff]  }
  0x5a   : > { %3151 = vmatpush3.bf16.msra.mxu1 %v3467_v28  ;;  %v3542_v28 = vld [vmem:[%s3694_s19 + $0x320] sm:$0xff]  }
  0x5b   : > { %2099 = vmatmul.mubr.bf16.gmra.mrb[20].mxu0 %v3468_v29  ;;  %3152 = vmatprep.subr.bf16.mxu1 %v3474_v34  ;;  %v3543_v29 = vld [vmem:[%s3729_s23 + $0x158] ss:$76 sps:$4 sm:$0xff]   ;;  %v3548_v34 = vld [vmem:[%s3694_s19 + $0x3e8] sm:$0xff]  }
  0x5c   : > { %3113 = vmatpush3.bf16.msra.mxu0 %v3472_v32  ;;  %2106 = vmatprep.mubr.bf16.mxu0 %v3479_v39  ;;  %v3546_v32 = vld [vmem:[%s3694_s19 + $0x368] sm:$0xff]   ;;  %v3554_v39 = vld [vmem:[%s3729_s23 + $0x1f4] ss:$76 sps:$4 sm:$0xff]  }
  0x5d   : > { %2164 = vmatmul.mubr.bf16.gmra.mrb[20].mxu1 %v3473_v33  ;;  %3114 = vmatprep.subr.bf16.mxu0 %v3476_v36  ;;  %v3547_v33 = vld [vmem:[%s3694_s19 + $0x328] sm:$0xff]  }
  0x5e   : > { %3153 = vmatpush3.bf16.msra.mxu1 %v3475_v35  ;;  %2171 = vmatprep.mubr.bf16.mxu1 %v3484_v43  ;;  %v3549_v35 = vld [vmem:[%s3729_s23 + $0x1ec] ss:$76 sps:$4 sm:$0xff]   ;;  %v3559_v43 = vld [vmem:[%s3694_s19 + $0x3b0] sm:$0xff]  }
  0x5f   : > { %3154 = vmatprep.subr.bf16.mxu1 %v3478_v38  ;;  %v3551_v36 = vld [vmem:[%s3694_s19 + $0x3a8] sm:$0xff]   ;;  %v3553_v38 = vld [vmem:[%s3694_s19 + $0x370] sm:$0xff]  }
  0x60   : > { %3115 = vmatpush3.bf16.msra.mxu0 %v3477_v37  ;;  %v3552_v37 = vld [vmem:[%s3729_s23 + $0x1e8] ss:$76 sps:$4 sm:$0xff]  }
  0x61   : > { %3116 = vmatprep.subr.bf16.mxu0 %v3483_v42  ;;  %v3558_v42 = vld [vmem:[%s3694_s19 + $0x3f0] sm:$0xff]  }
  0x62   : > { %3155 = vmatpush3.bf16.msra.mxu1 %v3481_v40  ;;  %v3556_v40 = vld [vmem:[%s3694_s19 + $0x330] sm:$0xff]  }
  0x63   : > { %2107 = vmatmul.mubr.bf16.gmra.mrb[24].mxu0 %v3482_v41  ;;  %3156 = vmatprep.subr.bf16.mxu1 %v3488_v46  ;;  %v3557_v41 = vld [vmem:[%s3729_s23 + $0x1f0] ss:$76 sps:$4 sm:$0xff]  }
  0x64   : > { %3117 = vmatpush3.bf16.msra.mxu0 %v3486_v44  ;;  %2114 = vmatprep.mubr.bf16.mxu0 %v3493_v51  ;;  %v3560_v44 = vld [vmem:[%s3694_s19 + $0x378] sm:$0xff]  }
  0x65   : > { %2172 = vmatmul.mubr.bf16.gmra.mrb[24].mxu1 %v3487_v45  ;;  %3118 = vmatprep.subr.bf16.mxu0 %v3490_v48  ;;  %v3561_v45 = vld [vmem:[%s3694_s19 + $0x338] sm:$0xff]   ;;  %v3565_v48 = vld [vmem:[%s3729_s23 + $0x34] ss:$76 sps:$4 sm:$0xff]  }
  0x66   : > { %3157 = vmatpush3.bf16.msra.mxu1 %v3489_v47  ;;  %2179 = vmatprep.mubr.bf16.mxu1 %v3498_v55  ;;  %v3562_v46 = vld [vmem:[%s3694_s19 + $0x3f8] sm:$0xff]   ;;  %v3573_v55 = vld [vmem:[%s3694_s19 + $0x408] sm:$0xff]  }
  0x67   : > { %3158 = vmatprep.subr.bf16.mxu1 %v3492_v50  ;;  %v3563_v47 = vld [vmem:[%s3729_s23 + $0x30] ss:$76 sps:$4 sm:$0xff]   ;;  %v3567_v50 = vld [vmem:[%s3694_s19 + $0x440] sm:$0xff]  }
  0x68   : > { %3119 = vmatpush3.bf16.msra.mxu0 %v3491_v49  ;;  %v3566_v49 = vld [vmem:[%s3694_s19 + $0x3b8] sm:$0xff]  }
  0x69   : > { %3120 = vmatprep.subr.bf16.mxu0 %v3497_v54  ;;  %v3568_v51 = vld [vmem:[%s3729_s23 + $0x38] ss:$76 sps:$4 sm:$0xff]   ;;  %v3572_v54 = vld [vmem:[%s3694_s19 + $0x448] sm:$0xff]  }
  0x6a   : > { %3159 = vmatpush3.bf16.msra.mxu1 %v3495_v52  ;;  %v3570_v52 = vld [vmem:[%s3729_s23 + $0x3c] ss:$76 sps:$4 sm:$0xff]  }
  0x6b   : > { %2115 = vmatmul.mubr.bf16.gmra.mrb[28].mxu0 %v3496_v53  ;;  %3160 = vmatprep.subr.bf16.mxu1 %v3502_v58  ;;  %v3571_v53 = vld [vmem:[%s3694_s19 + $0x400] sm:$0xff]   ;;  %v3577_v58 = vld [vmem:[%s3694_s19 + $0x450] sm:$0xff]  }
  0x6c   : > { %3121 = vmatpush3.bf16.msra.mxu0 %v3500_v56  ;;  %2220 = vmatprep.mubr.bf16.mxu0 %v3509_v0  ;;  %v3574_v56 = vld [vmem:[%s3729_s23 + $0xcc] ss:$76 sps:$4 sm:$0xff]  }
  0x6d   : > { %2180 = vmatmul.mubr.bf16.gmra.mrb[28].mxu1 %v3501_v57  ;;  %3122 = vmatprep.subr.bf16.mxu0 %v3504_v60  ;;  %v3576_v57 = vld [vmem:[%s3729_s23 + $0xc8] ss:$76 sps:$4 sm:$0xff]   ;;  %v3584_v0 = vld [vmem:[%s3694_s19 + $0x418] sm:$0xff]  }
  0x6e   : > { %3161 = vmatpush3.bf16.msra.mxu1 %v3503_v59  ;;  %2285 = vmatprep.mubr.bf16.mxu1 %v3514_v4  ;;  %v3578_v59 = vld [vmem:[%s3729_s23 + $0xd4] ss:$76 sps:$4 sm:$0xff]   ;;  %v3589_v4 = vld [vmem:[%s3694_s19 + $0x488] sm:$0xff]  }
  0x6f   : > { %3162 = vmatprep.subr.bf16.mxu1 %v3506_v62  ;;  %v3580_v60 = vld [vmem:[%s3694_s19 + $0x410] sm:$0xff]   ;;  %v3582_v62 = vld [vmem:[%s3694_s19 + $0x458] sm:$0xff]  }
  0x70   : > { %3123 = vmatpush3.bf16.msra.mxu0 %v3505_v61  ;;  %v3581_v61 = vld [vmem:[%s3729_s23 + $0xd0] ss:$76 sps:$4 sm:$0xff]  }
  0x71   : > { %3188 = vmatprep.subr.bf16.mxu0 %v3511_v2  ;;  %v3587_v2 = vld [vmem:[%s3729_s23 + $0x160] ss:$76 sps:$4 sm:$0xff]  }
  0x72   : > { %3163 = vmatpush3.bf16.msra.mxu1 %v3510_v1  ;;  %v3585_v1 = vld [vmem:[%s3729_s23 + $0x164] ss:$76 sps:$4 sm:$0xff]  }
  0x73   : > { %2221 = vmatmul.mubr.bf16.vlgmr.msra.gmra.mrb[32].mxu0 %v3507_v63  ;;  %3228 = vmatprep.subr.bf16.mxu1 %v3516_v6  ;;  %v3583_v63 = vld [vmem:[%s3694_s19 + $0x480] sm:$0xff]  }
  0x74   : > { %3189 = vmatpush3.bf16.msra.mxu0 %v3515_v5  ;;  %2228 = vmatprep.mubr.bf16.mxu0 %v3521_v11  ;;  %v3590_v5 = vld [vmem:[%s3729_s23 + $0x16c] ss:$76 sps:$4 sm:$0xff]   ;;  %v3592_v6 = vld [vmem:[%s3694_s19 + $0x420] sm:$0xff]   ;;  %v3597_v11 = vld [vmem:[%s3729_s23 + $0x1fc] ss:$76 sps:$4 sm:$0xff]  }
  0x75   : > { %2286 = vmatmul.mubr.bf16.vlgmr.msra.gmra.mrb[32].mxu1 %v3512_v3  ;;  %3190 = vmatprep.subr.bf16.mxu0 %v3518_v8  ;;  %v3588_v3 = vld [vmem:[%s3694_s19 + $0x460] sm:$0xff]   ;;  %v3594_v8 = vld [vmem:[%s3694_s19 + $0x468] sm:$0xff]  }
  0x76   : > { %3229 = vmatpush3.bf16.msra.mxu1 %v3517_v7  ;;  %2293 = vmatprep.mubr.bf16.mxu1 %v3526_v15  ;;  %v3593_v7 = vld [vmem:[%s3729_s23 + $0x168] ss:$76 sps:$4 sm:$0xff]   ;;  %v3602_v15 = vld [vmem:[%s3729_s23 + $0x204] ss:$76 sps:$4 sm:$0xff]  }
  0x77   : > { %3230 = vmatprep.subr.bf16.mxu1 %v3520_v10  ;;  %v3596_v10 = vld [vmem:[%s3694_s19 + $0x428] sm:$0xff]  }
  0x78   : > { %3191 = vmatpush3.bf16.msra.mxu0 %v3519_v9  ;;  %v3595_v9 = vld [vmem:[%s3694_s19 + $0x490] sm:$0xff]  }
  0x79   : > { %3192 = vmatprep.subr.bf16.mxu0 %v3525_v14  ;;  %v3601_v14 = vld [vmem:[%s3694_s19 + $0x498] sm:$0xff]  }
  0x7a   : > { %3231 = vmatpush3.bf16.msra.mxu1 %v3523_v12  ;;  %v3599_v12 = vld [vmem:[%s3729_s23 + $0x1f8] ss:$76 sps:$4 sm:$0xff]  }
  0x7b   : > { %2229 = vmatmul.mubr.bf16.gmra.mrb[36].mxu0 %v3524_v13  ;;  %3232 = vmatprep.subr.bf16.mxu1 %v3530_v18  ;;  %v3600_v13 = vld [vmem:[%s3694_s19 + $0x470] sm:$0xff]   ;;  %v3606_v18 = vld [vmem:[%s3694_s19 + $0x478] sm:$0xff]  }
  0x7c   : > { %3193 = vmatpush3.bf16.msra.mxu0 %v3528_v16  ;;  %2236 = vmatprep.mubr.bf16.mxu0 %v3535_v23  ;;  %v3604_v16 = vld [vmem:[%s3694_s19 + $0x430] sm:$0xff]   ;;  %v3612_v23 = vld [vmem:[%s3694_s19 + $0x4a8] sm:$0xff]  }
  0x7d   : > { %2294 = vmatmul.mubr.bf16.gmra.mrb[36].mxu1 %v3529_v17  ;;  %3194 = vmatprep.subr.bf16.mxu0 %v3532_v20  ;;  %v3605_v17 = vld [vmem:[%s3729_s23 + $0x200] ss:$76 sps:$4 sm:$0xff]   ;;  %v3608_v20 = vld [vmem:[%s3694_s19 + $0x438] sm:$0xff]  }
  0x7e   : > { %3233 = vmatpush3.bf16.msra.mxu1 %v3531_v19  ;;  %2301 = vmatprep.mubr.bf16.mxu1 %v3540_v27  ;;  %v3607_v19 = vld [vmem:[%s3694_s19 + $0x4a0] sm:$0xff]  }
  0x7f   : > { %3234 = vmatprep.subr.bf16.mxu1 %v3534_v22  ;;  %v3611_v22 = vld [vmem:[%s3729_s23 + $0x44] ss:$76 sps:$4 sm:$0xff]  }
  0x80   : > { %3195 = vmatpush3.bf16.msra.mxu0 %v3533_v21  ;;  %v3609_v21 = vld [vmem:[%s3729_s23 + $0x40] ss:$76 sps:$4 sm:$0xff]   ;;  %v3621_v27 = vld [vmem:[%s3729_s23 + $0x178] ss:$76 sps:$4 sm:$0xff]  }
  0x81   : > { %3196 = vmatprep.subr.bf16.mxu0 %v3539_v26  ;;  %v3615_v26 = vld [vmem:[%s3729_s23 + $0xdc] ss:$76 sps:$4 sm:$0xff]  }
  0x82   : > { %3235 = vmatpush3.bf16.msra.mxu1 %v3537_v24  ;;  %v3613_v24 = vld [vmem:[%s3729_s23 + $0x48] ss:$76 sps:$4 sm:$0xff]  }
  0x83   : > { %2237 = vmatmul.mubr.bf16.gmra.mrb[40].mxu0 %v3538_v25  ;;  %3236 = vmatprep.subr.bf16.mxu1 %v3544_v30  ;;  %v3614_v25 = vld [vmem:[%s3729_s23 + $0xe0] ss:$76 sps:$4 sm:$0xff]   ;;  %v3622_v30 = vld [vmem:[%s3729_s23 + $0x210] ss:$76 sps:$4 sm:$0xff]  }
  0x84   : > { %3197 = vmatpush3.bf16.msra.mxu0 %v3542_v28  ;;  %2244 = vmatprep.mubr.bf16.mxu0 %v3549_v35  ;;  %v3617_v28 = vld [vmem:[%s3729_s23 + $0xd8] ss:$76 sps:$4 sm:$0xff]   ;;  %v2714_v35 = vld [vmem:[%s236_s26] ss:$0 sm:$0xff] }
  0x85   : > { %2302 = vmatmul.mubr.bf16.gmra.mrb[40].mxu1 %v3543_v29  ;;  %3198 = vmatprep.subr.bf16.mxu0 %v3546_v32  ;;  %v3618_v29 = vld [vmem:[%s3729_s23 + $0x174] ss:$76 sps:$4 sm:$0xff]   ;;  %v3623_v32 = vld [vmem:[%s3729_s23 + $0x20c] ss:$76 sps:$4 sm:$0xff]  }
  0x86   : > { %3237 = vmatpush3.bf16.msra.mxu1 %v3545_v31  ;;  %2309 = vmatprep.mubr.bf16.mxu1 %v3554_v39  ;;  %v3620_v31 = vld [vmem:[%s3729_s23 + $0x170] ss:$76 sps:$4 sm:$0xff]  }
  0x87   : > { %3238 = vmatprep.subr.bf16.mxu1 %v3548_v34 }
  0x88   : > { %3199 = vmatpush3.bf16.msra.mxu0 %v3547_v33  ;;  %v3625_v33 = vld [vmem:[%s3729_s23 + $0x208] ss:$76 sps:$4 sm:$0xff]  }
  0x89   : > { %3200 = vmatprep.subr.bf16.mxu0 %v3553_v38 }
  0x8a   : > { %3239 = vmatpush3.bf16.msra.mxu1 %v3551_v36 }
  0x8b   : > { %2245 = vmatmul.mubr.bf16.gmra.mrb[44].mxu0 %v3552_v37  ;;  %3240 = vmatprep.subr.bf16.mxu1 %v3558_v42 }
  0x8c   : > { %3201 = vmatpush3.bf16.msra.mxu0 %v3556_v40  ;;  %2350 = vmatprep.mubr.bf16.mxu0 %v3565_v48 }
  0x8d   : > { %2310 = vmatmul.mubr.bf16.gmra.mrb[44].mxu1 %v3557_v41  ;;  %3202 = vmatprep.subr.bf16.mxu0 %v3560_v44 }
  0x8e   : > { %3241 = vmatpush3.bf16.msra.mxu1 %v3559_v43  ;;  %2415 = vmatprep.mubr.bf16.mxu1 %v3570_v52 }
  0x8f   : > { %3242 = vmatprep.subr.bf16.mxu1 %v3562_v46 }
  0x90   : > { %3203 = vmatpush3.bf16.msra.mxu0 %v3561_v45 }
  0x91   : > { %3268 = vmatprep.subr.bf16.mxu0 %v3567_v50 }
  0x92   : > { %3243 = vmatpush3.bf16.msra.mxu1 %v3566_v49 }
  0x93   : > { %2351 = vmatmul.mubr.bf16.vlgmr.msra.gmra.mrb[48].mxu0 %v3563_v47  ;;  %3318 = vmatprep.subr.bf16.mxu1 %v3583_v63 }
  0x94   : > { %3269 = vmatpush3.bf16.msra.mxu0 %v3571_v53  ;;  %2358 = vmatprep.mubr.bf16.mxu0 %v3574_v56 }
  0x95   : > { %2416 = vmatmul.mubr.bf16.vlgmr.msra.gmra.mrb[48].mxu1 %v3568_v51  ;;  %3270 = vmatprep.subr.bf16.mxu0 %v3572_v54 }
  0x96   : > { %2423 = vmatprep.mubr.bf16.mxu1 %v3578_v59  ;;  %3319 = vmatpush3.bf16.msra.mxu1 %v3583_v63 }
  0x97   : > { %3320 = vmatprep.subr.bf16.mxu1 %v3589_v4 }
  0x98   : > { %3271 = vmatpush3.bf16.msra.mxu0 %v3573_v55 }
  0x99   : > { %3272 = vmatprep.subr.bf16.mxu0 %v3577_v58 }
  0x9a   : > { %3321 = vmatpush3.bf16.msra.mxu1 %v3589_v4 }
  0x9b   : > { %2359 = vmatmul.mubr.bf16.gmra.mrb[52].mxu0 %v3576_v57  ;;  %3322 = vmatprep.subr.bf16.mxu1 %v3595_v9 }
  0x9c   : > { %3273 = vmatpush3.bf16.msra.mxu0 %v3580_v60  ;;  %2366 = vmatprep.mubr.bf16.mxu0 %v3585_v1 }
  0x9d   : > { %2424 = vmatmul.mubr.bf16.gmra.mrb[52].mxu1 %v3581_v61  ;;  %3274 = vmatprep.subr.bf16.mxu0 %v3582_v62 }
  0x9e   : > { %2431 = vmatprep.mubr.bf16.mxu1 %v3590_v5  ;;  %3323 = vmatpush3.bf16.msra.mxu1 %v3595_v9 }
  0x9f   : > { %3324 = vmatprep.subr.bf16.mxu1 %v3601_v14 }
  0xa0   : > { %3275 = vmatpush3.bf16.msra.mxu0 %v3584_v0 }
  0xa1   : > { %3276 = vmatprep.subr.bf16.mxu0 %v3588_v3 }
  0xa2   : > { %3325 = vmatpush3.bf16.msra.mxu1 %v3601_v14 }
  0xa3   : > { %2367 = vmatmul.mubr.bf16.gmra.mrb[56].mxu0 %v3587_v2  ;;  %3326 = vmatprep.subr.bf16.mxu1 %v3607_v19 }
  0xa4   : > { %3277 = vmatpush3.bf16.msra.mxu0 %v3592_v6  ;;  %2374 = vmatprep.mubr.bf16.mxu0 %v3597_v11 }
  0xa5   : > { %2432 = vmatmul.mubr.bf16.gmra.mrb[56].mxu1 %v3593_v7  ;;  %3278 = vmatprep.subr.bf16.mxu0 %v3594_v8 }
  0xa6   : > { %2439 = vmatprep.mubr.bf16.mxu1 %v3602_v15  ;;  %3327 = vmatpush3.bf16.msra.mxu1 %v3607_v19 }
  0xa7   : > { %3328 = vmatprep.subr.bf16.mxu1 %v3612_v23 }
  0xa8   : > { %3279 = vmatpush3.bf16.msra.mxu0 %v3596_v10 }
  0xa9   : > { %3280 = vmatprep.subr.bf16.mxu0 %v3600_v13 }
  0xaa   : > { %3329 = vmatpush3.bf16.msra.mxu1 %v3612_v23 }
  0xab   : > { %2375 = vmatmul.mubr.bf16.gmra.mrb[60].mxu0 %v3599_v12 }
  0xac   : > { %3281 = vmatpush3.bf16.msra.mxu0 %v3604_v16  ;;  %2480 = vmatprep.mubr.bf16.mxu0 %v3611_v22 }
  0xad   : > { %2440 = vmatmul.mubr.bf16.gmra.mrb[60].mxu1 %v3605_v17  ;;  %3282 = vmatprep.subr.bf16.mxu0 %v3606_v18 }
  0xae   : > { %3330 = vmatprep.mubr.msk.bf16.mxu1 %vm1915_vm0, %v3613_v24 }
  0xb0   : > { %3283 = vmatpush3.bf16.msra.mxu0 %v3608_v20 }
  0xb3   : > { %2481 = vmatmul.mubr.bf16.vlgmr.msra.gmra.mrb[64].mxu0 %v3609_v21 }
  0xb4   : > { %2488 = vmatprep.mubr.bf16.mxu0 %v3615_v26 }
  0xb5   : > { %3331 = vmatmul.mubr.msk.bf16.vlgmr.msra.gmra.mrb[64].mxu1 %vm1915_vm0, %v3614_v25 }
  0xb6   : > { %3334 = vmatprep.mubr.msk.bf16.mxu1 %vm1915_vm0, %v3621_v27 }
  0xbb   : > { %2489 = vmatmul.mubr.bf16.gmra.mrb[68].mxu0 %v3617_v28 }
  0xbc   : > { %2496 = vmatprep.mubr.bf16.mxu0 %v3618_v29 }
  0xbd   : > { %3335 = vmatmul.mubr.msk.bf16.gmra.mrb[68].mxu1 %vm1915_vm0, %v3622_v30 }
  0xc3   : > { %2497 = vmatmul.mubr.bf16.gmra.mrb[72].mxu0 %v3620_v31 }
  0xc4   : > { %2504 = vmatprep.mubr.bf16.mxu0 %v3623_v32 }
  0xcb   : > { %2505 = vmatmul.mubr.bf16.gmra.mrb[76].mxu0 %v3625_v33 }
 0x106   : > { %v2964_v34 = vpop.f32.mrb[0].mxu0 }
 0x107   : > { %v2965_v36 = vpop.f32.mrb[1].mxu0 }
 0x108   : > { %v2966_v37 = vadd.f32 %v2965_v36, %v2964_v34  ;;  %v2967_v38 = vpop.f32.mrb[2].mxu0  ;;  %v3004_v39 = vpop.f32.mrb[0].mxu1 }
 0x109   : > { %v2968_v40 = vpop.f32.mrb[3].mxu0  ;;  %v3005_v43 = vpop.f32.mrb[1].mxu1 }
 0x10a   : > { %v1963_v41 = vadd.f32 %v2966_v37, %v2714_v35  ;;  %v2969_v42 = vadd.f32 %v2968_v40, %v2967_v38  ;;  %v3006_v44 = vadd.f32 %v3005_v43, %v3004_v39  ;;  %v3007_v45 = vpop.f32.mrb[2].mxu1 }
 0x10b   : > { %v3008_v47 = vpop.f32.mrb[3].mxu1 }
 0x10c   : > { %v1966_v46 = vadd.f32 %v2969_v42, %v2714_v35  ;;  %v2028_v48 = vadd.f32 %v3006_v44, %v1963_v41  ;;  %v3009_v49 = vadd.f32 %v3008_v47, %v3007_v45 }
 0x10e   : > { %v2031_v50 = vadd.f32 %v3009_v49, %v1966_v46  ;;  %v2970_v51 = vpop.f32.mrb[4].mxu0 }
 0x10f   : > { %v2971_v52 = vpop.f32.mrb[5].mxu0 }
 0x110   : > { %v2972_v53 = vadd.f32 %v2971_v52, %v2970_v51  ;;  %v2973_v54 = vpop.f32.mrb[6].mxu0  ;;  %v3010_v57 = vpop.f32.mrb[4].mxu1 }
 0x111   : > { %v2974_v55 = vpop.f32.mrb[7].mxu0  ;;  %v3011_v59 = vpop.f32.mrb[5].mxu1 }
 0x112   : > { %v1971_v56 = vadd.f32 %v2972_v53, %v2714_v35  ;;  %v2975_v58 = vadd.f32 %v2974_v55, %v2973_v54  ;;  %v3012_v61 = vadd.f32 %v3011_v59, %v3010_v57  ;;  %v3013_v62 = vpop.f32.mrb[6].mxu1 }
 0x113   : > { %v3014_v63 = vpop.f32.mrb[7].mxu1 }
 0x114   : > { %v1974_v60 = vadd.f32 %v2975_v58, %v2714_v35  ;;  %v2036_v0 = vadd.f32 %v3012_v61, %v1971_v56  ;;  %v3015_v1 = vadd.f32 %v3014_v63, %v3013_v62 }
 0x116   : > { %v2039_v2 = vadd.f32 %v3015_v1, %v1974_v60  ;;  %v2976_v3 = vpop.f32.mrb[8].mxu0 }
 0x117   : > { %v2977_v4 = vpop.f32.mrb[9].mxu0 }
 0x118   : > { %v2978_v5 = vadd.f32 %v2977_v4, %v2976_v3  ;;  %v2979_v6 = vpop.f32.mrb[10].mxu0  ;;  %v3016_v7 = vpop.f32.mrb[8].mxu1 }
 0x119   : > { %v2980_v8 = vpop.f32.mrb[11].mxu0  ;;  %v3017_v11 = vpop.f32.mrb[9].mxu1 }
 0x11a   : > { %v1979_v9 = vadd.f32 %v2978_v5, %v2714_v35  ;;  %v2981_v10 = vadd.f32 %v2980_v8, %v2979_v6  ;;  %v3018_v12 = vadd.f32 %v3017_v11, %v3016_v7  ;;  %v3019_v13 = vpop.f32.mrb[10].mxu1 }
 0x11b   : > { %v3020_v15 = vpop.f32.mrb[11].mxu1 }
 0x11c   : > { %v1982_v14 = vadd.f32 %v2981_v10, %v2714_v35  ;;  %v2044_v16 = vadd.f32 %v3018_v12, %v1979_v9  ;;  %v3021_v17 = vadd.f32 %v3020_v15, %v3019_v13 }
 0x11e   : > { %v2047_v18 = vadd.f32 %v3021_v17, %v1982_v14  ;;  %v2982_v19 = vpop.f32.mrb[12].mxu0 }
 0x11f   : > { %v2983_v20 = vpop.f32.mrb[13].mxu0 }
 0x120   : > { %v2984_v21 = vadd.f32 %v2983_v20, %v2982_v19  ;;  %v2985_v22 = vpop.f32.mrb[14].mxu0  ;;  %v3022_v23 = vpop.f32.mrb[12].mxu1 }
 0x121   : > { %v2986_v24 = vpop.f32.mrb[15].mxu0  ;;  %v3023_v27 = vpop.f32.mrb[13].mxu1 }
 0x122   : > { %v1987_v25 = vadd.f32 %v2984_v21, %v2714_v35  ;;  %v2987_v26 = vadd.f32 %v2986_v24, %v2985_v22  ;;  %v3024_v28 = vadd.f32 %v3023_v27, %v3022_v23  ;;  %v3025_v29 = vpop.f32.mrb[14].mxu1 }
 0x123   : > { %v3026_v31 = vpop.f32.mrb[15].mxu1 }
 0x124   : > { %v1990_v30 = vadd.f32 %v2987_v26, %v2714_v35  ;;  %v2052_v32 = vadd.f32 %v3024_v28, %v1987_v25  ;;  %v3027_v33 = vadd.f32 %v3026_v31, %v3025_v29 }
 0x126   : > { %v2055_v34 = vadd.f32 %v3027_v33, %v1990_v30  ;;  %v3044_v36 = vpop.f32.mrb[16].mxu0 }
 0x127   : > { %v3045_v37 = vpop.f32.mrb[17].mxu0 }
 0x128   : > { %v3046_v38 = vadd.f32 %v3045_v37, %v3044_v36  ;;  %v3047_v39 = vpop.f32.mrb[18].mxu0  ;;  %v3084_v42 = vpop.f32.mrb[16].mxu1 }
 0x129   : > { %v3048_v40 = vpop.f32.mrb[19].mxu0  ;;  %v3085_v44 = vpop.f32.mrb[17].mxu1 }
 0x12a   : > { %v2093_v41 = vadd.f32 %v3046_v38, %v2028_v48  ;;  %v3049_v43 = vadd.f32 %v3048_v40, %v3047_v39  ;;  %v3086_v46 = vadd.f32 %v3085_v44, %v3084_v42  ;;  %v3087_v47 = vpop.f32.mrb[18].mxu1 }
 0x12b   : > { %v3088_v49 = vpop.f32.mrb[19].mxu1 }
 0x12c   : > { %v2096_v45 = vadd.f32 %v3049_v43, %v2031_v50  ;;  %v2158_v51 = vadd.f32 %v3086_v46, %v2093_v41  ;;  %v3089_v52 = vadd.f32 %v3088_v49, %v3087_v47 }
 0x12e   : > { %v2161_v35 = vadd.f32 %v3089_v52, %v2096_v45  ;;  %v3050_v53 = vpop.f32.mrb[20].mxu0 }
 0x12f   : > { %v3051_v54 = vpop.f32.mrb[21].mxu0 }
 0x130   : > { %v3052_v55 = vadd.f32 %v3051_v54, %v3050_v53  ;;  %v3053_v56 = vpop.f32.mrb[22].mxu0  ;;  %v3090_v57 = vpop.f32.mrb[20].mxu1 }
 0x131   : > { %v3054_v58 = vpop.f32.mrb[23].mxu0  ;;  %v3091_v61 = vpop.f32.mrb[21].mxu1 }
 0x132   : > { %v2101_v59 = vadd.f32 %v3052_v55, %v2036_v0  ;;  %v3055_v60 = vadd.f32 %v3054_v58, %v3053_v56  ;;  %v3092_v48 = vadd.f32 %v3091_v61, %v3090_v57  ;;  %v3093_v62 = vpop.f32.mrb[22].mxu1 }
 0x133   : > { %v3094_v1 = vpop.f32.mrb[23].mxu1 }
 0x134   : > { %v2104_v63 = vadd.f32 %v3055_v60, %v2039_v2  ;;  %v2166_v50 = vadd.f32 %v3092_v48, %v2101_v59  ;;  %v3095_v3 = vadd.f32 %v3094_v1, %v3093_v62 }
 0x136   : > { %v2169_v4 = vadd.f32 %v3095_v3, %v2104_v63  ;;  %v3056_v5 = vpop.f32.mrb[24].mxu0 }
 0x137   : > { %v3057_v6 = vpop.f32.mrb[25].mxu0 }
 0x138   : > { %v3058_v7 = vadd.f32 %v3057_v6, %v3056_v5  ;;  %v3059_v8 = vpop.f32.mrb[26].mxu0  ;;  %v3096_v9 = vpop.f32.mrb[24].mxu1 }
 0x139   : > { %v3060_v10 = vpop.f32.mrb[27].mxu0  ;;  %v3097_v13 = vpop.f32.mrb[25].mxu1 }
 0x13a   : > { %v2109_v11 = vadd.f32 %v3058_v7, %v2044_v16  ;;  %v3061_v12 = vadd.f32 %v3060_v10, %v3059_v8  ;;  %v3098_v14 = vadd.f32 %v3097_v13, %v3096_v9  ;;  %v3099_v0 = vpop.f32.mrb[26].mxu1 }
 0x13b   : > { %v3100_v17 = vpop.f32.mrb[27].mxu1 }
 0x13c   : > { %v2112_v15 = vadd.f32 %v3061_v12, %v2047_v18  ;;  %v2174_v19 = vadd.f32 %v3098_v14, %v2109_v11  ;;  %v3101_v20 = vadd.f32 %v3100_v17, %v3099_v0 }
 0x13e   : > { %v2177_v2 = vadd.f32 %v3101_v20, %v2112_v15  ;;  %v3062_v21 = vpop.f32.mrb[28].mxu0 }
 0x13f   : > { %v3063_v22 = vpop.f32.mrb[29].mxu0 }
 0x140   : > { %v3064_v23 = vadd.f32 %v3063_v22, %v3062_v21  ;;  %v3065_v24 = vpop.f32.mrb[30].mxu0  ;;  %v3102_v27 = vpop.f32.mrb[28].mxu1 }
 0x141   : > { %v3066_v25 = vpop.f32.mrb[31].mxu0  ;;  %v3103_v29 = vpop.f32.mrb[29].mxu1 }
 0x142   : > { %v2117_v26 = vadd.f32 %v3064_v23, %v2052_v32  ;;  %v3067_v28 = vadd.f32 %v3066_v25, %v3065_v24  ;;  %v3104_v16 = vadd.f32 %v3103_v29, %v3102_v27  ;;  %v3105_v31 = vpop.f32.mrb[30].mxu1 }
 0x143   : > { %v3106_v33 = vpop.f32.mrb[31].mxu1 }
 0x144   : > { %v2120_v30 = vadd.f32 %v3067_v28, %v2055_v34  ;;  %v2182_v36 = vadd.f32 %v3104_v16, %v2117_v26  ;;  %v3107_v37 = vadd.f32 %v3106_v33, %v3105_v31 }
 0x146   : > { %v2185_v18 = vadd.f32 %v3107_v37, %v2120_v30  ;;  %v3124_v38 = vpop.f32.mrb[32].mxu0 }
 0x147   : > { %v3125_v39 = vpop.f32.mrb[33].mxu0 }
 0x148   : > { %v3126_v40 = vadd.f32 %v3125_v39, %v3124_v38  ;;  %v3127_v41 = vpop.f32.mrb[34].mxu0  ;;  %v3164_v42 = vpop.f32.mrb[32].mxu1 }
 0x149   : > { %v3128_v43 = vpop.f32.mrb[35].mxu0  ;;  %v3165_v46 = vpop.f32.mrb[33].mxu1 }
 0x14a   : > { %v2223_v44 = vadd.f32 %v3126_v40, %v2158_v51  ;;  %v3129_v45 = vadd.f32 %v3128_v43, %v3127_v41  ;;  %v3166_v32 = vadd.f32 %v3165_v46, %v3164_v42  ;;  %v3167_v47 = vpop.f32.mrb[34].mxu1 }
 0x14b   : > { %v3168_v52 = vpop.f32.mrb[35].mxu1 }
 0x14c   : > { %v2226_v49 = vadd.f32 %v3129_v45, %v2161_v35  ;;  %v2288_v34 = vadd.f32 %v3166_v32, %v2223_v44  ;;  %v3169_v53 = vadd.f32 %v3168_v52, %v3167_v47 }
 0x14e   : > { %v2291_v54 = vadd.f32 %v3169_v53, %v2226_v49  ;;  %v3130_v55 = vpop.f32.mrb[36].mxu0 }
 0x14f   : > { %v3131_v56 = vpop.f32.mrb[37].mxu0 }
 0x150   : > { %v3132_v57 = vadd.f32 %v3131_v56, %v3130_v55  ;;  %v3133_v58 = vpop.f32.mrb[38].mxu0  ;;  %v3170_v59 = vpop.f32.mrb[36].mxu1 }
 0x151   : > { %v3134_v60 = vpop.f32.mrb[39].mxu0  ;;  %v3171_v62 = vpop.f32.mrb[37].mxu1 }
 0x152   : > { %v2231_v61 = vadd.f32 %v3132_v57, %v2166_v50  ;;  %v3135_v48 = vadd.f32 %v3134_v60, %v3133_v58  ;;  %v3172_v63 = vadd.f32 %v3171_v62, %v3170_v59  ;;  %v3173_v51 = vpop.f32.mrb[38].mxu1 }
 0x153   : > { %v3174_v3 = vpop.f32.mrb[39].mxu1 }
 0x154   : > { %v2234_v1 = vadd.f32 %v3135_v48, %v2169_v4  ;;  %v2296_v5 = vadd.f32 %v3172_v63, %v2231_v61  ;;  %v3175_v6 = vadd.f32 %v3174_v3, %v3173_v51 }
 0x156   : > { %v2299_v35 = vadd.f32 %v3175_v6, %v2234_v1  ;;  %v3136_v7 = vpop.f32.mrb[40].mxu0 }
 0x157   : > { %v3137_v8 = vpop.f32.mrb[41].mxu0 }
 0x158   : > { %v3138_v9 = vadd.f32 %v3137_v8, %v3136_v7  ;;  %v3139_v10 = vpop.f32.mrb[42].mxu0  ;;  %v3176_v13 = vpop.f32.mrb[40].mxu1 }
 0x159   : > { %v3140_v11 = vpop.f32.mrb[43].mxu0  ;;  %v3177_v0 = vpop.f32.mrb[41].mxu1 }
 0x15a   : > { %v2239_v12 = vadd.f32 %v3138_v9, %v2174_v19  ;;  %v3141_v14 = vadd.f32 %v3140_v11, %v3139_v10  ;;  %v3178_v50 = vadd.f32 %v3177_v0, %v3176_v13  ;;  %v3179_v17 = vpop.f32.mrb[42].mxu1 }
 0x15b   : > { %v3180_v20 = vpop.f32.mrb[43].mxu1 }
 0x15c   : > { %v2242_v15 = vadd.f32 %v3141_v14, %v2177_v2  ;;  %v2304_v21 = vadd.f32 %v3178_v50, %v2239_v12  ;;  %v3181_v22 = vadd.f32 %v3180_v20, %v3179_v17 }
 0x15e   : > { %v2307_v4 = vadd.f32 %v3181_v22, %v2242_v15  ;;  %v3142_v23 = vpop.f32.mrb[44].mxu0 }
 0x15f   : > { %v3143_v24 = vpop.f32.mrb[45].mxu0 }
 0x160   : > { %v3144_v25 = vadd.f32 %v3143_v24, %v3142_v23  ;;  %v3145_v26 = vpop.f32.mrb[46].mxu0  ;;  %v3182_v27 = vpop.f32.mrb[44].mxu1 }
 0x161   : > { %v3146_v28 = vpop.f32.mrb[47].mxu0  ;;  %v3183_v16 = vpop.f32.mrb[45].mxu1 }
 0x162   : > { %v2247_v29 = vadd.f32 %v3144_v25, %v2182_v36  ;;  %v3147_v30 = vadd.f32 %v3146_v28, %v3145_v26  ;;  %v3184_v19 = vadd.f32 %v3183_v16, %v3182_v27  ;;  %v3185_v31 = vpop.f32.mrb[46].mxu1 }
 0x163   : > { %v3186_v37 = vpop.f32.mrb[47].mxu1 }
 0x164   : > { %v2250_v33 = vadd.f32 %v3147_v30, %v2185_v18  ;;  %v2312_v2 = vadd.f32 %v3184_v19, %v2247_v29  ;;  %v3187_v38 = vadd.f32 %v3186_v37, %v3185_v31 }
 0x166   : > { %v2315_v39 = vadd.f32 %v3187_v38, %v2250_v33  ;;  %v3204_v40 = vpop.f32.mrb[48].mxu0 }
 0x167   : > { %v3205_v41 = vpop.f32.mrb[49].mxu0 }
 0x168   : > { %v3206_v42 = vadd.f32 %v3205_v41, %v3204_v40  ;;  %v3207_v43 = vpop.f32.mrb[50].mxu0  ;;  %v3244_v44 = vpop.f32.mrb[48].mxu1 }
 0x169   : > { %v3208_v45 = vpop.f32.mrb[51].mxu0  ;;  %v3245_v47 = vpop.f32.mrb[49].mxu1 }
 0x16a   : > { %v2353_v46 = vadd.f32 %v3206_v42, %v2288_v34  ;;  %v3209_v32 = vadd.f32 %v3208_v45, %v3207_v43  ;;  %v3246_v49 = vadd.f32 %v3245_v47, %v3244_v44  ;;  %v3247_v36 = vpop.f32.mrb[50].mxu1 }
 0x16b   : > { %v3248_v53 = vpop.f32.mrb[51].mxu1 }
 0x16c   : > { %v2356_v52 = vadd.f32 %v3209_v32, %v2291_v54  ;;  %v2418_v55 = vadd.f32 %v3246_v49, %v2353_v46  ;;  %v3249_v56 = vadd.f32 %v3248_v53, %v3247_v36 }
 0x16e   : > { %v3210_v18 = vpop.f32.mrb[52].mxu0  ;;  %v2421_v57 = vadd.f32 %v3249_v56, %v2356_v52 }
 0x16f   : > { %v3211_v58 = vpop.f32.mrb[53].mxu0 }
 0x170   : > { %v3212_v59 = vadd.f32 %v3211_v58, %v3210_v18  ;;  %v3213_v60 = vpop.f32.mrb[54].mxu0  ;;  %v3250_v61 = vpop.f32.mrb[52].mxu1 }
 0x171   : > { %v3214_v48 = vpop.f32.mrb[55].mxu0  ;;  %v3251_v51 = vpop.f32.mrb[53].mxu1 }
 0x172   : > { %v2361_v62 = vadd.f32 %v3212_v59, %v2296_v5  ;;  %v3215_v63 = vadd.f32 %v3214_v48, %v3213_v60  ;;  %v3252_v1 = vadd.f32 %v3251_v51, %v3250_v61  ;;  %v3253_v34 = vpop.f32.mrb[54].mxu1 }
 0x173   : > { %v3254_v6 = vpop.f32.mrb[55].mxu1 }
 0x174   : > { %v2364_v3 = vadd.f32 %v3215_v63, %v2299_v35  ;;  %v2426_v7 = vadd.f32 %v3252_v1, %v2361_v62  ;;  %v3255_v8 = vadd.f32 %v3254_v6, %v3253_v34 }
 0x176   : > { %v3216_v54 = vpop.f32.mrb[56].mxu0  ;;  %v3936_v9 = vadd.f32 %v3255_v8, %v2364_v3 }
 0x177   : > { %v3217_v10 = vpop.f32.mrb[57].mxu0 }
 0x178   : > { %v3218_v11 = vadd.f32 %v3217_v10, %v3216_v54  ;;  %v3219_v12 = vpop.f32.mrb[58].mxu0  ;;  %v3256_v13 = vpop.f32.mrb[56].mxu1 }
 0x179   : > { %v3220_v14 = vpop.f32.mrb[59].mxu0  ;;  %v3257_v50 = vpop.f32.mrb[57].mxu1 }
 0x17a   : > { %v2369_v0 = vadd.f32 %v3218_v11, %v2304_v21  ;;  %v3221_v15 = vadd.f32 %v3220_v14, %v3219_v12  ;;  %v3258_v5 = vadd.f32 %v3257_v50, %v3256_v13  ;;  %v3259_v17 = vpop.f32.mrb[58].mxu1 }
 0x17b   : > { %v3260_v22 = vpop.f32.mrb[59].mxu1 }
 0x17c   : > { %v2372_v20 = vadd.f32 %v3221_v15, %v2307_v4  ;;  %v3938_v23 = vadd.f32 %v3258_v5, %v2369_v0  ;;  %v3261_v35 = vadd.f32 %v3260_v22, %v3259_v17 }
 0x17e   : > { %v3222_v24 = vpop.f32.mrb[60].mxu0  ;;  %v2437_v25 = vadd.f32 %v3261_v35, %v2372_v20 }
 0x17f   : > { %v3223_v26 = vpop.f32.mrb[61].mxu0 }
 0x180   : > { %v3224_v27 = vadd.f32 %v3223_v26, %v3222_v24  ;;  %v3225_v28 = vpop.f32.mrb[62].mxu0  ;;  %v3262_v29 = vpop.f32.mrb[60].mxu1 }
 0x181   : > { %v3226_v30 = vpop.f32.mrb[63].mxu0  ;;  %v3263_v21 = vpop.f32.mrb[61].mxu1 }
 0x182   : > { %v2377_v16 = vadd.f32 %v3224_v27, %v2312_v2  ;;  %v3227_v19 = vadd.f32 %v3226_v30, %v3225_v28  ;;  %v3264_v31 = vadd.f32 %v3263_v21, %v3262_v29  ;;  %v3265_v33 = vpop.f32.mrb[62].mxu1 }
 0x183   : > { %v3266_v38 = vpop.f32.mrb[63].mxu1 }
 0x184   : > { %v2380_v37 = vadd.f32 %v3227_v19, %v2315_v39  ;;  %v2442_v4 = vadd.f32 %v3264_v31, %v2377_v16  ;;  %v3267_v40 = vadd.f32 %v3266_v38, %v3265_v33 }
 0x186   : > { %v2445_v41 = vadd.f32 %v3267_v40, %v2380_v37  ;;  %v3284_v42 = vpop.f32.mrb[64].mxu0 }
 0x187   : > { %v3285_v43 = vpop.f32.mrb[65].mxu0 }
 0x188   : > { %v3286_v44 = vadd.f32 %v3285_v43, %v3284_v42  ;;  %v3287_v45 = vpop.f32.mrb[66].mxu0  ;;  %v3332_v32 = vpop.f32.mrb[64].mxu1 }
 0x189   : > { %v3288_v46 = vpop.f32.mrb[67].mxu0  ;;  %v2547_v2 = vpop.f32.mrb[65].mxu1 }
 0x18a   : > { %v3289_v47 = vadd.f32 %v3288_v46, %v3287_v45  ;;  %v2483_v49 = vadd.f32 %v3286_v44, %v2418_v55  ;;  %v3333_v36 = vpop.f32.mrb[66].mxu1 }
 0x18b   : > { %v2550_v56 = vpop.f32.mrb[67].mxu1 }
 0x18c   : > { %v2548_v52 = vadd.f32 %v2547_v2, %v2483_v49  ;;  %v2486_v53 = vadd.f32 %v3289_v47, %v2421_v57 }
 0x18e   : > { %v2578_v39 = vmax.f32 %v2548_v52, 0.0  ;;  %v2551_v18 = vadd.f32 %v2550_v56, %v2486_v53  ;;  %v3290_v58 = vpop.f32.mrb[68].mxu0 }
 0x18f   : > { %v3291_v59 = vpop.f32.mrb[69].mxu0 }
 0x190   : > { %2586 = vst.msk [vmem:[%s3944_s30] sm:$0xff] %vm1915_vm0, %v2578_v39  ;;  %v2579_v60 = vmax.f32 %v2551_v18, 0.0  ;;  %v3292_v55 = vadd.f32 %v3291_v59, %v3290_v58  ;;  %v3293_v61 = vpop.f32.mrb[70].mxu0  ;;  %v3336_v57 = vpop.f32.mrb[68].mxu1 }
 0x191   : > { %v3294_v48 = vpop.f32.mrb[71].mxu0  ;;  %v2563_v51 = vpop.f32.mrb[69].mxu1 }
 0x192   : > { %2587 = vst.msk [vmem:[%s3944_s30 + $0x8] sm:$0xff] %vm1915_vm0, %v2579_v60  ;;  %v2491_v62 = vadd.f32 %v3292_v55, %v2426_v7  ;;  %v3295_v63 = vadd.f32 %v3294_v48, %v3293_v61  ;;  %v3337_v1 = vpop.f32.mrb[70].mxu1 }
 0x193   : > { %v2566_v6 = vpop.f32.mrb[71].mxu1 }
 0x194   : > { %v2556_v34 = vadd.f32 %v3332_v32, %v2491_v62  ;;  %v2494_v3 = vadd.f32 %v3295_v63, %v3936_v9 }
 0x196   : > { %v2580_v8 = vmax.f32 %v2556_v34, 0.0  ;;  %v2559_v54 = vadd.f32 %v3333_v36, %v2494_v3  ;;  %v3296_v10 = vpop.f32.mrb[72].mxu0 }
 0x197   : > { %v3297_v11 = vpop.f32.mrb[73].mxu0 }
 0x198   : > { %2588 = vst.msk [vmem:[%s3944_s30 + $0x10] sm:$0xff] %vm1915_vm0, %v2580_v8  ;;  %v2581_v12 = vmax.f32 %v2559_v54, 0.0  ;;  %v3298_v13 = vadd.f32 %v3297_v11, %v3296_v10  ;;  %v3299_v14 = vpop.f32.mrb[74].mxu0 }
 0x199   : > { %v3300_v7 = vpop.f32.mrb[75].mxu0 }
 0x19a   : > { %2589 = vst.msk [vmem:[%s3944_s30 + $0x18] sm:$0xff] %vm1915_vm0, %v2581_v12  ;;  %v3301_v0 = vadd.f32 %v3300_v7, %v3299_v14  ;;  %v2499_v15 = vadd.f32 %v3298_v13, %v3938_v23 }
 0x19c   : > { %v2564_v50 = vadd.f32 %v2563_v51, %v2499_v15  ;;  %v2502_v9 = vadd.f32 %v3301_v0, %v2437_v25 }
 0x19e   : > { %v2582_v5 = vmax.f32 %v2564_v50, 0.0  ;;  %v2567_v17 = vadd.f32 %v2566_v6, %v2502_v9  ;;  %v3302_v20 = vpop.f32.mrb[76].mxu0 }
 0x19f   : > { %v3303_v22 = vpop.f32.mrb[77].mxu0 }
 0x1a0   : > { %2590 = vst.msk [vmem:[%s3944_s30 + $0x20] sm:$0xff] %vm1915_vm0, %v2582_v5  ;;  %v2583_v35 = vmax.f32 %v2567_v17, 0.0  ;;  %v3304_v24 = vadd.f32 %v3303_v22, %v3302_v20  ;;  %v3305_v26 = vpop.f32.mrb[78].mxu0 }
 0x1a1   : > { %v3306_v27 = vpop.f32.mrb[79].mxu0 }
 0x1a2   : > { %2591 = vst.msk [vmem:[%s3944_s30 + $0x28] sm:$0xff] %vm1915_vm0, %v2583_v35  ;;  %v2507_v28 = vadd.f32 %v3304_v24, %v2442_v4  ;;  %v3307_v29 = vadd.f32 %v3306_v27, %v3305_v26 }
 0x1a4   : > { %v2572_v30 = vadd.f32 %v3336_v57, %v2507_v28  ;;  %v2510_v23 = vadd.f32 %v3307_v29, %v2445_v41 }
 0x1a6   : > { %v2584_v16 = vmax.f32 %v2572_v30, 0.0  ;;  %v2575_v25 = vadd.f32 %v3337_v1, %v2510_v23 }
 0x1a8   : > { %2592 = vst.msk [vmem:[%s3944_s30 + $0x30] sm:$0xff] %vm1915_vm0, %v2584_v16  ;;  %v2585_v19 = vmax.f32 %v2575_v25, 0.0 }
 0x1aa   : > { %2593 = vst.msk [vmem:[%s3944_s30 + $0x38] sm:$0xff] %vm1915_vm0, %v2585_v19 }
 0x1ab PF: > { %s13_s14 = sadd.s32 1, %s3648_s14   ;;  %s3977_s12 = smov %s3644_s13 }
 0x1ac   : > { %p10_p5 = scmp.ge.s32.totalorder %s13_s14, 6   ;;  %s3978_s13 = smov %s3980_s15 }
 0x1ae   :  { %12 = sbr.rel (!%p10_p5) target bundleno = 2 (0x2), region = 68 }

// kernel: shared_net_forward.12
= control target key start
LH: loop header
LB: loop body
LE: loop exit
PB: predicated region body
PF: predicated region fallthrough
CT: control target
= control target key end

     0   :  { %vm188_vm0 = vcmask 785408   ;;  %s1348_s1 = inlined_call_operand.vmem [shape: bf16[96,96], index: 1, kind: input, shape index: {}]   ;;  %s1349_s0 = inlined_call_operand.vmem [shape: bf16[256,96], index: 0, kind: input, shape index: {}]   ;;  %s1350_s3 = inlined_call_operand.vmem [shape: bf16[96,96], index: 3, kind: input, shape index: {}]   ;;  %s1351_s2 = inlined_call_operand.vmem [shape: f32[1,96], index: 2, kind: input, shape index: {}]   ;;  %s1352_s4 = inlined_call_operand.vmem [shape: f32[1,96], index: 4, kind: input, shape index: {}]   ;;  %s1353_s5 = inlined_call_operand.vmem [shape: f32[256,96], index: 5, kind: output, shape index: {}]  }
   0x1   :  { %v972_v0 = vld [vmem:[%s1348_s1] sm:$0xff]   ;;  %v973_v1 = vld [vmem:[%s1348_s1 + $0x8] sm:$0xff]   ;;  %v974_v2 = vld [vmem:[%s1348_s1 + $0x10] sm:$0xff]  }
   0x2   :  { %884 = vmatprep.subr.bf16.mxu0 %v972_v0  ;;  %v978_v3 = vld [vmem:[%s1349_s0] sm:$0xff]   ;;  %v975_v4 = vld [vmem:[%s1348_s1 + $0x18] sm:$0xff]   ;;  %v977_v6 = vld [vmem:[%s1348_s1 + $0x28] sm:$0xff]  }
   0x3   :  { %885 = vmatpush3.bf16.msra.mxu0 %v972_v0  ;;  %896 = vmatprep.mubr.msk.bf16.mxu0 %vm188_vm0, %v978_v3  ;;  %v976_v5 = vld [vmem:[%s1348_s1 + $0x20] sm:$0xff]   ;;  %v979_v7 = vld [vmem:[%s1349_s0 + $0x8] sm:$0xff]   ;;  %v980_v8 = vld [vmem:[%s1349_s0 + $0x10] sm:$0xff]  }
   0x4   :  { %886 = vmatprep.subr.bf16.mxu0 %v973_v1  ;;  %v994_v9 = vld [vmem:[%s1350_s3] sm:$0xff]   ;;  %v995_v10 = vld [vmem:[%s1350_s3 + $0x8] sm:$0xff]   ;;  %v996_v11 = vld [vmem:[%s1350_s3 + $0x10] sm:$0xff]  }
   0x5   :  { %928 = vmatprep.subr.bf16.mxu1 %v994_v9  ;;  %v981_v12 = vld [vmem:[%s1349_s0 + $0x18] sm:$0xff]   ;;  %v982_v14 = vld [vmem:[%s1349_s0 + $0x20] sm:$0xff]   ;;  %v983_v15 = vld [vmem:[%s1349_s0 + $0x28] sm:$0xff]  }
   0x6   :  { %929 = vmatpush3.bf16.msra.mxu1 %v994_v9  ;;  %v997_v13 = vld [vmem:[%s1350_s3 + $0x18] sm:$0xff]   ;;  %v984_v16 = vld [vmem:[%s1349_s0 + $0x30] sm:$0xff]   ;;  %v986_v18 = vld [vmem:[%s1349_s0 + $0x40] sm:$0xff]  }
   0x7   :  { %887 = vmatpush3.bf16.msra.mxu0 %v973_v1  ;;  %930 = vmatprep.subr.bf16.mxu1 %v995_v10  ;;  %v985_v17 = vld [vmem:[%s1349_s0 + $0x38] sm:$0xff]   ;;  %v987_v19 = vld [vmem:[%s1349_s0 + $0x48] sm:$0xff]   ;;  %v988_v20 = vld [vmem:[%s1349_s0 + $0x50] sm:$0xff]  }
   0x8   :  { %888 = vmatprep.subr.bf16.mxu0 %v974_v2  ;;  %v989_v21 = vld [vmem:[%s1349_s0 + $0x58] sm:$0xff]   ;;  %v990_v22 = vld [vmem:[%s1349_s0 + $0x60] sm:$0xff]   ;;  %v991_v23 = vld [vmem:[%s1349_s0 + $0x68] sm:$0xff]  }
   0x9   :  { %v992_v24 = vld [vmem:[%s1349_s0 + $0x70] sm:$0xff]   ;;  %v993_v25 = vld [vmem:[%s1349_s0 + $0x78] sm:$0xff]   ;;  %v998_v26 = vld [vmem:[%s1350_s3 + $0x20] sm:$0xff]  }
   0xa   :  { %931 = vmatpush3.bf16.msra.mxu1 %v995_v10  ;;  %v999_v27 = vld [vmem:[%s1350_s3 + $0x28] sm:$0xff]   ;;  %v1133_v28 = vld [vmem:[%s1351_s2] ss:$0 sm:$0xff] }
   0xb   :  { %889 = vmatpush3.bf16.msra.mxu0 %v974_v2  ;;  %932 = vmatprep.subr.bf16.mxu1 %v996_v11 }
   0xc   :  { %890 = vmatprep.subr.bf16.mxu0 %v975_v4 }
   0xe   :  { %933 = vmatpush3.bf16.msra.mxu1 %v996_v11 }
   0xf   :  { %891 = vmatpush3.bf16.msra.mxu0 %v975_v4  ;;  %934 = vmatprep.subr.bf16.mxu1 %v997_v13 }
  0x10   :  { %892 = vmatprep.subr.bf16.mxu0 %v976_v5 }
  0x12   :  { %935 = vmatpush3.bf16.msra.mxu1 %v997_v13 }
  0x13   :  { %893 = vmatpush3.bf16.msra.mxu0 %v976_v5  ;;  %936 = vmatprep.subr.bf16.mxu1 %v998_v26 }
  0x14   :  { %894 = vmatprep.subr.bf16.mxu0 %v977_v6 }
  0x16   :  { %937 = vmatpush3.bf16.msra.mxu1 %v998_v26 }
  0x17   :  { %895 = vmatpush3.bf16.msra.mxu0 %v977_v6  ;;  %938 = vmatprep.subr.bf16.mxu1 %v999_v27 }
  0x1a   :  { %897 = vmatmul.mubr.msk.bf16.vlgmr.msra.gmra.mrb[0].mxu0 %vm188_vm0, %v979_v7  ;;  %939 = vmatpush3.bf16.msra.mxu1 %v999_v27 }
  0x1b   :  { %900 = vmatprep.mubr.msk.bf16.mxu0 %vm188_vm0, %v980_v8 }
  0x22   :  { %901 = vmatmul.mubr.msk.bf16.gmra.mrb[4].mxu0 %vm188_vm0, %v981_v12 }
  0x23   :  { %904 = vmatprep.mubr.msk.bf16.mxu0 %vm188_vm0, %v982_v14 }
  0x2a   :  { %905 = vmatmul.mubr.msk.bf16.gmra.mrb[8].mxu0 %vm188_vm0, %v983_v15 }
  0x2b   :  { %908 = vmatprep.mubr.msk.bf16.mxu0 %vm188_vm0, %v984_v16 }
  0x32   :  { %909 = vmatmul.mubr.msk.bf16.gmra.mrb[12].mxu0 %vm188_vm0, %v985_v17 }
  0x33   :  { %912 = vmatprep.mubr.msk.bf16.mxu0 %vm188_vm0, %v986_v18 }
  0x3a   :  { %913 = vmatmul.mubr.msk.bf16.gmra.mrb[16].mxu0 %vm188_vm0, %v987_v19 }
  0x3b   :  { %916 = vmatprep.mubr.msk.bf16.mxu0 %vm188_vm0, %v988_v20 }
  0x42   :  { %917 = vmatmul.mubr.msk.bf16.gmra.mrb[20].mxu0 %vm188_vm0, %v989_v21 }
  0x43   :  { %920 = vmatprep.mubr.msk.bf16.mxu0 %vm188_vm0, %v990_v22 }
  0x4a   :  { %921 = vmatmul.mubr.msk.bf16.gmra.mrb[24].mxu0 %vm188_vm0, %v991_v23 }
  0x4b   :  { %924 = vmatprep.mubr.msk.bf16.mxu0 %vm188_vm0, %v992_v24 }
  0x52   :  { %925 = vmatmul.mubr.msk.bf16.gmra.mrb[28].mxu0 %vm188_vm0, %v993_v25 }
  0xed   :  { %v898_v29 = vpop.f32.mrb[0].mxu0 }
  0xee   :  { %v280_v30 = vadd.f32 %v898_v29, %v1133_v28  ;;  %v271_v31 = vpop.f32.mrb[1].mxu0 }
  0xef   :  { %v272_v32 = vadd.f32 %v1133_v28, %v271_v31  ;;  %v899_v33 = vpop.f32.mrb[2].mxu0 }
  0xf0   :  { %v283_v34 = vadd.f32 %v899_v33, %v1133_v28  ;;  %v274_v35 = vpop.f32.mrb[3].mxu0  ;;  %v400_v37 = vmax.f32 %v280_v30, 0.0 }
  0xf1   :  { %v275_v36 = vadd.f32 %v1133_v28, %v274_v35  ;;  %v398_v39 = vmax.f32 %v272_v32, 0.0 }
  0xf2   :  { %v401_v38 = vmax.f32 %v283_v34, 0.0 }
  0xf3   :  { %v399_v40 = vmax.f32 %v275_v36, 0.0 }
  0xf4   :  { %v431_v41 = vpack.c.bf16 %v401_v38, %v400_v37 }
  0xf5   :  { %v902_v42 = vpop.f32.mrb[4].mxu0  ;;  %v430_v43 = vpack.c.bf16 %v399_v40, %v398_v39 }
  0xf6   :  { %v296_v44 = vadd.f32 %v902_v42, %v1133_v28  ;;  %v287_v45 = vpop.f32.mrb[5].mxu0 }
  0xf7   :  { %v288_v46 = vadd.f32 %v1133_v28, %v287_v45  ;;  %v903_v47 = vpop.f32.mrb[6].mxu0  ;;  %940 = vmatprep.mubr.msk.bf16.mxu1 %vm188_vm0, %v430_v43 }
  0xf8   :  { %v299_v48 = vadd.f32 %v903_v47, %v1133_v28  ;;  %v290_v49 = vpop.f32.mrb[7].mxu0  ;;  %941 = vmatmul.mubr.msk.bf16.vlgmr.msra.gmra.mrb[0].mxu1 %vm188_vm0, %v431_v41  ;;  %v404_v51 = vmax.f32 %v296_v44, 0.0 }
  0xf9   :  { %v291_v50 = vadd.f32 %v1133_v28, %v290_v49  ;;  %v402_v53 = vmax.f32 %v288_v46, 0.0 }
  0xfa   :  { %v405_v52 = vmax.f32 %v299_v48, 0.0 }
  0xfb   :  { %v403_v54 = vmax.f32 %v291_v50, 0.0 }
  0xfc   :  { %v433_v55 = vpack.c.bf16 %v405_v52, %v404_v51 }
  0xfd   :  { %v432_v56 = vpack.c.bf16 %v403_v54, %v402_v53  ;;  %v906_v57 = vpop.f32.mrb[8].mxu0 }
  0xfe   :  { %v312_v58 = vadd.f32 %v906_v57, %v1133_v28  ;;  %v303_v59 = vpop.f32.mrb[9].mxu0 }
  0xff   :  { %v304_v60 = vadd.f32 %v1133_v28, %v303_v59  ;;  %v907_v61 = vpop.f32.mrb[10].mxu0  ;;  %944 = vmatprep.mubr.msk.bf16.mxu1 %vm188_vm0, %v432_v56 }
 0x100   :  { %v315_v62 = vadd.f32 %v907_v61, %v1133_v28  ;;  %v306_v63 = vpop.f32.mrb[11].mxu0  ;;  %945 = vmatmul.mubr.msk.bf16.gmra.mrb[4].mxu1 %vm188_vm0, %v433_v55  ;;  %v408_v1 = vmax.f32 %v312_v58, 0.0 }
 0x101   :  { %v307_v0 = vadd.f32 %v1133_v28, %v306_v63  ;;  %v406_v3 = vmax.f32 %v304_v60, 0.0 }
 0x102   :  { %v409_v2 = vmax.f32 %v315_v62, 0.0 }
 0x103   :  { %v407_v4 = vmax.f32 %v307_v0, 0.0 }
 0x104   :  { %v435_v5 = vpack.c.bf16 %v409_v2, %v408_v1 }
 0x105   :  { %v434_v6 = vpack.c.bf16 %v407_v4, %v406_v3  ;;  %v910_v7 = vpop.f32.mrb[12].mxu0 }
 0x106   :  { %v328_v8 = vadd.f32 %v910_v7, %v1133_v28  ;;  %v319_v9 = vpop.f32.mrb[13].mxu0 }
 0x107   :  { %v320_v10 = vadd.f32 %v1133_v28, %v319_v9  ;;  %v911_v11 = vpop.f32.mrb[14].mxu0  ;;  %948 = vmatprep.mubr.msk.bf16.mxu1 %vm188_vm0, %v434_v6 }
 0x108   :  { %v331_v12 = vadd.f32 %v911_v11, %v1133_v28  ;;  %v322_v13 = vpop.f32.mrb[15].mxu0  ;;  %949 = vmatmul.mubr.msk.bf16.gmra.mrb[8].mxu1 %vm188_vm0, %v435_v5  ;;  %v412_v15 = vmax.f32 %v328_v8, 0.0 }
 0x109   :  { %v323_v14 = vadd.f32 %v1133_v28, %v322_v13  ;;  %v410_v17 = vmax.f32 %v320_v10, 0.0 }
 0x10a   :  { %v413_v16 = vmax.f32 %v331_v12, 0.0 }
 0x10b   :  { %v411_v18 = vmax.f32 %v323_v14, 0.0  ;;  %v1186_v14 = vld [vmem:[%s1352_s4] ss:$0 sm:$0xff] }
 0x10c   :  { %v437_v19 = vpack.c.bf16 %v413_v16, %v412_v15 }
 0x10d   :  { %v436_v20 = vpack.c.bf16 %v411_v18, %v410_v17  ;;  %v914_v21 = vpop.f32.mrb[16].mxu0 }
 0x10e   :  { %v344_v22 = vadd.f32 %v914_v21, %v1133_v28  ;;  %v335_v23 = vpop.f32.mrb[17].mxu0 }
 0x10f   :  { %v336_v24 = vadd.f32 %v1133_v28, %v335_v23  ;;  %v915_v25 = vpop.f32.mrb[18].mxu0  ;;  %952 = vmatprep.mubr.msk.bf16.mxu1 %vm188_vm0, %v436_v20 }
 0x110   :  { %v347_v26 = vadd.f32 %v915_v25, %v1133_v28  ;;  %v338_v27 = vpop.f32.mrb[19].mxu0  ;;  %953 = vmatmul.mubr.msk.bf16.gmra.mrb[12].mxu1 %vm188_vm0, %v437_v19  ;;  %v416_v30 = vmax.f32 %v344_v22, 0.0 }
 0x111   :  { %v339_v29 = vadd.f32 %v1133_v28, %v338_v27  ;;  %v414_v32 = vmax.f32 %v336_v24, 0.0 }
 0x112   :  { %v417_v31 = vmax.f32 %v347_v26, 0.0 }
 0x113   :  { %v415_v33 = vmax.f32 %v339_v29, 0.0 }
 0x114   :  { %v439_v34 = vpack.c.bf16 %v417_v31, %v416_v30 }
 0x115   :  { %v438_v35 = vpack.c.bf16 %v415_v33, %v414_v32  ;;  %v918_v36 = vpop.f32.mrb[20].mxu0 }
 0x116   :  { %v360_v37 = vadd.f32 %v918_v36, %v1133_v28  ;;  %v351_v38 = vpop.f32.mrb[21].mxu0 }
 0x117   :  { %v352_v39 = vadd.f32 %v1133_v28, %v351_v38  ;;  %v919_v40 = vpop.f32.mrb[22].mxu0  ;;  %956 = vmatprep.mubr.msk.bf16.mxu1 %vm188_vm0, %v438_v35 }
 0x118   :  { %v363_v41 = vadd.f32 %v919_v40, %v1133_v28  ;;  %v354_v42 = vpop.f32.mrb[23].mxu0  ;;  %957 = vmatmul.mubr.msk.bf16.gmra.mrb[16].mxu1 %vm188_vm0, %v439_v34  ;;  %v420_v44 = vmax.f32 %v360_v37, 0.0 }
 0x119   :  { %v355_v43 = vadd.f32 %v1133_v28, %v354_v42  ;;  %v418_v46 = vmax.f32 %v352_v39, 0.0 }
 0x11a   :  { %v421_v45 = vmax.f32 %v363_v41, 0.0 }
 0x11b   :  { %v419_v47 = vmax.f32 %v355_v43, 0.0 }
 0x11c   :  { %v441_v48 = vpack.c.bf16 %v421_v45, %v420_v44 }
 0x11d   :  { %v440_v49 = vpack.c.bf16 %v419_v47, %v418_v46  ;;  %v922_v50 = vpop.f32.mrb[24].mxu0 }
 0x11e   :  { %v376_v51 = vadd.f32 %v922_v50, %v1133_v28  ;;  %v367_v52 = vpop.f32.mrb[25].mxu0 }
 0x11f   :  { %v368_v53 = vadd.f32 %v1133_v28, %v367_v52  ;;  %v923_v54 = vpop.f32.mrb[26].mxu0  ;;  %960 = vmatprep.mubr.msk.bf16.mxu1 %vm188_vm0, %v440_v49 }
 0x120   :  { %v379_v55 = vadd.f32 %v923_v54, %v1133_v28  ;;  %v370_v56 = vpop.f32.mrb[27].mxu0  ;;  %961 = vmatmul.mubr.msk.bf16.gmra.mrb[20].mxu1 %vm188_vm0, %v441_v48  ;;  %v424_v58 = vmax.f32 %v376_v51, 0.0 }
 0x121   :  { %v371_v57 = vadd.f32 %v1133_v28, %v370_v56  ;;  %v422_v60 = vmax.f32 %v368_v53, 0.0 }
 0x122   :  { %v425_v59 = vmax.f32 %v379_v55, 0.0 }
 0x123   :  { %v423_v61 = vmax.f32 %v371_v57, 0.0 }
 0x124   :  { %v443_v62 = vpack.c.bf16 %v425_v59, %v424_v58 }
 0x125   :  { %v442_v63 = vpack.c.bf16 %v423_v61, %v422_v60  ;;  %v926_v0 = vpop.f32.mrb[28].mxu0 }
 0x126   :  { %v392_v1 = vadd.f32 %v926_v0, %v1133_v28  ;;  %v383_v2 = vpop.f32.mrb[29].mxu0 }
 0x127   :  { %v384_v3 = vadd.f32 %v1133_v28, %v383_v2  ;;  %v927_v4 = vpop.f32.mrb[30].mxu0  ;;  %964 = vmatprep.mubr.msk.bf16.mxu1 %vm188_vm0, %v442_v63 }
 0x128   :  { %v395_v5 = vadd.f32 %v927_v4, %v1133_v28  ;;  %v386_v6 = vpop.f32.mrb[31].mxu0  ;;  %965 = vmatmul.mubr.msk.bf16.gmra.mrb[24].mxu1 %vm188_vm0, %v443_v62  ;;  %v428_v8 = vmax.f32 %v392_v1, 0.0 }
 0x129   :  { %v387_v7 = vadd.f32 %v1133_v28, %v386_v6  ;;  %v426_v10 = vmax.f32 %v384_v3, 0.0 }
 0x12a   :  { %v429_v9 = vmax.f32 %v395_v5, 0.0 }
 0x12b   :  { %v427_v11 = vmax.f32 %v387_v7, 0.0 }
 0x12c   :  { %v445_v12 = vpack.c.bf16 %v429_v9, %v428_v8 }
 0x12d   :  { %v444_v13 = vpack.c.bf16 %v427_v11, %v426_v10 }
 0x12f   :  { %968 = vmatprep.mubr.msk.bf16.mxu1 %vm188_vm0, %v444_v13 }
 0x130   :  { %969 = vmatmul.mubr.msk.bf16.gmra.mrb[28].mxu1 %vm188_vm0, %v445_v12 }
 0x1cb   :  { %v942_v15 = vpop.f32.mrb[0].mxu1 }
 0x1cc   :  { %v592_v16 = vadd.f32 %v942_v15, %v1186_v14  ;;  %v583_v17 = vpop.f32.mrb[1].mxu1 }
 0x1cd   :  { %v584_v28 = vadd.f32 %v1186_v14, %v583_v17  ;;  %v943_v18 = vpop.f32.mrb[2].mxu1 }
 0x1ce   :  { %v712_v19 = vmax.f32 %v592_v16, 0.0  ;;  %v595_v20 = vadd.f32 %v943_v18, %v1186_v14  ;;  %v586_v21 = vpop.f32.mrb[3].mxu1 }
 0x1cf   :  { %v710_v22 = vmax.f32 %v584_v28, 0.0  ;;  %v587_v23 = vadd.f32 %v1186_v14, %v586_v21 }
 0x1d0   :  { %744 = vst.msk [vmem:[%s1353_s5 + $0x10] sm:$0xff] %vm188_vm0, %v712_v19  ;;  %v713_v24 = vmax.f32 %v595_v20, 0.0 }
 0x1d1   :  { %742 = vst.msk [vmem:[%s1353_s5] sm:$0xff] %vm188_vm0, %v710_v22  ;;  %v711_v25 = vmax.f32 %v587_v23, 0.0 }
 0x1d2   :  { %745 = vst.msk [vmem:[%s1353_s5 + $0x18] sm:$0xff] %vm188_vm0, %v713_v24 }
 0x1d3   :  { %743 = vst.msk [vmem:[%s1353_s5 + $0x8] sm:$0xff] %vm188_vm0, %v711_v25  ;;  %v946_v26 = vpop.f32.mrb[4].mxu1 }
 0x1d4   :  { %v608_v27 = vadd.f32 %v946_v26, %v1186_v14  ;;  %v599_v29 = vpop.f32.mrb[5].mxu1 }
 0x1d5   :  { %v600_v30 = vadd.f32 %v1186_v14, %v599_v29  ;;  %v947_v31 = vpop.f32.mrb[6].mxu1 }
 0x1d6   :  { %v716_v32 = vmax.f32 %v608_v27, 0.0  ;;  %v611_v33 = vadd.f32 %v947_v31, %v1186_v14  ;;  %v602_v34 = vpop.f32.mrb[7].mxu1 }
 0x1d7   :  { %v714_v35 = vmax.f32 %v600_v30, 0.0  ;;  %v603_v36 = vadd.f32 %v1186_v14, %v602_v34 }
 0x1d8   :  { %748 = vst.msk [vmem:[%s1353_s5 + $0x30] sm:$0xff] %vm188_vm0, %v716_v32  ;;  %v717_v37 = vmax.f32 %v611_v33, 0.0 }
 0x1d9   :  { %746 = vst.msk [vmem:[%s1353_s5 + $0x20] sm:$0xff] %vm188_vm0, %v714_v35  ;;  %v715_v38 = vmax.f32 %v603_v36, 0.0 }
 0x1da   :  { %749 = vst.msk [vmem:[%s1353_s5 + $0x38] sm:$0xff] %vm188_vm0, %v717_v37 }
 0x1db   :  { %747 = vst.msk [vmem:[%s1353_s5 + $0x28] sm:$0xff] %vm188_vm0, %v715_v38  ;;  %v950_v39 = vpop.f32.mrb[8].mxu1 }
 0x1dc   :  { %v624_v40 = vadd.f32 %v950_v39, %v1186_v14  ;;  %v615_v41 = vpop.f32.mrb[9].mxu1 }
 0x1dd   :  { %v616_v42 = vadd.f32 %v1186_v14, %v615_v41  ;;  %v951_v43 = vpop.f32.mrb[10].mxu1 }
 0x1de   :  { %v720_v44 = vmax.f32 %v624_v40, 0.0  ;;  %v627_v45 = vadd.f32 %v951_v43, %v1186_v14  ;;  %v618_v46 = vpop.f32.mrb[11].mxu1 }
 0x1df   :  { %v718_v47 = vmax.f32 %v616_v42, 0.0  ;;  %v619_v48 = vadd.f32 %v1186_v14, %v618_v46 }
 0x1e0   :  { %752 = vst.msk [vmem:[%s1353_s5 + $0x50] sm:$0xff] %vm188_vm0, %v720_v44  ;;  %v721_v49 = vmax.f32 %v627_v45, 0.0 }
 0x1e1   :  { %750 = vst.msk [vmem:[%s1353_s5 + $0x40] sm:$0xff] %vm188_vm0, %v718_v47  ;;  %v719_v50 = vmax.f32 %v619_v48, 0.0 }
 0x1e2   :  { %753 = vst.msk [vmem:[%s1353_s5 + $0x58] sm:$0xff] %vm188_vm0, %v721_v49 }
 0x1e3   :  { %751 = vst.msk [vmem:[%s1353_s5 + $0x48] sm:$0xff] %vm188_vm0, %v719_v50  ;;  %v954_v51 = vpop.f32.mrb[12].mxu1 }
 0x1e4   :  { %v640_v52 = vadd.f32 %v954_v51, %v1186_v14  ;;  %v631_v53 = vpop.f32.mrb[13].mxu1 }
 0x1e5   :  { %v632_v54 = vadd.f32 %v1186_v14, %v631_v53  ;;  %v955_v55 = vpop.f32.mrb[14].mxu1 }
 0x1e6   :  { %v724_v56 = vmax.f32 %v640_v52, 0.0  ;;  %v643_v57 = vadd.f32 %v955_v55, %v1186_v14  ;;  %v634_v58 = vpop.f32.mrb[15].mxu1 }
 0x1e7   :  { %v722_v59 = vmax.f32 %v632_v54, 0.0  ;;  %v635_v60 = vadd.f32 %v1186_v14, %v634_v58 }
 0x1e8   :  { %756 = vst.msk [vmem:[%s1353_s5 + $0x70] sm:$0xff] %vm188_vm0, %v724_v56  ;;  %v725_v61 = vmax.f32 %v643_v57, 0.0 }
 0x1e9   :  { %754 = vst.msk [vmem:[%s1353_s5 + $0x60] sm:$0xff] %vm188_vm0, %v722_v59  ;;  %v723_v62 = vmax.f32 %v635_v60, 0.0 }
 0x1ea   :  { %757 = vst.msk [vmem:[%s1353_s5 + $0x78] sm:$0xff] %vm188_vm0, %v725_v61 }
 0x1eb   :  { %755 = vst.msk [vmem:[%s1353_s5 + $0x68] sm:$0xff] %vm188_vm0, %v723_v62  ;;  %v958_v63 = vpop.f32.mrb[16].mxu1 }
 0x1ec   :  { %v656_v0 = vadd.f32 %v958_v63, %v1186_v14  ;;  %v647_v1 = vpop.f32.mrb[17].mxu1 }
 0x1ed   :  { %v648_v2 = vadd.f32 %v1186_v14, %v647_v1  ;;  %v959_v3 = vpop.f32.mrb[18].mxu1 }
 0x1ee   :  { %v728_v4 = vmax.f32 %v656_v0, 0.0  ;;  %v659_v5 = vadd.f32 %v959_v3, %v1186_v14  ;;  %v650_v6 = vpop.f32.mrb[19].mxu1 }
 0x1ef   :  { %v726_v7 = vmax.f32 %v648_v2, 0.0  ;;  %v651_v8 = vadd.f32 %v1186_v14, %v650_v6 }
 0x1f0   :  { %760 = vst.msk [vmem:[%s1353_s5 + $0x90] sm:$0xff] %vm188_vm0, %v728_v4  ;;  %v729_v9 = vmax.f32 %v659_v5, 0.0 }
 0x1f1   :  { %758 = vst.msk [vmem:[%s1353_s5 + $0x80] sm:$0xff] %vm188_vm0, %v726_v7  ;;  %v727_v10 = vmax.f32 %v651_v8, 0.0 }
 0x1f2   :  { %761 = vst.msk [vmem:[%s1353_s5 + $0x98] sm:$0xff] %vm188_vm0, %v729_v9 }
 0x1f3   :  { %759 = vst.msk [vmem:[%s1353_s5 + $0x88] sm:$0xff] %vm188_vm0, %v727_v10  ;;  %v962_v11 = vpop.f32.mrb[20].mxu1 }
 0x1f4   :  { %v672_v12 = vadd.f32 %v962_v11, %v1186_v14  ;;  %v663_v13 = vpop.f32.mrb[21].mxu1 }
 0x1f5   :  { %v664_v15 = vadd.f32 %v1186_v14, %v663_v13  ;;  %v963_v16 = vpop.f32.mrb[22].mxu1 }
 0x1f6   :  { %v732_v17 = vmax.f32 %v672_v12, 0.0  ;;  %v675_v28 = vadd.f32 %v963_v16, %v1186_v14  ;;  %v666_v18 = vpop.f32.mrb[23].mxu1 }
 0x1f7   :  { %v730_v19 = vmax.f32 %v664_v15, 0.0  ;;  %v667_v20 = vadd.f32 %v1186_v14, %v666_v18 }
 0x1f8   :  { %764 = vst.msk [vmem:[%s1353_s5 + $0xb0] sm:$0xff] %vm188_vm0, %v732_v17  ;;  %v733_v21 = vmax.f32 %v675_v28, 0.0 }
 0x1f9   :  { %762 = vst.msk [vmem:[%s1353_s5 + $0xa0] sm:$0xff] %vm188_vm0, %v730_v19  ;;  %v731_v22 = vmax.f32 %v667_v20, 0.0 }
 0x1fa   :  { %765 = vst.msk [vmem:[%s1353_s5 + $0xb8] sm:$0xff] %vm188_vm0, %v733_v21 }
 0x1fb   :  { %763 = vst.msk [vmem:[%s1353_s5 + $0xa8] sm:$0xff] %vm188_vm0, %v731_v22  ;;  %v966_v23 = vpop.f32.mrb[24].mxu1 }
 0x1fc   :  { %v688_v24 = vadd.f32 %v966_v23, %v1186_v14  ;;  %v679_v25 = vpop.f32.mrb[25].mxu1 }
 0x1fd   :  { %v680_v26 = vadd.f32 %v1186_v14, %v679_v25  ;;  %v967_v27 = vpop.f32.mrb[26].mxu1 }
 0x1fe   :  { %v736_v29 = vmax.f32 %v688_v24, 0.0  ;;  %v691_v30 = vadd.f32 %v967_v27, %v1186_v14  ;;  %v682_v31 = vpop.f32.mrb[27].mxu1 }
 0x1ff   :  { %v734_v32 = vmax.f32 %v680_v26, 0.0  ;;  %v683_v33 = vadd.f32 %v1186_v14, %v682_v31 }
 0x200   :  { %768 = vst.msk [vmem:[%s1353_s5 + $0xd0] sm:$0xff] %vm188_vm0, %v736_v29  ;;  %v737_v34 = vmax.f32 %v691_v30, 0.0 }
 0x201   :  { %766 = vst.msk [vmem:[%s1353_s5 + $0xc0] sm:$0xff] %vm188_vm0, %v734_v32  ;;  %v735_v35 = vmax.f32 %v683_v33, 0.0 }
 0x202   :  { %769 = vst.msk [vmem:[%s1353_s5 + $0xd8] sm:$0xff] %vm188_vm0, %v737_v34 }
 0x203   :  { %767 = vst.msk [vmem:[%s1353_s5 + $0xc8] sm:$0xff] %vm188_vm0, %v735_v35  ;;  %v970_v36 = vpop.f32.mrb[28].mxu1 }
 0x204   :  { %v704_v37 = vadd.f32 %v970_v36, %v1186_v14  ;;  %v695_v38 = vpop.f32.mrb[29].mxu1 }
 0x205   :  { %v696_v39 = vadd.f32 %v1186_v14, %v695_v38  ;;  %v971_v40 = vpop.f32.mrb[30].mxu1 }
 0x206   :  { %v740_v41 = vmax.f32 %v704_v37, 0.0  ;;  %v707_v42 = vadd.f32 %v971_v40, %v1186_v14  ;;  %v698_v43 = vpop.f32.mrb[31].mxu1 }
 0x207   :  { %v738_v44 = vmax.f32 %v696_v39, 0.0  ;;  %v699_v45 = vadd.f32 %v1186_v14, %v698_v43 }
 0x208   :  { %772 = vst.msk [vmem:[%s1353_s5 + $0xf0] sm:$0xff] %vm188_vm0, %v740_v41  ;;  %v741_v46 = vmax.f32 %v707_v42, 0.0 }
 0x209   :  { %770 = vst.msk [vmem:[%s1353_s5 + $0xe0] sm:$0xff] %vm188_vm0, %v738_v44  ;;  %v739_v47 = vmax.f32 %v699_v45, 0.0 }
 0x20a   :  { %773 = vst.msk [vmem:[%s1353_s5 + $0xf8] sm:$0xff] %vm188_vm0, %v741_v46 }
 0x20b   :  { %771 = vst.msk [vmem:[%s1353_s5 + $0xe8] sm:$0xff] %vm188_vm0, %v739_v47 }

// kernel: shared_net_forward.13
= control target key start
LH: loop header
LB: loop body
LE: loop exit
PB: predicated region body
PF: predicated region fallthrough
CT: control target
= control target key end

     0   :  { %s603_s21 = smov 0   ;;  %s667_s0 = inlined_call_operand.vmem [shape: f32[4,5,4,96], index: 0, kind: input, shape index: {}]   ;;  %s668_s1 = inlined_call_operand.vmem [shape: f32[4,5,4,96], index: 1, kind: input, shape index: {}]   ;;  %s669_s2 = inlined_call_operand.vmem [shape: f32[4,5,4,96], index: 2, kind: input, shape index: {}]   ;;  %s670_s3 = inlined_call_operand.vmem [shape: f32[4,5,4,96], index: 3, kind: input, shape index: {}]   ;;  %s671_s4 = inlined_call_operand.vmem [shape: f32[4,5,4,96], index: 4, kind: input, shape index: {}]   ;;  %s672_s5 = inlined_call_operand.vmem [shape: f32[4,5,4,96], index: 5, kind: input, shape index: {}]   ;;  %s673_s6 = inlined_call_operand.vmem [shape: f32[4,4,4,96], index: 6, kind: output, shape index: {}]  }
   0x1 LB: > { %s535_s22 = sadd.s32 4294967295, %s566_s21   ;;  %p539_p0 = scmp.ge.s32.totalorder %s566_s21, 1  ;;  %s566_s21 = sphi %s603_s21, %s16_s21  }
   0x2   : > { %p262_p1 = scmp.lt.s32.totalorder %s566_s21, 5 }
   0x4   : > { %p263_p2 = pnand %p539_p0, %p262_p1 }
   0x5   : > { %p317_p3 = scmp.lt.s32.totalorder (!%p263_p2), %s535_s22, 3  ;;  %vm415_vm0 = vcmask (!%p263_p2), 781312  }
   0x6   : > { %266 = sbr.rel (%p263_p2) target bundleno = 41 (0x29), region = 44 }
   0xd   : > { %s675_s22 = smov (!%p317_p3, %s535_s22), 3 }
   0xe   : > { %s614_s23 = smul.u32 20, %s675_s22  ;;  %s550_s18 = sshll.u32 %s675_s22, 4 }
  0x10   : > { %s321_s26 = scalar_lea.vmem %s667_s0, %s614_s23  ;;  %s326_s29 = scalar_lea.vmem %s668_s1, %s614_s23 }
  0x11   : > { %s628_s8 = scalar_lea.vmem %s669_s2, %s614_s23  ;;  %v352_v0 = vld [vmem:[%s321_s26] sm:$0xf]  ;;  %v353_v1 = vld [vmem:[%s321_s26 + $0x4] sm:$0xf]  ;;  %v354_v2 = vld [vmem:[%s321_s26 + $0x8] sm:$0xf]  ;;  %s634_s11 = scalar_lea.vmem %s670_s3, %s614_s23 }
  0x12   : > { %v357_v3 = vld [vmem:[%s326_s29] sm:$0xf]  ;;  %v358_v4 = vld [vmem:[%s326_s29 + $0x4] sm:$0xf]  ;;  %v359_v5 = vld [vmem:[%s326_s29 + $0x8] sm:$0xf]  ;;  %s645_s14 = scalar_lea.vmem %s671_s4, %s614_s23  ;;  %s346_s17 = scalar_lea.vmem %s672_s5, %s614_s23 }
  0x13   : > { %v379_v6 = vadd.f32 %v357_v3, %v352_v0  ;;  %v380_v7 = vadd.f32 %v358_v4, %v353_v1  ;;  %v355_v8 = vld [vmem:[%s321_s26 + $0xc] sm:$0xf]  ;;  %v361_v9 = vld [vmem:[%s628_s8] sm:$0xf]  ;;  %v362_v10 = vld [vmem:[%s628_s8 + $0x4] sm:$0xf]  ;;  %v381_v11 = vadd.f32 %v359_v5, %v354_v2  ;;  %s351_s23 = scalar_lea.vmem %s673_s6, %s550_s18 }
  0x14   : > { %v363_v12 = vld [vmem:[%s628_s8 + $0x8] sm:$0xf]  ;;  %v366_v13 = vld [vmem:[%s634_s11] sm:$0xf]  ;;  %v367_v16 = vld [vmem:[%s634_s11 + $0x4] sm:$0xf] }
  0x15   : > { %v383_v14 = vadd.f32 %v379_v6, %v353_v1  ;;  %v384_v15 = vadd.f32 %v380_v7, %v354_v2  ;;  %v385_v17 = vadd.f32 %v381_v11, %v355_v8  ;;  %v356_v18 = vld [vmem:[%s321_s26 + $0x10] sm:$0xf]  ;;  %v360_v19 = vld [vmem:[%s326_s29 + $0xc] sm:$0xf]  ;;  %v368_v22 = vld [vmem:[%s634_s11 + $0x8] sm:$0xf] }
  0x16   : > { %v382_v23 = vadd.f32 %v360_v19, %v355_v8  ;;  %v364_v25 = vld [vmem:[%s628_s8 + $0xc] sm:$0xf]  ;;  %v370_v29 = vld [vmem:[%s645_s14] sm:$0xf]  ;;  %v371_v30 = vld [vmem:[%s645_s14 + $0x4] sm:$0xf] }
  0x17   : > { %v387_v20 = vadd.f32 %v383_v14, %v361_v9  ;;  %v388_v21 = vadd.f32 %v384_v15, %v362_v10  ;;  %v389_v24 = vadd.f32 %v385_v17, %v363_v12  ;;  %v369_v32 = vld [vmem:[%s634_s11 + $0xc] sm:$0xf]  ;;  %v372_v35 = vld [vmem:[%s645_s14 + $0x8] sm:$0xf]  ;;  %v375_v37 = vld [vmem:[%s346_s17] sm:$0xf] }
  0x18   : > { %v386_v28 = vadd.f32 %v382_v23, %v356_v18  ;;  %v376_v38 = vld [vmem:[%s346_s17 + $0x4] sm:$0xf]  ;;  %v365_v40 = vld [vmem:[%s628_s8 + $0x10] sm:$0xf]  ;;  %v377_v43 = vld [vmem:[%s346_s17 + $0x8] sm:$0xf] }
  0x19   : > { %v391_v26 = vadd.f32 %v387_v20, %v366_v13  ;;  %v392_v27 = vadd.f32 %v388_v21, %v367_v16  ;;  %v393_v31 = vadd.f32 %v389_v24, %v368_v22  ;;  %v373_v46 = vld [vmem:[%s645_s14 + $0xc] sm:$0xf]  ;;  %v374_v56 = vld [vmem:[%s645_s14 + $0x10] sm:$0xf] }
  0x1a   : > { %v390_v36 = vadd.f32 %v386_v28, %v364_v25  ;;  %v378_v51 = vld [vmem:[%s346_s17 + $0xc] sm:$0xf] }
  0x1b   : > { %v395_v33 = vadd.f32 %v391_v26, %v362_v10  ;;  %v396_v34 = vadd.f32 %v392_v27, %v363_v12  ;;  %v397_v39 = vadd.f32 %v393_v31, %v364_v25 }
  0x1c   : > { %v394_v44 = vadd.f32 %v390_v36, %v369_v32 }
  0x1d   : > { %v399_v41 = vadd.f32 %v395_v33, %v370_v29  ;;  %v400_v42 = vadd.f32 %v396_v34, %v371_v30  ;;  %v401_v45 = vadd.f32 %v397_v39, %v372_v35 }
  0x1e   : > { %v398_v49 = vadd.f32 %v394_v44, %v365_v40 }
  0x1f   : > { %v403_v47 = vadd.f32 %v399_v41, %v375_v37  ;;  %v404_v48 = vadd.f32 %v400_v42, %v376_v38  ;;  %v405_v50 = vadd.f32 %v401_v45, %v377_v43 }
  0x20   : > { %v402_v54 = vadd.f32 %v398_v49, %v373_v46 }
  0x21   : > { %v407_v52 = vadd.f32 %v403_v47, %v371_v30  ;;  %v408_v53 = vadd.f32 %v404_v48, %v372_v35  ;;  %v409_v55 = vadd.f32 %v405_v50, %v373_v46 }
  0x22   : > { %v406_v59 = vadd.f32 %v402_v54, %v378_v51 }
  0x23   : > { %v411_v57 = vmul.f32 0.11111111, %v407_v52  ;;  %v412_v58 = vmul.f32 0.11111111, %v408_v53  ;;  %v413_v60 = vmul.f32 0.11111111, %v409_v55 }
  0x24   : > { %v410_v61 = vadd.f32 %v406_v59, %v374_v56 }
  0x25   : > { %416 = vst.msk [vmem:[%s351_s23] sm:$0xf] %vm415_vm0, %v411_v57  ;;  %417 = vst.msk [vmem:[%s351_s23 + $0x4] sm:$0xf] %vm415_vm0, %v412_v58 }
  0x26   : > { %418 = vst.msk [vmem:[%s351_s23 + $0x8] sm:$0xf] %vm415_vm0, %v413_v60  ;;  %v414_v62 = vmul.f32 0.11111111, %v410_v61 }
  0x28   : > { %419 = vst.msk [vmem:[%s351_s23 + $0xc] sm:$0xf] %vm415_vm0, %v414_v62 }
  0x29 PF: > { %s16_s21 = sadd.s32 1, %s566_s21  }
  0x2a   : > { %p13_p4 = scmp.ge.s32.totalorder %s16_s21, 6  }
  0x2c   :  { %15 = sbr.rel (!%p13_p4) target bundleno = 1 (0x1), region = 89 }

// kernel: shared_net_forward.14
= control target key start
LH: loop header
LB: loop body
LE: loop exit
PB: predicated region body
PF: predicated region fallthrough
CT: control target
= control target key end

     0   :  { %vm540_vm0 = vcmask 785408   ;;  %s1253_s1 = inlined_call_operand.vmem [shape: bf16[1,864,96], index: 1, kind: input, shape index: {}]   ;;  %s1254_s0 = inlined_call_operand.vmem [shape: bf16[1,32,864], index: 0, kind: input, shape index: {}]   ;;  %s1255_s2 = inlined_call_operand.vmem [shape: f32[1,1,96], index: 2, kind: input, shape index: {}]   ;;  %s1256_s3 = inlined_call_operand.vmem [shape: f32[1,32,96], index: 3, kind: output, shape index: {}]  }
   0x1   :  { %v934_v0 = vld [vmem:[%s1253_s1 + $0x40] sm:$0xff]   ;;  %v938_v4 = vld [vmem:[%s1253_s1 + $0x48] sm:$0xff]   ;;  %v942_v8 = vld [vmem:[%s1253_s1 + $0x50] sm:$0xff]  }
   0x2   :  { %v935_v1 = vld [vmem:[%s1253_s1] sm:$0xff]   ;;  %826 = vmatprep.subr.bf16.mxu0 %v934_v0  ;;  %v939_v5 = vld [vmem:[%s1253_s1 + $0x8] sm:$0xff]   ;;  %v943_v9 = vld [vmem:[%s1253_s1 + $0x10] sm:$0xff]  }
   0x3   :  { %v936_v2 = vld [vmem:[%s1253_s1 + $0xc0] sm:$0xff]   ;;  %827 = vmatpush3.bf16.msra.mxu0 %v935_v1  ;;  %v940_v6 = vld [vmem:[%s1253_s1 + $0xc8] sm:$0xff]   ;;  %v944_v10 = vld [vmem:[%s1253_s1 + $0xd0] sm:$0xff]  }
   0x4   :  { %v937_v3 = vld [vmem:[%s1253_s1 + $0x80] sm:$0xff]   ;;  %854 = vmatprep.subr.bf16.mxu1 %v936_v2  ;;  %828 = vmatprep.subr.bf16.mxu0 %v938_v4  ;;  %v941_v7 = vld [vmem:[%s1253_s1 + $0x88] sm:$0xff]   ;;  %v945_v11 = vld [vmem:[%s1253_s1 + $0x90] sm:$0xff]  }
   0x5   :  { %855 = vmatpush3.bf16.msra.mxu1 %v937_v3  ;;  %v946_v12 = vld [vmem:[%s1253_s1 + $0x58] sm:$0xff]   ;;  %v950_v16 = vld [vmem:[%s1253_s1 + $0x60] sm:$0xff]   ;;  %v954_v20 = vld [vmem:[%s1253_s1 + $0x68] sm:$0xff]  }
   0x6   :  { %856 = vmatprep.subr.bf16.mxu1 %v940_v6  ;;  %v947_v13 = vld [vmem:[%s1253_s1 + $0x18] sm:$0xff]   ;;  %v951_v17 = vld [vmem:[%s1253_s1 + $0x20] sm:$0xff]   ;;  %v955_v21 = vld [vmem:[%s1253_s1 + $0x28] sm:$0xff]  }
   0x7   :  { %829 = vmatpush3.bf16.msra.mxu0 %v939_v5  ;;  %v948_v14 = vld [vmem:[%s1253_s1 + $0xd8] sm:$0xff]   ;;  %v952_v18 = vld [vmem:[%s1253_s1 + $0xe0] sm:$0xff]   ;;  %v956_v22 = vld [vmem:[%s1253_s1 + $0xe8] sm:$0xff]  }
   0x8   :  { %830 = vmatprep.subr.bf16.mxu0 %v942_v8  ;;  %v949_v15 = vld [vmem:[%s1253_s1 + $0x98] sm:$0xff]   ;;  %v953_v19 = vld [vmem:[%s1253_s1 + $0xa0] sm:$0xff]   ;;  %v957_v23 = vld [vmem:[%s1253_s1 + $0xa8] sm:$0xff]  }
   0x9   :  { %857 = vmatpush3.bf16.msra.mxu1 %v941_v7  ;;  %v958_v24 = vld [vmem:[%s1253_s1 + $0x70] sm:$0xff]   ;;  %v962_v28 = vld [vmem:[%s1253_s1 + $0x78] sm:$0xff]   ;;  %v967_v32 = vld [vmem:[%s1254_s0 + $0x4] ss:$28 sps:$4 sm:$0xff]  }
   0xa   :  { %858 = vmatprep.subr.bf16.mxu1 %v944_v10  ;;  %v959_v25 = vld [vmem:[%s1253_s1 + $0x30] sm:$0xff]   ;;  %v963_v29 = vld [vmem:[%s1253_s1 + $0x38] sm:$0xff]   ;;  %579 = vmatprep.mubr.bf16.mxu0 %v967_v32  ;;  %v969_v34 = vld [vmem:[%s1253_s1 + $0x140] sm:$0xff]  }
   0xb   :  { %831 = vmatpush3.bf16.msra.mxu0 %v943_v9  ;;  %v960_v26 = vld [vmem:[%s1253_s1 + $0xf0] sm:$0xff]   ;;  %v964_v30 = vld [vmem:[%s1253_s1 + $0xf8] sm:$0xff]   ;;  %v970_v35 = vld [vmem:[%s1254_s0 + $0x8] ss:$28 sps:$4 sm:$0xff]  }
   0xc   :  { %832 = vmatprep.subr.bf16.mxu0 %v946_v12  ;;  %v961_v27 = vld [vmem:[%s1253_s1 + $0xb0] sm:$0xff]   ;;  %v965_v31 = vld [vmem:[%s1254_s0] ss:$28 sps:$4 sm:$0xff]   ;;  %v972_v36 = vld [vmem:[%s1254_s0 + $0xc] ss:$28 sps:$4 sm:$0xff]  }
   0xd   :  { %859 = vmatpush3.bf16.msra.mxu1 %v945_v11  ;;  %v968_v33 = vld [vmem:[%s1253_s1 + $0xb8] sm:$0xff]   ;;  %v973_v37 = vld [vmem:[%s1253_s1 + $0x100] sm:$0xff]   ;;  %628 = vmatprep.mubr.bf16.mxu1 %v972_v36  ;;  %v974_v38 = vld [vmem:[%s1253_s1 + $0x148] sm:$0xff]  }
   0xe   :  { %860 = vmatprep.subr.bf16.mxu1 %v948_v14  ;;  %v975_v39 = vld [vmem:[%s1253_s1 + $0x108] sm:$0xff]   ;;  %v976_v40 = vld [vmem:[%s1253_s1 + $0x150] sm:$0xff]   ;;  %v979_v42 = vld [vmem:[%s1253_s1 + $0x180] sm:$0xff]  }
   0xf   :  { %833 = vmatpush3.bf16.msra.mxu0 %v947_v13  ;;  %v977_v41 = vld [vmem:[%s1253_s1 + $0x110] sm:$0xff]   ;;  %v978_v43 = vld [vmem:[%s1253_s1 + $0x158] sm:$0xff]   ;;  %v982_v45 = vld [vmem:[%s1253_s1 + $0x188] sm:$0xff]  }
  0x10   :  { %834 = vmatprep.subr.bf16.mxu0 %v950_v16  ;;  %v980_v44 = vld [vmem:[%s1253_s1 + $0x118] sm:$0xff]   ;;  %v981_v46 = vld [vmem:[%s1253_s1 + $0x160] sm:$0xff]   ;;  %v987_v49 = vld [vmem:[%s1253_s1 + $0x190] sm:$0xff]  }
  0x11   :  { %861 = vmatpush3.bf16.msra.mxu1 %v949_v15  ;;  %v984_v47 = vld [vmem:[%s1254_s0 + $0x3c] ss:$28 sps:$4 sm:$0xff]   ;;  %v983_v48 = vld [vmem:[%s1253_s1 + $0x120] sm:$0xff]   ;;  %v986_v51 = vld [vmem:[%s1253_s1 + $0x168] sm:$0xff]  }
  0x12   :  { %862 = vmatprep.subr.bf16.mxu1 %v952_v18  ;;  %v988_v50 = vld [vmem:[%s1254_s0 + $0x38] ss:$28 sps:$4 sm:$0xff]   ;;  %v990_v52 = vld [vmem:[%s1254_s0 + $0x44] ss:$28 sps:$4 sm:$0xff]   ;;  %v989_v54 = vld [vmem:[%s1253_s1 + $0x128] sm:$0xff]  }
  0x13   :  { %835 = vmatpush3.bf16.msra.mxu0 %v951_v17  ;;  %v992_v53 = vld [vmem:[%s1254_s0 + $0x40] ss:$28 sps:$4 sm:$0xff]   ;;  %v993_v56 = vld [vmem:[%s1253_s1 + $0x170] sm:$0xff]   ;;  %v1002_v61 = vld [vmem:[%s1253_s1 + $0x1a8] sm:$0xff]  }
  0x14   :  { %836 = vmatprep.subr.bf16.mxu0 %v954_v20  ;;  %v994_v55 = vld [vmem:[%s1253_s1 + $0x198] sm:$0xff]   ;;  %v997_v57 = vld [vmem:[%s1253_s1 + $0x1a0] sm:$0xff]   ;;  %v995_v58 = vld [vmem:[%s1253_s1 + $0x130] sm:$0xff]  }
  0x15   :  { %863 = vmatpush3.bf16.msra.mxu1 %v953_v19  ;;  %v996_v59 = vld [vmem:[%s1253_s1 + $0x178] sm:$0xff]   ;;  %v1001_v60 = vld [vmem:[%s1254_s0 + $0x14] ss:$28 sps:$4 sm:$0xff]   ;;  %v1005_v2 = vld [vmem:[%s1254_s0 + $0x4c] ss:$28 sps:$4 sm:$0xff]  }
  0x16   :  { %864 = vmatprep.subr.bf16.mxu1 %v956_v22  ;;  %v1003_v62 = vld [vmem:[%s1254_s0 + $0x18] ss:$28 sps:$4 sm:$0xff]   ;;  %v1004_v0 = vld [vmem:[%s1254_s0 + $0x50] ss:$28 sps:$4 sm:$0xff]   ;;  %v1007_v3 = vld [vmem:[%s1254_s0 + $0x48] ss:$28 sps:$4 sm:$0xff]  }
  0x17   :  { %837 = vmatpush3.bf16.msra.mxu0 %v955_v21  ;;  %v998_v63 = vld [vmem:[%s1253_s1 + $0x138] sm:$0xff]   ;;  %v999_v1 = vld [vmem:[%s1254_s0 + $0x10] ss:$28 sps:$4 sm:$0xff]   ;;  %v755_v5 = vld [vmem:[%s1255_s2] ss:$0 sm:$0xff] }
  0x18   :  { %838 = vmatprep.subr.bf16.mxu0 %v958_v24 }
  0x19   :  { %865 = vmatpush3.bf16.msra.mxu1 %v957_v23 }
  0x1a   :  { %866 = vmatprep.subr.bf16.mxu1 %v960_v26 }
  0x1b   :  { %839 = vmatpush3.bf16.msra.mxu0 %v959_v25 }
  0x1c   :  { %840 = vmatprep.subr.bf16.mxu0 %v962_v28 }
  0x1d   :  { %867 = vmatpush3.bf16.msra.mxu1 %v961_v27 }
  0x1e   :  { %868 = vmatprep.subr.bf16.mxu1 %v964_v30 }
  0x1f   :  { %841 = vmatpush3.bf16.msra.mxu0 %v963_v29 }
  0x20   :  { %882 = vmatprep.subr.bf16.mxu0 %v969_v34 }
  0x21   :  { %869 = vmatpush3.bf16.msra.mxu1 %v968_v33 }
  0x22   :  { %580 = vmatmul.mubr.bf16.vlgmr.msra.gmra.mrb[0].mxu0 %v965_v31  ;;  %918 = vmatprep.subr.bf16.mxu1 %v979_v42 }
  0x23   :  { %883 = vmatpush3.bf16.msra.mxu0 %v973_v37  ;;  %587 = vmatprep.mubr.bf16.mxu0 %v984_v47 }
  0x24   :  { %629 = vmatmul.mubr.bf16.vlgmr.msra.gmra.mrb[0].mxu1 %v970_v35  ;;  %884 = vmatprep.subr.bf16.mxu0 %v974_v38 }
  0x25   :  { %919 = vmatpush3.bf16.msra.mxu1 %v979_v42  ;;  %636 = vmatprep.mubr.bf16.mxu1 %v990_v52 }
  0x26   :  { %920 = vmatprep.subr.bf16.mxu1 %v982_v45 }
  0x27   :  { %885 = vmatpush3.bf16.msra.mxu0 %v975_v39 }
  0x28   :  { %886 = vmatprep.subr.bf16.mxu0 %v976_v40 }
  0x29   :  { %921 = vmatpush3.bf16.msra.mxu1 %v982_v45 }
  0x2a   :  { %922 = vmatprep.subr.bf16.mxu1 %v987_v49  ;;  %588 = vmatmul.mubr.bf16.gmra.mrb[4].mxu0 %v988_v50 }
  0x2b   :  { %887 = vmatpush3.bf16.msra.mxu0 %v977_v41  ;;  %677 = vmatprep.mubr.bf16.mxu0 %v1001_v60 }
  0x2c   :  { %888 = vmatprep.subr.bf16.mxu0 %v978_v43  ;;  %637 = vmatmul.mubr.bf16.gmra.mrb[4].mxu1 %v992_v53 }
  0x2d   :  { %923 = vmatpush3.bf16.msra.mxu1 %v987_v49  ;;  %930 = vmatprep.mubr.msk.bf16.mxu1 %vm540_vm0, %v1003_v62 }
  0x2e   :  { %924 = vmatprep.subr.bf16.mxu1 %v994_v55 }
  0x2f   :  { %889 = vmatpush3.bf16.msra.mxu0 %v980_v44 }
  0x30   :  { %890 = vmatprep.subr.bf16.mxu0 %v981_v46 }
  0x31   :  { %925 = vmatpush3.bf16.msra.mxu1 %v994_v55 }
  0x32   :  { %926 = vmatprep.subr.bf16.mxu1 %v997_v57 }
  0x33   :  { %891 = vmatpush3.bf16.msra.mxu0 %v983_v48 }
  0x34   :  { %892 = vmatprep.subr.bf16.mxu0 %v986_v51 }
  0x35   :  { %927 = vmatpush3.bf16.msra.mxu1 %v997_v57 }
  0x36   :  { %928 = vmatprep.subr.bf16.mxu1 %v1002_v61 }
  0x37   :  { %893 = vmatpush3.bf16.msra.mxu0 %v989_v54 }
  0x38   :  { %894 = vmatprep.subr.bf16.mxu0 %v993_v56 }
  0x39   :  { %929 = vmatpush3.bf16.msra.mxu1 %v1002_v61 }
  0x3b   :  { %895 = vmatpush3.bf16.msra.mxu0 %v995_v58 }
  0x3c   :  { %896 = vmatprep.subr.bf16.mxu0 %v996_v59  ;;  %931 = vmatmul.mubr.msk.bf16.vlgmr.msra.gmra.mrb[8].mxu1 %vm540_vm0, %v1004_v0 }
  0x3f   :  { %897 = vmatpush3.bf16.msra.mxu0 %v998_v63 }
  0x42   :  { %678 = vmatmul.mubr.bf16.vlgmr.msra.gmra.mrb[8].mxu0 %v999_v1 }
  0x43   :  { %685 = vmatprep.mubr.bf16.mxu0 %v1005_v2 }
  0x4a   :  { %686 = vmatmul.mubr.bf16.gmra.mrb[12].mxu0 %v1007_v3 }
  0xf5   :  { %v842_v4 = vpop.f32.mrb[0].mxu0 }
  0xf6   :  { %v843_v6 = vpop.f32.mrb[1].mxu0 }
  0xf7   :  { %v844_v7 = vadd.f32 %v843_v6, %v842_v4  ;;  %v845_v8 = vpop.f32.mrb[2].mxu0  ;;  %v870_v9 = vpop.f32.mrb[0].mxu1 }
  0xf8   :  { %v846_v10 = vpop.f32.mrb[3].mxu0  ;;  %v871_v13 = vpop.f32.mrb[1].mxu1 }
  0xf9   :  { %v582_v11 = vadd.f32 %v844_v7, %v755_v5  ;;  %v847_v12 = vadd.f32 %v846_v10, %v845_v8  ;;  %v872_v14 = vadd.f32 %v871_v13, %v870_v9  ;;  %v873_v15 = vpop.f32.mrb[2].mxu1 }
  0xfa   :  { %v874_v17 = vpop.f32.mrb[3].mxu1 }
  0xfb   :  { %v585_v16 = vadd.f32 %v847_v12, %v755_v5  ;;  %v631_v18 = vadd.f32 %v872_v14, %v582_v11  ;;  %v875_v19 = vadd.f32 %v874_v17, %v873_v15 }
  0xfd   :  { %v634_v20 = vadd.f32 %v875_v19, %v585_v16  ;;  %v848_v21 = vpop.f32.mrb[4].mxu0 }
  0xfe   :  { %v849_v22 = vpop.f32.mrb[5].mxu0 }
  0xff   :  { %v850_v23 = vadd.f32 %v849_v22, %v848_v21  ;;  %v851_v24 = vpop.f32.mrb[6].mxu0  ;;  %v876_v25 = vpop.f32.mrb[4].mxu1 }
 0x100   :  { %v852_v26 = vpop.f32.mrb[7].mxu0  ;;  %v877_v27 = vpop.f32.mrb[5].mxu1 }
 0x101   :  { %v590_v28 = vadd.f32 %v850_v23, %v755_v5  ;;  %v853_v29 = vadd.f32 %v852_v26, %v851_v24  ;;  %v878_v30 = vadd.f32 %v877_v27, %v876_v25  ;;  %v879_v31 = vpop.f32.mrb[6].mxu1 }
 0x102   :  { %v880_v32 = vpop.f32.mrb[7].mxu1 }
 0x103   :  { %v593_v33 = vadd.f32 %v853_v29, %v755_v5  ;;  %v639_v34 = vadd.f32 %v878_v30, %v590_v28  ;;  %v881_v35 = vadd.f32 %v880_v32, %v879_v31 }
 0x105   :  { %v642_v36 = vadd.f32 %v881_v35, %v593_v33 }
 0x10f   :  { %v932_v37 = vpop.f32.mrb[8].mxu1 }
 0x110   :  { %v728_v39 = vpop.f32.mrb[9].mxu1 }
 0x111   :  { %v933_v41 = vpop.f32.mrb[10].mxu1 }
 0x112   :  { %v731_v44 = vpop.f32.mrb[11].mxu1 }
 0x115   :  { %v898_v38 = vpop.f32.mrb[8].mxu0 }
 0x116   :  { %v899_v40 = vpop.f32.mrb[9].mxu0 }
 0x117   :  { %v900_v42 = vadd.f32 %v899_v40, %v898_v38  ;;  %v901_v43 = vpop.f32.mrb[10].mxu0 }
 0x118   :  { %v902_v45 = vpop.f32.mrb[11].mxu0 }
 0x119   :  { %v903_v46 = vadd.f32 %v902_v45, %v901_v43  ;;  %v680_v47 = vadd.f32 %v900_v42, %v631_v18 }
 0x11b   :  { %v729_v48 = vadd.f32 %v728_v39, %v680_v47  ;;  %v683_v49 = vadd.f32 %v903_v46, %v634_v20 }
 0x11d   :  { %v743_v50 = vmax.f32 %v729_v48, 0.0  ;;  %v732_v51 = vadd.f32 %v731_v44, %v683_v49  ;;  %v904_v52 = vpop.f32.mrb[12].mxu0 }
 0x11e   :  { %v905_v53 = vpop.f32.mrb[13].mxu0 }
 0x11f   :  { %747 = vst.msk [vmem:[%s1256_s3] sm:$0xff] %vm540_vm0, %v743_v50  ;;  %v744_v54 = vmax.f32 %v732_v51, 0.0  ;;  %v906_v55 = vadd.f32 %v905_v53, %v904_v52  ;;  %v907_v56 = vpop.f32.mrb[14].mxu0 }
 0x120   :  { %v908_v57 = vpop.f32.mrb[15].mxu0 }
 0x121   :  { %748 = vst.msk [vmem:[%s1256_s3 + $0x8] sm:$0xff] %vm540_vm0, %v744_v54  ;;  %v688_v58 = vadd.f32 %v906_v55, %v639_v34  ;;  %v909_v59 = vadd.f32 %v908_v57, %v907_v56 }
 0x123   :  { %v737_v60 = vadd.f32 %v932_v37, %v688_v58  ;;  %v691_v61 = vadd.f32 %v909_v59, %v642_v36 }
 0x125   :  { %v745_v62 = vmax.f32 %v737_v60, 0.0  ;;  %v740_v63 = vadd.f32 %v933_v41, %v691_v61 }
 0x127   :  { %749 = vst.msk [vmem:[%s1256_s3 + $0x10] sm:$0xff] %vm540_vm0, %v745_v62  ;;  %v746_v0 = vmax.f32 %v740_v63, 0.0 }
 0x129   :  { %750 = vst.msk [vmem:[%s1256_s3 + $0x18] sm:$0xff] %vm540_vm0, %v746_v0 }

// kernel: shared_net_forward.15
= control target key start
LH: loop header
LB: loop body
LE: loop exit
PB: predicated region body
PF: predicated region fallthrough
CT: control target
= control target key end

     0   :  { %vm91_vm0 = vcmask 785408   ;;  %s490_s0 = inlined_call_operand.vmem [shape: bf16[32,96], index: 0, kind: input, shape index: {}]   ;;  %s491_s1 = inlined_call_operand.vmem [shape: bf16[96,96], index: 1, kind: input, shape index: {}]   ;;  %s492_s2 = inlined_call_operand.vmem [shape: f32[1,96], index: 2, kind: input, shape index: {}]   ;;  %s493_s3 = inlined_call_operand.vmem [shape: bf16[96,10], index: 3, kind: input, shape index: {}]   ;;  %s494_s4 = inlined_call_operand.vmem [shape: f32[1,10], index: 4, kind: input, shape index: {}]   ;;  %s495_s5 = inlined_call_operand.hbm [shape: f32[32,10], index: 5, kind: output, shape index: {}]  }
   0x1   :  { %v355_v0 = vld [vmem:[%s491_s1] sm:$0xff]   ;;  %v356_v1 = vld [vmem:[%s491_s1 + $0x8] sm:$0xff]   ;;  %v357_v2 = vld [vmem:[%s491_s1 + $0x10] sm:$0xff]  }
   0x2   :  { %320 = vmatprep.subr.bf16.mxu0 %v355_v0  ;;  %v361_v3 = vld [vmem:[%s490_s0] sm:$0xff]   ;;  %v358_v4 = vld [vmem:[%s491_s1 + $0x18] sm:$0xff]   ;;  %v364_v6 = vld [vmem:[%s493_s3 + $0x8] sm:$0xff]  }
   0x3   :  { %321 = vmatpush3.bf16.msra.mxu0 %v355_v0  ;;  %332 = vmatprep.mubr.msk.bf16.mxu0 %vm91_vm0, %v361_v3  ;;  %v363_v5 = vld [vmem:[%s493_s3] sm:$0xff]   ;;  %v365_v8 = vld [vmem:[%s493_s3 + $0x10] sm:$0xff]  }
   0x4   :  { %322 = vmatprep.subr.bf16.mxu0 %v356_v1  ;;  %v359_v7 = vld [vmem:[%s491_s1 + $0x20] sm:$0xff]   ;;  %336 = vmatprep.subr.bf16.mxu1 %v363_v5 }
   0x5   :  { %337 = vmatpush3.bf16.msra.mxu1 %v363_v5 }
   0x6   :  { %338 = vmatprep.subr.bf16.mxu1 %v364_v6 }
   0x7   :  { %323 = vmatpush3.bf16.msra.mxu0 %v356_v1 }
   0x8   :  { %324 = vmatprep.subr.bf16.mxu0 %v357_v2 }
   0xb   :  { %325 = vmatpush3.bf16.msra.mxu0 %v357_v2 }
   0xc   :  { %326 = vmatprep.subr.bf16.mxu0 %v358_v4 }
   0xd   :  { %10 = vsyncpa [#allocation3], 0  ;;  %339 = vmatpush3.bf16.msra.mxu1 %v364_v6  ;;  %v360_v9 = vld [vmem:[%s491_s1 + $0x28] sm:$0xff]   ;;  %v366_v10 = vld [vmem:[%s493_s3 + $0x18] sm:$0xff]   ;;  %vm263_vm1 = vcmask 80896  }
   0xe   :  { %340 = vmatprep.subr.bf16.mxu1 %v365_v8  ;;  %v362_v11 = vld [vmem:[%s490_s0 + $0x8] sm:$0xff]   ;;  %v367_v12 = vld [vmem:[%s493_s3 + $0x20] sm:$0xff]  }
   0xf   :  { %327 = vmatpush3.bf16.msra.mxu0 %v358_v4  ;;  %v368_v13 = vld [vmem:[%s493_s3 + $0x28] sm:$0xff]   ;;  %v284_v14 = vld [vmem:[%s492_s2] ss:$0 sm:$0xff]  ;;  %s393_s3 = smov [#allocation2]  }
  0x10   :  { %328 = vmatprep.subr.bf16.mxu0 %v359_v7  ;;  %v295_v29 = vld [vmem:[%s494_s4] ss:$0 sm:$0xff]  ;;  %s273_s22 = sshll.u32 %s393_s3, 4  ;;  %s274_s22 = int_to_ptr.vmem [resolvable:$true] %s273_s22 }
  0x11   :  { %341 = vmatpush3.bf16.msra.mxu1 %v365_v8  ;;  %s369_s23 = scalar_lea.vmem %s274_s22, 512  ;;  %p374_p1 = scmp.lt.s32.totalorder %s274_s22, %s274_s22 }
  0x12   :  { %342 = vmatprep.subr.bf16.mxu1 %v366_v10  ;;  %p370_p0 = scmp.ne.s32.totalorder %s274_s22, %s369_s23  ;;  %p375_p2 = scmp.lt.s32.totalorder %s369_s23, %s369_s23 }
  0x13   :  { %329 = vmatpush3.bf16.msra.mxu0 %v359_v7 }
  0x14   :  { %330 = vmatprep.subr.bf16.mxu0 %v360_v9  ;;  %p376_p3 = por %p375_p2, %p374_p1 }
  0x15   :  { %343 = vmatpush3.bf16.msra.mxu1 %v366_v10 }
  0x16   :  { %344 = vmatprep.subr.bf16.mxu1 %v367_v12  ;;  %p377_p4 = pnand %p376_p3, %p370_p0 }
  0x17   :  { %331 = vmatpush3.bf16.msra.mxu0 %v360_v9 }
  0x19   :  { %345 = vmatpush3.bf16.msra.mxu1 %v367_v12 }
  0x1a   :  { %333 = vmatmul.mubr.msk.bf16.vlgmr.msra.gmra.mrb[0].mxu0 %vm91_vm0, %v362_v11  ;;  %346 = vmatprep.subr.bf16.mxu1 %v368_v13 }
  0x1d   :  { %347 = vmatpush3.bf16.msra.mxu1 %v368_v13 }
  0xed   :  { %v334_v15 = vpop.f32.mrb[0].mxu0 }
  0xee   :  { %v141_v16 = vadd.f32 %v334_v15, %v284_v14  ;;  %v132_v17 = vpop.f32.mrb[1].mxu0 }
  0xef   :  { %v133_v18 = vadd.f32 %v284_v14, %v132_v17  ;;  %v335_v19 = vpop.f32.mrb[2].mxu0 }
  0xf0   :  { %v144_v20 = vadd.f32 %v335_v19, %v284_v14  ;;  %v135_v21 = vpop.f32.mrb[3].mxu0  ;;  %v149_v23 = vmax.f32 %v141_v16, 0.0 }
  0xf1   :  { %v136_v22 = vadd.f32 %v284_v14, %v135_v21  ;;  %v147_v25 = vmax.f32 %v133_v18, 0.0 }
  0xf2   :  { %v150_v24 = vmax.f32 %v144_v20, 0.0 }
  0xf3   :  { %v148_v26 = vmax.f32 %v136_v22, 0.0 }
  0xf4   :  { %v152_v27 = vpack.c.bf16 %v150_v24, %v149_v23 }
  0xf5   :  { %v151_v28 = vpack.c.bf16 %v148_v26, %v147_v25 }
  0xf7   :  { %348 = vmatprep.mubr.msk.bf16.mxu1 %vm91_vm0, %v151_v28 }
  0xf8   :  { %349 = vmatmul.mubr.msk.bf16.vlgmr.msra.gmra.mrb[0].mxu1 %vm91_vm0, %v152_v27 }
 0x1cb   :  { %v350_v30 = vpop.f32.mrb[0].mxu1 }
 0x1cc   :  { %v257_v31 = vadd.f32 %v350_v30, %v295_v29  ;;  %v248_v32 = vpop.f32.mrb[1].mxu1 }
 0x1cd   :  { %v249_v33 = vadd.f32 %v295_v29, %v248_v32  ;;  %v351_v34 = vpop.f32.mrb[2].mxu1 }
 0x1ce   :  { %266 = vst.msk [vmem:[#allocation2 + $0x10] sm:$0xff] %vm263_vm1, %v257_v31  ;;  %v260_v35 = vadd.f32 %v351_v34, %v295_v29  ;;  %v251_v36 = vpop.f32.mrb[3].mxu1 }
 0x1cf   :  { %264 = vst.msk [vmem:[#allocation2] sm:$0xff] %vm263_vm1, %v249_v33  ;;  %v252_v37 = vadd.f32 %v295_v29, %v251_v36 }
 0x1d0   :  { %267 = vst.msk [vmem:[#allocation2 + $0x18] sm:$0xff] %vm263_vm1, %v260_v35 }
 0x1d1   :  { %265 = vst.msk [vmem:[#allocation2 + $0x8] sm:$0xff] %vm263_vm1, %v252_v37 }
 0x1d2   :  { %380 = shalt.err (!%p377_p4)
}
 0x1d3   :  { %s381_s25 = scalar_lea.hbm %s495_s5, 512 }
 0x1d4   :  { %p382_p5 = scmp.ne.s32.totalorder %s495_s5, %s381_s25  ;;  %p385_p6 = scmp.lt.u32.totalorder %s381_s25, %s495_s5 }
 0x1d6   :  { %p387_p7 = pnand %p385_p6, %p382_p5 }
 0x1d8   :  { %390 = shalt.err (!%p387_p7)
}
 0x1d9   :  { %s394_s30 = smov 128   ;;  %s395_s6 = smov 8  }
 0x1da   :  { %279 = dma.vmem_to_hbm [thread:$0]  %s274_s22, 512, %s495_s5, [#allocation3], %s394_s30, %s394_s30, %s395_s6  }
 0x1db   :  { %391 = dma.done.wait [#allocation3], 512  }
 0x1dc   :  { %392 = vsyncadd [#allocation3], 4294966784 }
 0x1dd   :  { %283 = vsyncpa [#allocation3], 1 }

</bundles_post_ra>
